<compile_context>
chip_gen: v7x
topology: tpu7x:2x2x1
jax: 0.10.0
libtpu: 0.0.40
codegen_flags: <defaults>
</compile_context>

<pallas_src>
import jax
import jax.numpy as jnp
from jax.experimental import pallas as pl
from jax.experimental.pallas import tpu as pltpu

_PITCH = 256    # per-image row pitch of the conv1-pooled activation (169 valid rows)
_MAX_TB = 8     # batch tile (images per grid step)


# ------------------------------ fused kernel ------------------------------- #

def _fused_kernel(p_ref, w1_ref, b1_ref, w2_ref, b2_ref,
                  wf1_ref, bf1_ref, wf2_ref, bf2_ref, wo_ref, bo_ref,
                  o_ref, h1_scr, act_scr):
    """Whole forward pass for one batch tile.

    p_ref:   (1, 9, 4*TB*256) bf16  conv1 im2col; lane = k*(TB*256) + t*256 + (ph*13+pw)
    w1_ref:  (32, 9) bf16           conv1 weight (Cout, di*3+dj)
    b1_ref:  (32, 1) f32
    w2_ref:  (9, 32, 64) bf16       conv2 weight per tap (di*3+dj, Cin, Cout)
    b2_ref:  (1, 64) f32
    wf1_ref: (1600, 128) bf16       fc1 (rows permuted to the in-kernel flatten order)
    wf2_ref: (128, 64) bf16 ; wo_ref: (64, 10) bf16 ; biases (1, N) f32
    o_ref:   (TB, 10) f32
    h1_scr:  (TB*256+32, 32) bf16   conv1-pooled activation, channels-last
    act_scr: (TB, 256, 64) f32      conv2 activation (pre-pool)
    """
    f32 = jnp.float32
    tb = o_ref.shape[0]
    n = tb * _PITCH

    # -- stage 1: conv1 as ONE MXU matmul; 2x2 maxpool folded into the epilogue as a
    #    max over the 4 aligned lane groups; then bias + ReLU (commutes with the max).
    y = jnp.dot(w1_ref[...], p_ref[0], preferred_element_type=f32)          # (32, 4n)
    m = jnp.maximum(jnp.maximum(y[:, 0:n], y[:, n:2 * n]),
                    jnp.maximum(y[:, 2 * n:3 * n], y[:, 3 * n:4 * n]))      # (32, n)
    m = jnp.maximum(m + b1_ref[...], 0.0)
    # park channels-last in VMEM: row = t*256 + (ph*13 + pw); rows 169..255/img unused
    h1_scr[0:n, :] = m.T.astype(h1_scr.dtype)
    h1_scr[n:, :] = jnp.zeros((h1_scr.shape[0] - n, h1_scr.shape[1]), h1_scr.dtype)

    # -- stage 2: conv2 (3x3, 32->64) as 9 row-shifted matmuls over the resident
    #    activation (no im2col / HBM round trip).  The global shift s = di*13+dj never
    #    crosses an image boundary for any row the pooling below actually reads.
    acc = jnp.zeros((n, 64), f32)
    for di in range(3):
        for dj in range(3):
            s = di * 13 + dj
            acc = acc + jnp.dot(h1_scr[s:s + n, :], w2_ref[di * 3 + dj],
                                preferred_element_type=f32)
    act_scr[...] = jnp.maximum(acc + b2_ref[...], 0.0).reshape(tb, _PITCH, 64)

    # -- 2x2 maxpool (floor mode -> rows/cols 0..9 of the 11x11 conv2 map) + NHWC
    #    flatten; column order (ph*5+pw)*64 + c matches the fc1 row permutation.
    cols = []
    for ph in range(5):
        for pw in range(5):
            r = 26 * ph + 2 * pw
            cols.append(jnp.maximum(
                jnp.maximum(act_scr[:, r, :], act_scr[:, r + 1, :]),
                jnp.maximum(act_scr[:, r + 13, :], act_scr[:, r + 14, :])))
    xb = jnp.concatenate(cols, axis=-1).astype(jnp.bfloat16)                # (tb, 1600)

    # -- fc1 -> fc2 -> output head; all weights stay VMEM-resident across the grid.
    h = jnp.dot(xb, wf1_ref[...], preferred_element_type=f32) + bf1_ref[...]
    h = jnp.maximum(h, 0.0).astype(jnp.bfloat16)
    h = jnp.dot(h, wf2_ref[...], preferred_element_type=f32) + bf2_ref[...]
    h = jnp.maximum(h, 0.0).astype(jnp.bfloat16)
    o_ref[...] = jnp.dot(h, wo_ref[...], preferred_element_type=f32) + bo_ref[...]


def fused_forward(patches, prep, tb, bp):
    """patches: (G, 9, 4*tb*256) bf16 -> logits (bp, 10) f32."""
    g = patches.shape[0]
    n = tb * _PITCH
    return pl.pallas_call(
        _fused_kernel,
        out_shape=jax.ShapeDtypeStruct((bp, 10), jnp.float32),
        grid=(g,),
        in_specs=[
            pl.BlockSpec((1, 9, 4 * n), lambda i: (i, 0, 0)),   # conv1 patches (per tile)
            pl.BlockSpec((32, 9), lambda i: (0, 0)),            # conv1 weight (resident)
            pl.BlockSpec((32, 1), lambda i: (0, 0)),
            pl.BlockSpec((9, 32, 64), lambda i: (0, 0, 0)),     # conv2 weight
            pl.BlockSpec((1, 64), lambda i: (0, 0)),
            pl.BlockSpec((1600, 128), lambda i: (0, 0)),        # fc1
            pl.BlockSpec((1, 128), lambda i: (0, 0)),
            pl.BlockSpec((128, 64), lambda i: (0, 0)),          # fc2
            pl.BlockSpec((1, 64), lambda i: (0, 0)),
            pl.BlockSpec((64, 10), lambda i: (0, 0)),           # output head
            pl.BlockSpec((1, 10), lambda i: (0, 0)),
        ],
        out_specs=pl.BlockSpec((tb, 10), lambda i: (i, 0)),
        scratch_shapes=[
            pltpu.VMEM((n + 32, 32), jnp.bfloat16),     # conv1-pooled activation (+pad rows)
            pltpu.VMEM((tb, _PITCH, 64), jnp.float32),  # conv2 activation (pre-pool)
        ],
        compiler_params=pltpu.CompilerParams(
            dimension_semantics=("parallel",),
            vmem_limit_bytes=32 * 1024 * 1024),
    )(patches, prep["w1"], prep["b1"], prep["w2"], prep["b2"],
      prep["fc1_w"], prep["fc1_b"], prep["fc2_w"], prep["fc2_b"],
      prep["out_w"], prep["out_b"])


# ------------------------------- model glue -------------------------------- #

def _conv1_pool_patches(x, tb):
    """x: (B, 28, 28) bf16 (B % tb == 0) -> (B//tb, 9, 4*tb*256).

    Lane index = k*(tb*256) + t*256 + (ph*13 + pw) with k = dy*2+dx the position
    inside each 2x2 pool window; sublane index = di*3+dj (the 9 conv taps).
    """
    b = x.shape[0]
    cols = [x[:, di:di + 26, dj:dj + 26] for di in range(3) for dj in range(3)]
    p = jnp.stack(cols, axis=-1)                      # (B, 26, 26, 9)
    p = p.reshape(b, 13, 2, 13, 2, 9)                 # oh = 2*ph+dy, ow = 2*pw+dx
    p = jnp.transpose(p, (2, 4, 0, 1, 3, 5))          # (dy, dx, B, ph, pw, 9)
    p = p.reshape(4, b, 169, 9)
    p = jnp.pad(p, ((0, 0), (0, 0), (0, _PITCH - 169), (0, 0)))
    p = p.reshape(4, b // tb, tb, _PITCH, 9)
    p = jnp.transpose(p, (1, 4, 0, 2, 3))             # (G, 9, 4, tb, 256)
    return p.reshape(b // tb, 9, 4 * tb * _PITCH)


def init_params(key):
    """Parameters in PyTorch layout (OIHW conv weights, (out,in) linear weights)."""
    ks = jax.random.split(key, 10)
    return {
        "w1": 0.1 * jax.random.normal(ks[0], (32, 1, 3, 3), jnp.float32),
        "b1": 0.1 * jax.random.normal(ks[1], (32,), jnp.float32),
        "w2": 0.05 * jax.random.normal(ks[2], (64, 32, 3, 3), jnp.float32),
        "b2": 0.05 * jax.random.normal(ks[3], (64,), jnp.float32),
        "fc1_w": 0.02 * jax.random.normal(ks[4], (128, 1600), jnp.float32),
        "fc1_b": 0.02 * jax.random.normal(ks[5], (128,), jnp.float32),
        "fc2_w": 0.05 * jax.random.normal(ks[6], (64, 128), jnp.float32),
        "fc2_b": 0.05 * jax.random.normal(ks[7], (64,), jnp.float32),
        "out_w": 0.05 * jax.random.normal(ks[8], (10, 64), jnp.float32),
        "out_b": 0.05 * jax.random.normal(ks[9], (10,), jnp.float32),
    }


def prepare_params(p, compute_dtype=jnp.bfloat16):
    """One-time layout / dtype conversion (outside the per-forward path)."""
    def bias(b):
        return b.reshape(1, -1).astype(jnp.float32)

    w1 = p["w1"].reshape(32, 9).astype(compute_dtype)                       # (Cout, di*3+dj)
    w2 = jnp.transpose(p["w2"], (2, 3, 1, 0)).reshape(9, 32, 64).astype(compute_dtype)
    # fc1 rows re-ordered from the PyTorch NCHW flatten (c*25 + h*5 + w) to the
    # (h*320 + w*64 + c) order produced by the in-kernel pool/flatten.
    fc1 = p["fc1_w"].reshape(128, 64, 5, 5)
    fc1 = jnp.transpose(fc1, (2, 3, 1, 0)).reshape(1600, 128).astype(compute_dtype)
    return {
        "w1": w1, "b1": p["b1"].reshape(32, 1).astype(jnp.float32),
        "w2": w2, "b2": bias(p["b2"]),
        "fc1_w": fc1, "fc1_b": bias(p["fc1_b"]),
        "fc2_w": p["fc2_w"].T.astype(compute_dtype), "fc2_b": bias(p["fc2_b"]),
        "out_w": p["out_w"].T.astype(compute_dtype), "out_b": bias(p["out_b"]),
    }


def model_forward(x_nchw, prep):
    """x_nchw: (B, 1, 28, 28) f32 -> logits (B, 10) f32."""
    b = x_nchw.shape[0]
    tb = _MAX_TB if b >= _MAX_TB else b
    bp = ((b + tb - 1) // tb) * tb
    x = x_nchw.reshape(b, 28, 28).astype(jnp.bfloat16)          # Cin == 1
    if bp != b:
        x = jnp.pad(x, ((0, bp - b), (0, 0), (0, 0)))
    patches = _conv1_pool_patches(x, tb)                        # (G, 9, 4*tb*256)
    logits = fused_forward(patches, prep, tb, bp)               # (bp, 10)
    return logits[:b]


# ----------------------------- pure-JAX reference --------------------------- #

def _maxpool_nchw(y):
    b, c, h, w = y.shape
    h2, w2 = h // 2, w // 2
    y = y[:, :, :2 * h2, :2 * w2].reshape(b, c, h2, 2, w2, 2)
    return y.max(axis=(3, 5))


def _reference_forward(x_nchw, p):
    y = jax.lax.conv_general_dilated(x_nchw, p["w1"], (1, 1), "VALID",
                                     dimension_numbers=("NCHW", "OIHW", "NCHW"))
    y = jnp.maximum(y + p["b1"][None, :, None, None], 0.0)
    y = _maxpool_nchw(y)
    y = jax.lax.conv_general_dilated(y, p["w2"], (1, 1), "VALID",
                                     dimension_numbers=("NCHW", "OIHW", "NCHW"))
    y = jnp.maximum(y + p["b2"][None, :, None, None], 0.0)
    y = _maxpool_nchw(y)
    y = y.reshape(y.shape[0], -1)
    y = jnp.maximum(y @ p["fc1_w"].T + p["fc1_b"], 0.0)
    y = jnp.maximum(y @ p["fc2_w"].T + p["fc2_b"], 0.0)
    return y @ p["out_w"].T + p["out_b"]


if __name__ == "__main__":
    key = jax.random.PRNGKey(0)
    k_in, k_par = jax.random.split(key)
    # The module's fc1 size (1600 = 64*5*5) implies 28x28 single-channel inputs.
    x = jax.random.normal(k_in, (2, 1, 28, 28), jnp.float32)
    params = init_params(k_par)
    prep = prepare_params(params)          # one-time weight layout / dtype prep

    out = jax.block_until_ready(jax.jit(model_forward)(x, prep))
    assert out.shape == (2, 10), out.shape
    assert bool(jnp.all(jnp.isfinite(out)))

    ref = _reference_forward(x, params)    # f32 reference; kernel matmuls are bf16
    assert jnp.allclose(out, ref, atol=5e-2, rtol=5e-2), \
        float(jnp.max(jnp.abs(out - ref)))
    print("KERNEL_OK")
</pallas_src>

<mosaic_0001>
module attributes {stable_mosaic.version = 11 : i64} {
  func.func @_fused_kernel(%arg0: i32, %arg1: memref<1x9x2048xbf16, #tpu.memory_space<vmem>>, %arg2: memref<32x9xbf16, #tpu.memory_space<vmem>>, %arg3: memref<32x1xf32, #tpu.memory_space<vmem>>, %arg4: memref<9x32x64xbf16, #tpu.memory_space<vmem>>, %arg5: memref<1x64xf32, #tpu.memory_space<vmem>>, %arg6: memref<1600x128xbf16, #tpu.memory_space<vmem>>, %arg7: memref<1x128xf32, #tpu.memory_space<vmem>>, %arg8: memref<128x64xbf16, #tpu.memory_space<vmem>>, %arg9: memref<1x64xf32, #tpu.memory_space<vmem>>, %arg10: memref<64x10xbf16, #tpu.memory_space<vmem>>, %arg11: memref<1x10xf32, #tpu.memory_space<vmem>>, %arg12: memref<2x10xf32, #tpu.memory_space<vmem>>, %arg13: memref<544x32xbf16, #tpu.memory_space<vmem>>, %arg14: memref<2x256x64xf32, #tpu.memory_space<vmem>>) attributes {dimension_semantics = [#tpu.dimension_semantics<parallel>], iteration_bounds = array<i64: 1>, scalar_prefetch = 0 : i64, scratch_operands = 2 : i64, tpu.core_type = #tpu.core_type<tc>, window_params = [{transform_indices = @transform_0, window_bounds = array<i64: 1, 9, 2048>}, {pipeline_mode = #tpu.pipeline_mode<synchronous>, transform_indices = @transform_1, window_bounds = array<i64: 32, 9>}, {pipeline_mode = #tpu.pipeline_mode<synchronous>, transform_indices = @transform_2, window_bounds = array<i64: 32, 1>}, {pipeline_mode = #tpu.pipeline_mode<synchronous>, transform_indices = @transform_3, window_bounds = array<i64: 9, 32, 64>}, {pipeline_mode = #tpu.pipeline_mode<synchronous>, transform_indices = @transform_4, window_bounds = array<i64: 1, 64>}, {pipeline_mode = #tpu.pipeline_mode<synchronous>, transform_indices = @transform_5, window_bounds = array<i64: 1600, 128>}, {pipeline_mode = #tpu.pipeline_mode<synchronous>, transform_indices = @transform_6, window_bounds = array<i64: 1, 128>}, {pipeline_mode = #tpu.pipeline_mode<synchronous>, transform_indices = @transform_7, window_bounds = array<i64: 128, 64>}, {pipeline_mode = #tpu.pipeline_mode<synchronous>, transform_indices = @transform_8, window_bounds = array<i64: 1, 64>}, {pipeline_mode = #tpu.pipeline_mode<synchronous>, transform_indices = @transform_9, window_bounds = array<i64: 64, 10>}, {pipeline_mode = #tpu.pipeline_mode<synchronous>, transform_indices = @transform_10, window_bounds = array<i64: 1, 10>}, {transform_indices = @transform_11, window_bounds = array<i64: 2, 10>}]} {
    %c0 = arith.constant 0 : index
    %c0_0 = arith.constant 0 : index
    %0 = vector.load %arg2[%c0, %c0_0] : memref<32x9xbf16, #tpu.memory_space<vmem>>, vector<32x9xbf16>
    %c0_1 = arith.constant 0 : index
    %c0_2 = arith.constant 0 : index
    %c0_3 = arith.constant 0 : index
    %1 = vector.load %arg1[%c0_1, %c0_2, %c0_3] : memref<1x9x2048xbf16, #tpu.memory_space<vmem>>, vector<1x9x2048xbf16>
    %2 = vector.shape_cast %1 : vector<1x9x2048xbf16> to vector<9x2048xbf16>
    %cst = arith.constant dense<0.000000e+00> : vector<32x2048xf32>
    %3 = tpu.matmul %0, %2, %cst {dimension_numbers = #tpu.dot_dimension_numbers<[1], [0], [0], [1], [0, 0, 1, 1], [], []>} : vector<32x9xbf16>, vector<9x2048xbf16>, vector<32x2048xf32> -> vector<32x2048xf32>
    %4 = vector.extract_strided_slice %3 {offsets = [0, 0], sizes = [32, 512], strides = [1, 1]} : vector<32x2048xf32> to vector<32x512xf32>
    %5 = vector.extract_strided_slice %3 {offsets = [0, 512], sizes = [32, 512], strides = [1, 1]} : vector<32x2048xf32> to vector<32x512xf32>
    %6 = arith.maximumf %4, %5 : vector<32x512xf32>
    %7 = vector.extract_strided_slice %3 {offsets = [0, 1024], sizes = [32, 512], strides = [1, 1]} : vector<32x2048xf32> to vector<32x512xf32>
    %8 = vector.extract_strided_slice %3 {offsets = [0, 1536], sizes = [32, 512], strides = [1, 1]} : vector<32x2048xf32> to vector<32x512xf32>
    %9 = arith.maximumf %7, %8 : vector<32x512xf32>
    %10 = arith.maximumf %6, %9 : vector<32x512xf32>
    %c0_4 = arith.constant 0 : index
    %c0_5 = arith.constant 0 : index
    %11 = vector.load %arg3[%c0_4, %c0_5] : memref<32x1xf32, #tpu.memory_space<vmem>>, vector<32x1xf32>
    %12 = vector.broadcast %11 : vector<32x1xf32> to vector<32x512xf32>
    %13 = arith.addf %10, %12 : vector<32x512xf32>
    %cst_6 = arith.constant 0.000000e+00 : f32
    %14 = vector.broadcast %cst_6 : f32 to vector<32x512xf32>
    %15 = arith.maximumf %13, %14 : vector<32x512xf32>
    %16 = tpu.transpose %15, [1, 0] : vector<32x512xf32> -> vector<512x32xf32>
    %17 = arith.truncf %16 : vector<512x32xf32> to vector<512x32xbf16>
    %c0_7 = arith.constant 0 : index
    %c0_8 = arith.constant 0 : index
    %18 = vector.load %arg13[%c0_7, %c0_8] : memref<544x32xbf16, #tpu.memory_space<vmem>>, vector<512x32xbf16>
    tpu.vector_store %arg13[%c0_7, %c0_8], %17 {strides = array<i32>} : memref<544x32xbf16, #tpu.memory_space<vmem>>, vector<512x32xbf16>,
    %cst_9 = arith.constant 0.000000e+00 : bf16
    %19 = vector.broadcast %cst_9 : bf16 to vector<32x32xbf16>
    %c512 = arith.constant 512 : index
    %c0_10 = arith.constant 0 : index
    %20 = vector.load %arg13[%c512, %c0_10] : memref<544x32xbf16, #tpu.memory_space<vmem>>, vector<32x32xbf16>
    tpu.vector_store %arg13[%c512, %c0_10], %19 {strides = array<i32>} : memref<544x32xbf16, #tpu.memory_space<vmem>>, vector<32x32xbf16>,
    %cst_11 = arith.constant 0.000000e+00 : f32
    %21 = vector.broadcast %cst_11 : f32 to vector<512x64xf32>
    %c0_12 = arith.constant 0 : index
    %c0_13 = arith.constant 0 : index
    %22 = vector.load %arg13[%c0_12, %c0_13] : memref<544x32xbf16, #tpu.memory_space<vmem>>, vector<512x32xbf16>
    %c0_14 = arith.constant 0 : index
    %c0_15 = arith.constant 0 : index
    %c0_16 = arith.constant 0 : index
    %23 = vector.load %arg4[%c0_14, %c0_15, %c0_16] : memref<9x32x64xbf16, #tpu.memory_space<vmem>>, vector<1x32x64xbf16>
    %24 = vector.shape_cast %23 : vector<1x32x64xbf16> to vector<32x64xbf16>
    %cst_17 = arith.constant dense<0.000000e+00> : vector<512x64xf32>
    %25 = tpu.matmul %22, %24, %cst_17 {dimension_numbers = #tpu.dot_dimension_numbers<[1], [0], [0], [1], [0, 0, 1, 1], [], []>} : vector<512x32xbf16>, vector<32x64xbf16>, vector<512x64xf32> -> vector<512x64xf32>
    %26 = arith.addf %21, %25 : vector<512x64xf32>
    %c1 = arith.constant 1 : index
    %c0_18 = arith.constant 0 : index
    %27 = vector.load %arg13[%c1, %c0_18] : memref<544x32xbf16, #tpu.memory_space<vmem>>, vector<512x32xbf16>
    %c1_19 = arith.constant 1 : index
    %c0_20 = arith.constant 0 : index
    %c0_21 = arith.constant 0 : index
    %28 = vector.load %arg4[%c1_19, %c0_20, %c0_21] : memref<9x32x64xbf16, #tpu.memory_space<vmem>>, vector<1x32x64xbf16>
    %29 = vector.shape_cast %28 : vector<1x32x64xbf16> to vector<32x64xbf16>
    %cst_22 = arith.constant dense<0.000000e+00> : vector<512x64xf32>
    %30 = tpu.matmul %27, %29, %cst_22 {dimension_numbers = #tpu.dot_dimension_numbers<[1], [0], [0], [1], [0, 0, 1, 1], [], []>} : vector<512x32xbf16>, vector<32x64xbf16>, vector<512x64xf32> -> vector<512x64xf32>
    %31 = arith.addf %26, %30 : vector<512x64xf32>
    %c2 = arith.constant 2 : index
    %c0_23 = arith.constant 0 : index
    %32 = vector.load %arg13[%c2, %c0_23] : memref<544x32xbf16, #tpu.memory_space<vmem>>, vector<512x32xbf16>
    %c2_24 = arith.constant 2 : index
    %c0_25 = arith.constant 0 : index
    %c0_26 = arith.constant 0 : index
    %33 = vector.load %arg4[%c2_24, %c0_25, %c0_26] : memref<9x32x64xbf16, #tpu.memory_space<vmem>>, vector<1x32x64xbf16>
    %34 = vector.shape_cast %33 : vector<1x32x64xbf16> to vector<32x64xbf16>
    %cst_27 = arith.constant dense<0.000000e+00> : vector<512x64xf32>
    %35 = tpu.matmul %32, %34, %cst_27 {dimension_numbers = #tpu.dot_dimension_numbers<[1], [0], [0], [1], [0, 0, 1, 1], [], []>} : vector<512x32xbf16>, vector<32x64xbf16>, vector<512x64xf32> -> vector<512x64xf32>
    %36 = arith.addf %31, %35 : vector<512x64xf32>
    %c13 = arith.constant 13 : index
    %c0_28 = arith.constant 0 : index
    %37 = vector.load %arg13[%c13, %c0_28] : memref<544x32xbf16, #tpu.memory_space<vmem>>, vector<512x32xbf16>
    %c3 = arith.constant 3 : index
    %c0_29 = arith.constant 0 : index
    %c0_30 = arith.constant 0 : index
    %38 = vector.load %arg4[%c3, %c0_29, %c0_30] : memref<9x32x64xbf16, #tpu.memory_space<vmem>>, vector<1x32x64xbf16>
    %39 = vector.shape_cast %38 : vector<1x32x64xbf16> to vector<32x64xbf16>
    %cst_31 = arith.constant dense<0.000000e+00> : vector<512x64xf32>
    %40 = tpu.matmul %37, %39, %cst_31 {dimension_numbers = #tpu.dot_dimension_numbers<[1], [0], [0], [1], [0, 0, 1, 1], [], []>} : vector<512x32xbf16>, vector<32x64xbf16>, vector<512x64xf32> -> vector<512x64xf32>
    %41 = arith.addf %36, %40 : vector<512x64xf32>
    %c14 = arith.constant 14 : index
    %c0_32 = arith.constant 0 : index
    %42 = vector.load %arg13[%c14, %c0_32] : memref<544x32xbf16, #tpu.memory_space<vmem>>, vector<512x32xbf16>
    %c4 = arith.constant 4 : index
    %c0_33 = arith.constant 0 : index
    %c0_34 = arith.constant 0 : index
    %43 = vector.load %arg4[%c4, %c0_33, %c0_34] : memref<9x32x64xbf16, #tpu.memory_space<vmem>>, vector<1x32x64xbf16>
    %44 = vector.shape_cast %43 : vector<1x32x64xbf16> to vector<32x64xbf16>
    %cst_35 = arith.constant dense<0.000000e+00> : vector<512x64xf32>
    %45 = tpu.matmul %42, %44, %cst_35 {dimension_numbers = #tpu.dot_dimension_numbers<[1], [0], [0], [1], [0, 0, 1, 1], [], []>} : vector<512x32xbf16>, vector<32x64xbf16>, vector<512x64xf32> -> vector<512x64xf32>
    %46 = arith.addf %41, %45 : vector<512x64xf32>
    %c15 = arith.constant 15 : index
    %c0_36 = arith.constant 0 : index
    %47 = vector.load %arg13[%c15, %c0_36] : memref<544x32xbf16, #tpu.memory_space<vmem>>, vector<512x32xbf16>
    %c5 = arith.constant 5 : index
    %c0_37 = arith.constant 0 : index
    %c0_38 = arith.constant 0 : index
    %48 = vector.load %arg4[%c5, %c0_37, %c0_38] : memref<9x32x64xbf16, #tpu.memory_space<vmem>>, vector<1x32x64xbf16>
    %49 = vector.shape_cast %48 : vector<1x32x64xbf16> to vector<32x64xbf16>
    %cst_39 = arith.constant dense<0.000000e+00> : vector<512x64xf32>
    %50 = tpu.matmul %47, %49, %cst_39 {dimension_numbers = #tpu.dot_dimension_numbers<[1], [0], [0], [1], [0, 0, 1, 1], [], []>} : vector<512x32xbf16>, vector<32x64xbf16>, vector<512x64xf32> -> vector<512x64xf32>
    %51 = arith.addf %46, %50 : vector<512x64xf32>
    %c26 = arith.constant 26 : index
    %c0_40 = arith.constant 0 : index
    %52 = vector.load %arg13[%c26, %c0_40] : memref<544x32xbf16, #tpu.memory_space<vmem>>, vector<512x32xbf16>
    %c6 = arith.constant 6 : index
    %c0_41 = arith.constant 0 : index
    %c0_42 = arith.constant 0 : index
    %53 = vector.load %arg4[%c6, %c0_41, %c0_42] : memref<9x32x64xbf16, #tpu.memory_space<vmem>>, vector<1x32x64xbf16>
    %54 = vector.shape_cast %53 : vector<1x32x64xbf16> to vector<32x64xbf16>
    %cst_43 = arith.constant dense<0.000000e+00> : vector<512x64xf32>
    %55 = tpu.matmul %52, %54, %cst_43 {dimension_numbers = #tpu.dot_dimension_numbers<[1], [0], [0], [1], [0, 0, 1, 1], [], []>} : vector<512x32xbf16>, vector<32x64xbf16>, vector<512x64xf32> -> vector<512x64xf32>
    %56 = arith.addf %51, %55 : vector<512x64xf32>
    %c27 = arith.constant 27 : index
    %c0_44 = arith.constant 0 : index
    %57 = vector.load %arg13[%c27, %c0_44] : memref<544x32xbf16, #tpu.memory_space<vmem>>, vector<512x32xbf16>
    %c7 = arith.constant 7 : index
    %c0_45 = arith.constant 0 : index
    %c0_46 = arith.constant 0 : index
    %58 = vector.load %arg4[%c7, %c0_45, %c0_46] : memref<9x32x64xbf16, #tpu.memory_space<vmem>>, vector<1x32x64xbf16>
    %59 = vector.shape_cast %58 : vector<1x32x64xbf16> to vector<32x64xbf16>
    %cst_47 = arith.constant dense<0.000000e+00> : vector<512x64xf32>
    %60 = tpu.matmul %57, %59, %cst_47 {dimension_numbers = #tpu.dot_dimension_numbers<[1], [0], [0], [1], [0, 0, 1, 1], [], []>} : vector<512x32xbf16>, vector<32x64xbf16>, vector<512x64xf32> -> vector<512x64xf32>
    %61 = arith.addf %56, %60 : vector<512x64xf32>
    %c28 = arith.constant 28 : index
    %c0_48 = arith.constant 0 : index
    %62 = vector.load %arg13[%c28, %c0_48] : memref<544x32xbf16, #tpu.memory_space<vmem>>, vector<512x32xbf16>
    %c8 = arith.constant 8 : index
    %c0_49 = arith.constant 0 : index
    %c0_50 = arith.constant 0 : index
    %63 = vector.load %arg4[%c8, %c0_49, %c0_50] : memref<9x32x64xbf16, #tpu.memory_space<vmem>>, vector<1x32x64xbf16>
    %64 = vector.shape_cast %63 : vector<1x32x64xbf16> to vector<32x64xbf16>
    %cst_51 = arith.constant dense<0.000000e+00> : vector<512x64xf32>
    %65 = tpu.matmul %62, %64, %cst_51 {dimension_numbers = #tpu.dot_dimension_numbers<[1], [0], [0], [1], [0, 0, 1, 1], [], []>} : vector<512x32xbf16>, vector<32x64xbf16>, vector<512x64xf32> -> vector<512x64xf32>
    %66 = arith.addf %61, %65 : vector<512x64xf32>
    %c0_52 = arith.constant 0 : index
    %c0_53 = arith.constant 0 : index
    %67 = vector.load %arg5[%c0_52, %c0_53] : memref<1x64xf32, #tpu.memory_space<vmem>>, vector<1x64xf32>
    %68 = vector.broadcast %67 : vector<1x64xf32> to vector<512x64xf32>
    %69 = arith.addf %66, %68 : vector<512x64xf32>
    %cst_54 = arith.constant 0.000000e+00 : f32
    %70 = vector.broadcast %cst_54 : f32 to vector<512x64xf32>
    %71 = arith.maximumf %69, %70 : vector<512x64xf32>
    %72 = vector.shape_cast %71 : vector<512x64xf32> to vector<2x256x64xf32>
    %c0_55 = arith.constant 0 : index
    %c0_56 = arith.constant 0 : index
    %c0_57 = arith.constant 0 : index
    %73 = vector.load %arg14[%c0_55, %c0_56, %c0_57] : memref<2x256x64xf32, #tpu.memory_space<vmem>>, vector<2x256x64xf32>
    tpu.vector_store %arg14[%c0_55, %c0_56, %c0_57], %72 {strides = array<i32>} : memref<2x256x64xf32, #tpu.memory_space<vmem>>, vector<2x256x64xf32>,
    %c0_58 = arith.constant 0 : index
    %c0_59 = arith.constant 0 : index
    %c0_60 = arith.constant 0 : index
    %74 = vector.load %arg14[%c0_58, %c0_59, %c0_60] : memref<2x256x64xf32, #tpu.memory_space<vmem>>, vector<2x1x64xf32>
    %75 = vector.shape_cast %74 : vector<2x1x64xf32> to vector<2x64xf32>
    %c0_61 = arith.constant 0 : index
    %c1_62 = arith.constant 1 : index
    %c0_63 = arith.constant 0 : index
    %76 = vector.load %arg14[%c0_61, %c1_62, %c0_63] : memref<2x256x64xf32, #tpu.memory_space<vmem>>, vector<2x1x64xf32>
    %77 = vector.shape_cast %76 : vector<2x1x64xf32> to vector<2x64xf32>
    %78 = arith.maximumf %75, %77 : vector<2x64xf32>
    %c0_64 = arith.constant 0 : index
    %c13_65 = arith.constant 13 : index
    %c0_66 = arith.constant 0 : index
    %79 = vector.load %arg14[%c0_64, %c13_65, %c0_66] : memref<2x256x64xf32, #tpu.memory_space<vmem>>, vector<2x1x64xf32>
    %80 = vector.shape_cast %79 : vector<2x1x64xf32> to vector<2x64xf32>
    %c0_67 = arith.constant 0 : index
    %c14_68 = arith.constant 14 : index
    %c0_69 = arith.constant 0 : index
    %81 = vector.load %arg14[%c0_67, %c14_68, %c0_69] : memref<2x256x64xf32, #tpu.memory_space<vmem>>, vector<2x1x64xf32>
    %82 = vector.shape_cast %81 : vector<2x1x64xf32> to vector<2x64xf32>
    %83 = arith.maximumf %80, %82 : vector<2x64xf32>
    %84 = arith.maximumf %78, %83 : vector<2x64xf32>
    %c0_70 = arith.constant 0 : index
    %c2_71 = arith.constant 2 : index
    %c0_72 = arith.constant 0 : index
    %85 = vector.load %arg14[%c0_70, %c2_71, %c0_72] : memref<2x256x64xf32, #tpu.memory_space<vmem>>, vector<2x1x64xf32>
    %86 = vector.shape_cast %85 : vector<2x1x64xf32> to vector<2x64xf32>
    %c0_73 = arith.constant 0 : index
    %c3_74 = arith.constant 3 : index
    %c0_75 = arith.constant 0 : index
    %87 = vector.load %arg14[%c0_73, %c3_74, %c0_75] : memref<2x256x64xf32, #tpu.memory_space<vmem>>, vector<2x1x64xf32>
    %88 = vector.shape_cast %87 : vector<2x1x64xf32> to vector<2x64xf32>
    %89 = arith.maximumf %86, %88 : vector<2x64xf32>
    %c0_76 = arith.constant 0 : index
    %c15_77 = arith.constant 15 : index
    %c0_78 = arith.constant 0 : index
    %90 = vector.load %arg14[%c0_76, %c15_77, %c0_78] : memref<2x256x64xf32, #tpu.memory_space<vmem>>, vector<2x1x64xf32>
    %91 = vector.shape_cast %90 : vector<2x1x64xf32> to vector<2x64xf32>
    %c0_79 = arith.constant 0 : index
    %c16 = arith.constant 16 : index
    %c0_80 = arith.constant 0 : index
    %92 = vector.load %arg14[%c0_79, %c16, %c0_80] : memref<2x256x64xf32, #tpu.memory_space<vmem>>, vector<2x1x64xf32>
    %93 = vector.shape_cast %92 : vector<2x1x64xf32> to vector<2x64xf32>
    %94 = arith.maximumf %91, %93 : vector<2x64xf32>
    %95 = arith.maximumf %89, %94 : vector<2x64xf32>
    %c0_81 = arith.constant 0 : index
    %c4_82 = arith.constant 4 : index
    %c0_83 = arith.constant 0 : index
    %96 = vector.load %arg14[%c0_81, %c4_82, %c0_83] : memref<2x256x64xf32, #tpu.memory_space<vmem>>, vector<2x1x64xf32>
    %97 = vector.shape_cast %96 : vector<2x1x64xf32> to vector<2x64xf32>
    %c0_84 = arith.constant 0 : index
    %c5_85 = arith.constant 5 : index
    %c0_86 = arith.constant 0 : index
    %98 = vector.load %arg14[%c0_84, %c5_85, %c0_86] : memref<2x256x64xf32, #tpu.memory_space<vmem>>, vector<2x1x64xf32>
    %99 = vector.shape_cast %98 : vector<2x1x64xf32> to vector<2x64xf32>
    %100 = arith.maximumf %97, %99 : vector<2x64xf32>
    %c0_87 = arith.constant 0 : index
    %c17 = arith.constant 17 : index
    %c0_88 = arith.constant 0 : index
    %101 = vector.load %arg14[%c0_87, %c17, %c0_88] : memref<2x256x64xf32, #tpu.memory_space<vmem>>, vector<2x1x64xf32>
    %102 = vector.shape_cast %101 : vector<2x1x64xf32> to vector<2x64xf32>
    %c0_89 = arith.constant 0 : index
    %c18 = arith.constant 18 : index
    %c0_90 = arith.constant 0 : index
    %103 = vector.load %arg14[%c0_89, %c18, %c0_90] : memref<2x256x64xf32, #tpu.memory_space<vmem>>, vector<2x1x64xf32>
    %104 = vector.shape_cast %103 : vector<2x1x64xf32> to vector<2x64xf32>
    %105 = arith.maximumf %102, %104 : vector<2x64xf32>
    %106 = arith.maximumf %100, %105 : vector<2x64xf32>
    %c0_91 = arith.constant 0 : index
    %c6_92 = arith.constant 6 : index
    %c0_93 = arith.constant 0 : index
    %107 = vector.load %arg14[%c0_91, %c6_92, %c0_93] : memref<2x256x64xf32, #tpu.memory_space<vmem>>, vector<2x1x64xf32>
    %108 = vector.shape_cast %107 : vector<2x1x64xf32> to vector<2x64xf32>
    %c0_94 = arith.constant 0 : index
    %c7_95 = arith.constant 7 : index
    %c0_96 = arith.constant 0 : index
    %109 = vector.load %arg14[%c0_94, %c7_95, %c0_96] : memref<2x256x64xf32, #tpu.memory_space<vmem>>, vector<2x1x64xf32>
    %110 = vector.shape_cast %109 : vector<2x1x64xf32> to vector<2x64xf32>
    %111 = arith.maximumf %108, %110 : vector<2x64xf32>
    %c0_97 = arith.constant 0 : index
    %c19 = arith.constant 19 : index
    %c0_98 = arith.constant 0 : index
    %112 = vector.load %arg14[%c0_97, %c19, %c0_98] : memref<2x256x64xf32, #tpu.memory_space<vmem>>, vector<2x1x64xf32>
    %113 = vector.shape_cast %112 : vector<2x1x64xf32> to vector<2x64xf32>
    %c0_99 = arith.constant 0 : index
    %c20 = arith.constant 20 : index
    %c0_100 = arith.constant 0 : index
    %114 = vector.load %arg14[%c0_99, %c20, %c0_100] : memref<2x256x64xf32, #tpu.memory_space<vmem>>, vector<2x1x64xf32>
    %115 = vector.shape_cast %114 : vector<2x1x64xf32> to vector<2x64xf32>
    %116 = arith.maximumf %113, %115 : vector<2x64xf32>
    %117 = arith.maximumf %111, %116 : vector<2x64xf32>
    %c0_101 = arith.constant 0 : index
    %c8_102 = arith.constant 8 : index
    %c0_103 = arith.constant 0 : index
    %118 = vector.load %arg14[%c0_101, %c8_102, %c0_103] : memref<2x256x64xf32, #tpu.memory_space<vmem>>, vector<2x1x64xf32>
    %119 = vector.shape_cast %118 : vector<2x1x64xf32> to vector<2x64xf32>
    %c0_104 = arith.constant 0 : index
    %c9 = arith.constant 9 : index
    %c0_105 = arith.constant 0 : index
    %120 = vector.load %arg14[%c0_104, %c9, %c0_105] : memref<2x256x64xf32, #tpu.memory_space<vmem>>, vector<2x1x64xf32>
    %121 = vector.shape_cast %120 : vector<2x1x64xf32> to vector<2x64xf32>
    %122 = arith.maximumf %119, %121 : vector<2x64xf32>
    %c0_106 = arith.constant 0 : index
    %c21 = arith.constant 21 : index
    %c0_107 = arith.constant 0 : index
    %123 = vector.load %arg14[%c0_106, %c21, %c0_107] : memref<2x256x64xf32, #tpu.memory_space<vmem>>, vector<2x1x64xf32>
    %124 = vector.shape_cast %123 : vector<2x1x64xf32> to vector<2x64xf32>
    %c0_108 = arith.constant 0 : index
    %c22 = arith.constant 22 : index
    %c0_109 = arith.constant 0 : index
    %125 = vector.load %arg14[%c0_108, %c22, %c0_109] : memref<2x256x64xf32, #tpu.memory_space<vmem>>, vector<2x1x64xf32>
    %126 = vector.shape_cast %125 : vector<2x1x64xf32> to vector<2x64xf32>
    %127 = arith.maximumf %124, %126 : vector<2x64xf32>
    %128 = arith.maximumf %122, %127 : vector<2x64xf32>
    %c0_110 = arith.constant 0 : index
    %c26_111 = arith.constant 26 : index
    %c0_112 = arith.constant 0 : index
    %129 = vector.load %arg14[%c0_110, %c26_111, %c0_112] : memref<2x256x64xf32, #tpu.memory_space<vmem>>, vector<2x1x64xf32>
    %130 = vector.shape_cast %129 : vector<2x1x64xf32> to vector<2x64xf32>
    %c0_113 = arith.constant 0 : index
    %c27_114 = arith.constant 27 : index
    %c0_115 = arith.constant 0 : index
    %131 = vector.load %arg14[%c0_113, %c27_114, %c0_115] : memref<2x256x64xf32, #tpu.memory_space<vmem>>, vector<2x1x64xf32>
    %132 = vector.shape_cast %131 : vector<2x1x64xf32> to vector<2x64xf32>
    %133 = arith.maximumf %130, %132 : vector<2x64xf32>
    %c0_116 = arith.constant 0 : index
    %c39 = arith.constant 39 : index
    %c0_117 = arith.constant 0 : index
    %134 = vector.load %arg14[%c0_116, %c39, %c0_117] : memref<2x256x64xf32, #tpu.memory_space<vmem>>, vector<2x1x64xf32>
    %135 = vector.shape_cast %134 : vector<2x1x64xf32> to vector<2x64xf32>
    %c0_118 = arith.constant 0 : index
    %c40 = arith.constant 40 : index
    %c0_119 = arith.constant 0 : index
    %136 = vector.load %arg14[%c0_118, %c40, %c0_119] : memref<2x256x64xf32, #tpu.memory_space<vmem>>, vector<2x1x64xf32>
    %137 = vector.shape_cast %136 : vector<2x1x64xf32> to vector<2x64xf32>
    %138 = arith.maximumf %135, %137 : vector<2x64xf32>
    %139 = arith.maximumf %133, %138 : vector<2x64xf32>
    %c0_120 = arith.constant 0 : index
    %c28_121 = arith.constant 28 : index
    %c0_122 = arith.constant 0 : index
    %140 = vector.load %arg14[%c0_120, %c28_121, %c0_122] : memref<2x256x64xf32, #tpu.memory_space<vmem>>, vector<2x1x64xf32>
    %141 = vector.shape_cast %140 : vector<2x1x64xf32> to vector<2x64xf32>
    %c0_123 = arith.constant 0 : index
    %c29 = arith.constant 29 : index
    %c0_124 = arith.constant 0 : index
    %142 = vector.load %arg14[%c0_123, %c29, %c0_124] : memref<2x256x64xf32, #tpu.memory_space<vmem>>, vector<2x1x64xf32>
    %143 = vector.shape_cast %142 : vector<2x1x64xf32> to vector<2x64xf32>
    %144 = arith.maximumf %141, %143 : vector<2x64xf32>
    %c0_125 = arith.constant 0 : index
    %c41 = arith.constant 41 : index
    %c0_126 = arith.constant 0 : index
    %145 = vector.load %arg14[%c0_125, %c41, %c0_126] : memref<2x256x64xf32, #tpu.memory_space<vmem>>, vector<2x1x64xf32>
    %146 = vector.shape_cast %145 : vector<2x1x64xf32> to vector<2x64xf32>
    %c0_127 = arith.constant 0 : index
    %c42 = arith.constant 42 : index
    %c0_128 = arith.constant 0 : index
    %147 = vector.load %arg14[%c0_127, %c42, %c0_128] : memref<2x256x64xf32, #tpu.memory_space<vmem>>, vector<2x1x64xf32>
    %148 = vector.shape_cast %147 : vector<2x1x64xf32> to vector<2x64xf32>
    %149 = arith.maximumf %146, %148 : vector<2x64xf32>
    %150 = arith.maximumf %144, %149 : vector<2x64xf32>
    %c0_129 = arith.constant 0 : index
    %c30 = arith.constant 30 : index
    %c0_130 = arith.constant 0 : index
    %151 = vector.load %arg14[%c0_129, %c30, %c0_130] : memref<2x256x64xf32, #tpu.memory_space<vmem>>, vector<2x1x64xf32>
    %152 = vector.shape_cast %151 : vector<2x1x64xf32> to vector<2x64xf32>
    %c0_131 = arith.constant 0 : index
    %c31 = arith.constant 31 : index
    %c0_132 = arith.constant 0 : index
    %153 = vector.load %arg14[%c0_131, %c31, %c0_132] : memref<2x256x64xf32, #tpu.memory_space<vmem>>, vector<2x1x64xf32>
    %154 = vector.shape_cast %153 : vector<2x1x64xf32> to vector<2x64xf32>
    %155 = arith.maximumf %152, %154 : vector<2x64xf32>
    %c0_133 = arith.constant 0 : index
    %c43 = arith.constant 43 : index
    %c0_134 = arith.constant 0 : index
    %156 = vector.load %arg14[%c0_133, %c43, %c0_134] : memref<2x256x64xf32, #tpu.memory_space<vmem>>, vector<2x1x64xf32>
    %157 = vector.shape_cast %156 : vector<2x1x64xf32> to vector<2x64xf32>
    %c0_135 = arith.constant 0 : index
    %c44 = arith.constant 44 : index
    %c0_136 = arith.constant 0 : index
    %158 = vector.load %arg14[%c0_135, %c44, %c0_136] : memref<2x256x64xf32, #tpu.memory_space<vmem>>, vector<2x1x64xf32>
    %159 = vector.shape_cast %158 : vector<2x1x64xf32> to vector<2x64xf32>
    %160 = arith.maximumf %157, %159 : vector<2x64xf32>
    %161 = arith.maximumf %155, %160 : vector<2x64xf32>
    %c0_137 = arith.constant 0 : index
    %c32 = arith.constant 32 : index
    %c0_138 = arith.constant 0 : index
    %162 = vector.load %arg14[%c0_137, %c32, %c0_138] : memref<2x256x64xf32, #tpu.memory_space<vmem>>, vector<2x1x64xf32>
    %163 = vector.shape_cast %162 : vector<2x1x64xf32> to vector<2x64xf32>
    %c0_139 = arith.constant 0 : index
    %c33 = arith.constant 33 : index
    %c0_140 = arith.constant 0 : index
    %164 = vector.load %arg14[%c0_139, %c33, %c0_140] : memref<2x256x64xf32, #tpu.memory_space<vmem>>, vector<2x1x64xf32>
    %165 = vector.shape_cast %164 : vector<2x1x64xf32> to vector<2x64xf32>
    %166 = arith.maximumf %163, %165 : vector<2x64xf32>
    %c0_141 = arith.constant 0 : index
    %c45 = arith.constant 45 : index
    %c0_142 = arith.constant 0 : index
    %167 = vector.load %arg14[%c0_141, %c45, %c0_142] : memref<2x256x64xf32, #tpu.memory_space<vmem>>, vector<2x1x64xf32>
    %168 = vector.shape_cast %167 : vector<2x1x64xf32> to vector<2x64xf32>
    %c0_143 = arith.constant 0 : index
    %c46 = arith.constant 46 : index
    %c0_144 = arith.constant 0 : index
    %169 = vector.load %arg14[%c0_143, %c46, %c0_144] : memref<2x256x64xf32, #tpu.memory_space<vmem>>, vector<2x1x64xf32>
    %170 = vector.shape_cast %169 : vector<2x1x64xf32> to vector<2x64xf32>
    %171 = arith.maximumf %168, %170 : vector<2x64xf32>
    %172 = arith.maximumf %166, %171 : vector<2x64xf32>
    %c0_145 = arith.constant 0 : index
    %c34 = arith.constant 34 : index
    %c0_146 = arith.constant 0 : index
    %173 = vector.load %arg14[%c0_145, %c34, %c0_146] : memref<2x256x64xf32, #tpu.memory_space<vmem>>, vector<2x1x64xf32>
    %174 = vector.shape_cast %173 : vector<2x1x64xf32> to vector<2x64xf32>
    %c0_147 = arith.constant 0 : index
    %c35 = arith.constant 35 : index
    %c0_148 = arith.constant 0 : index
    %175 = vector.load %arg14[%c0_147, %c35, %c0_148] : memref<2x256x64xf32, #tpu.memory_space<vmem>>, vector<2x1x64xf32>
    %176 = vector.shape_cast %175 : vector<2x1x64xf32> to vector<2x64xf32>
    %177 = arith.maximumf %174, %176 : vector<2x64xf32>
    %c0_149 = arith.constant 0 : index
    %c47 = arith.constant 47 : index
    %c0_150 = arith.constant 0 : index
    %178 = vector.load %arg14[%c0_149, %c47, %c0_150] : memref<2x256x64xf32, #tpu.memory_space<vmem>>, vector<2x1x64xf32>
    %179 = vector.shape_cast %178 : vector<2x1x64xf32> to vector<2x64xf32>
    %c0_151 = arith.constant 0 : index
    %c48 = arith.constant 48 : index
    %c0_152 = arith.constant 0 : index
    %180 = vector.load %arg14[%c0_151, %c48, %c0_152] : memref<2x256x64xf32, #tpu.memory_space<vmem>>, vector<2x1x64xf32>
    %181 = vector.shape_cast %180 : vector<2x1x64xf32> to vector<2x64xf32>
    %182 = arith.maximumf %179, %181 : vector<2x64xf32>
    %183 = arith.maximumf %177, %182 : vector<2x64xf32>
    %c0_153 = arith.constant 0 : index
    %c52 = arith.constant 52 : index
    %c0_154 = arith.constant 0 : index
    %184 = vector.load %arg14[%c0_153, %c52, %c0_154] : memref<2x256x64xf32, #tpu.memory_space<vmem>>, vector<2x1x64xf32>
    %185 = vector.shape_cast %184 : vector<2x1x64xf32> to vector<2x64xf32>
    %c0_155 = arith.constant 0 : index
    %c53 = arith.constant 53 : index
    %c0_156 = arith.constant 0 : index
    %186 = vector.load %arg14[%c0_155, %c53, %c0_156] : memref<2x256x64xf32, #tpu.memory_space<vmem>>, vector<2x1x64xf32>
    %187 = vector.shape_cast %186 : vector<2x1x64xf32> to vector<2x64xf32>
    %188 = arith.maximumf %185, %187 : vector<2x64xf32>
    %c0_157 = arith.constant 0 : index
    %c65 = arith.constant 65 : index
    %c0_158 = arith.constant 0 : index
    %189 = vector.load %arg14[%c0_157, %c65, %c0_158] : memref<2x256x64xf32, #tpu.memory_space<vmem>>, vector<2x1x64xf32>
    %190 = vector.shape_cast %189 : vector<2x1x64xf32> to vector<2x64xf32>
    %c0_159 = arith.constant 0 : index
    %c66 = arith.constant 66 : index
    %c0_160 = arith.constant 0 : index
    %191 = vector.load %arg14[%c0_159, %c66, %c0_160] : memref<2x256x64xf32, #tpu.memory_space<vmem>>, vector<2x1x64xf32>
    %192 = vector.shape_cast %191 : vector<2x1x64xf32> to vector<2x64xf32>
    %193 = arith.maximumf %190, %192 : vector<2x64xf32>
    %194 = arith.maximumf %188, %193 : vector<2x64xf32>
    %c0_161 = arith.constant 0 : index
    %c54 = arith.constant 54 : index
    %c0_162 = arith.constant 0 : index
    %195 = vector.load %arg14[%c0_161, %c54, %c0_162] : memref<2x256x64xf32, #tpu.memory_space<vmem>>, vector<2x1x64xf32>
    %196 = vector.shape_cast %195 : vector<2x1x64xf32> to vector<2x64xf32>
    %c0_163 = arith.constant 0 : index
    %c55 = arith.constant 55 : index
    %c0_164 = arith.constant 0 : index
    %197 = vector.load %arg14[%c0_163, %c55, %c0_164] : memref<2x256x64xf32, #tpu.memory_space<vmem>>, vector<2x1x64xf32>
    %198 = vector.shape_cast %197 : vector<2x1x64xf32> to vector<2x64xf32>
    %199 = arith.maximumf %196, %198 : vector<2x64xf32>
    %c0_165 = arith.constant 0 : index
    %c67 = arith.constant 67 : index
    %c0_166 = arith.constant 0 : index
    %200 = vector.load %arg14[%c0_165, %c67, %c0_166] : memref<2x256x64xf32, #tpu.memory_space<vmem>>, vector<2x1x64xf32>
    %201 = vector.shape_cast %200 : vector<2x1x64xf32> to vector<2x64xf32>
    %c0_167 = arith.constant 0 : index
    %c68 = arith.constant 68 : index
    %c0_168 = arith.constant 0 : index
    %202 = vector.load %arg14[%c0_167, %c68, %c0_168] : memref<2x256x64xf32, #tpu.memory_space<vmem>>, vector<2x1x64xf32>
    %203 = vector.shape_cast %202 : vector<2x1x64xf32> to vector<2x64xf32>
    %204 = arith.maximumf %201, %203 : vector<2x64xf32>
    %205 = arith.maximumf %199, %204 : vector<2x64xf32>
    %c0_169 = arith.constant 0 : index
    %c56 = arith.constant 56 : index
    %c0_170 = arith.constant 0 : index
    %206 = vector.load %arg14[%c0_169, %c56, %c0_170] : memref<2x256x64xf32, #tpu.memory_space<vmem>>, vector<2x1x64xf32>
    %207 = vector.shape_cast %206 : vector<2x1x64xf32> to vector<2x64xf32>
    %c0_171 = arith.constant 0 : index
    %c57 = arith.constant 57 : index
    %c0_172 = arith.constant 0 : index
    %208 = vector.load %arg14[%c0_171, %c57, %c0_172] : memref<2x256x64xf32, #tpu.memory_space<vmem>>, vector<2x1x64xf32>
    %209 = vector.shape_cast %208 : vector<2x1x64xf32> to vector<2x64xf32>
    %210 = arith.maximumf %207, %209 : vector<2x64xf32>
    %c0_173 = arith.constant 0 : index
    %c69 = arith.constant 69 : index
    %c0_174 = arith.constant 0 : index
    %211 = vector.load %arg14[%c0_173, %c69, %c0_174] : memref<2x256x64xf32, #tpu.memory_space<vmem>>, vector<2x1x64xf32>
    %212 = vector.shape_cast %211 : vector<2x1x64xf32> to vector<2x64xf32>
    %c0_175 = arith.constant 0 : index
    %c70 = arith.constant 70 : index
    %c0_176 = arith.constant 0 : index
    %213 = vector.load %arg14[%c0_175, %c70, %c0_176] : memref<2x256x64xf32, #tpu.memory_space<vmem>>, vector<2x1x64xf32>
    %214 = vector.shape_cast %213 : vector<2x1x64xf32> to vector<2x64xf32>
    %215 = arith.maximumf %212, %214 : vector<2x64xf32>
    %216 = arith.maximumf %210, %215 : vector<2x64xf32>
    %c0_177 = arith.constant 0 : index
    %c58 = arith.constant 58 : index
    %c0_178 = arith.constant 0 : index
    %217 = vector.load %arg14[%c0_177, %c58, %c0_178] : memref<2x256x64xf32, #tpu.memory_space<vmem>>, vector<2x1x64xf32>
    %218 = vector.shape_cast %217 : vector<2x1x64xf32> to vector<2x64xf32>
    %c0_179 = arith.constant 0 : index
    %c59 = arith.constant 59 : index
    %c0_180 = arith.constant 0 : index
    %219 = vector.load %arg14[%c0_179, %c59, %c0_180] : memref<2x256x64xf32, #tpu.memory_space<vmem>>, vector<2x1x64xf32>
    %220 = vector.shape_cast %219 : vector<2x1x64xf32> to vector<2x64xf32>
    %221 = arith.maximumf %218, %220 : vector<2x64xf32>
    %c0_181 = arith.constant 0 : index
    %c71 = arith.constant 71 : index
    %c0_182 = arith.constant 0 : index
    %222 = vector.load %arg14[%c0_181, %c71, %c0_182] : memref<2x256x64xf32, #tpu.memory_space<vmem>>, vector<2x1x64xf32>
    %223 = vector.shape_cast %222 : vector<2x1x64xf32> to vector<2x64xf32>
    %c0_183 = arith.constant 0 : index
    %c72 = arith.constant 72 : index
    %c0_184 = arith.constant 0 : index
    %224 = vector.load %arg14[%c0_183, %c72, %c0_184] : memref<2x256x64xf32, #tpu.memory_space<vmem>>, vector<2x1x64xf32>
    %225 = vector.shape_cast %224 : vector<2x1x64xf32> to vector<2x64xf32>
    %226 = arith.maximumf %223, %225 : vector<2x64xf32>
    %227 = arith.maximumf %221, %226 : vector<2x64xf32>
    %c0_185 = arith.constant 0 : index
    %c60 = arith.constant 60 : index
    %c0_186 = arith.constant 0 : index
    %228 = vector.load %arg14[%c0_185, %c60, %c0_186] : memref<2x256x64xf32, #tpu.memory_space<vmem>>, vector<2x1x64xf32>
    %229 = vector.shape_cast %228 : vector<2x1x64xf32> to vector<2x64xf32>
    %c0_187 = arith.constant 0 : index
    %c61 = arith.constant 61 : index
    %c0_188 = arith.constant 0 : index
    %230 = vector.load %arg14[%c0_187, %c61, %c0_188] : memref<2x256x64xf32, #tpu.memory_space<vmem>>, vector<2x1x64xf32>
    %231 = vector.shape_cast %230 : vector<2x1x64xf32> to vector<2x64xf32>
    %232 = arith.maximumf %229, %231 : vector<2x64xf32>
    %c0_189 = arith.constant 0 : index
    %c73 = arith.constant 73 : index
    %c0_190 = arith.constant 0 : index
    %233 = vector.load %arg14[%c0_189, %c73, %c0_190] : memref<2x256x64xf32, #tpu.memory_space<vmem>>, vector<2x1x64xf32>
    %234 = vector.shape_cast %233 : vector<2x1x64xf32> to vector<2x64xf32>
    %c0_191 = arith.constant 0 : index
    %c74 = arith.constant 74 : index
    %c0_192 = arith.constant 0 : index
    %235 = vector.load %arg14[%c0_191, %c74, %c0_192] : memref<2x256x64xf32, #tpu.memory_space<vmem>>, vector<2x1x64xf32>
    %236 = vector.shape_cast %235 : vector<2x1x64xf32> to vector<2x64xf32>
    %237 = arith.maximumf %234, %236 : vector<2x64xf32>
    %238 = arith.maximumf %232, %237 : vector<2x64xf32>
    %c0_193 = arith.constant 0 : index
    %c78 = arith.constant 78 : index
    %c0_194 = arith.constant 0 : index
    %239 = vector.load %arg14[%c0_193, %c78, %c0_194] : memref<2x256x64xf32, #tpu.memory_space<vmem>>, vector<2x1x64xf32>
    %240 = vector.shape_cast %239 : vector<2x1x64xf32> to vector<2x64xf32>
    %c0_195 = arith.constant 0 : index
    %c79 = arith.constant 79 : index
    %c0_196 = arith.constant 0 : index
    %241 = vector.load %arg14[%c0_195, %c79, %c0_196] : memref<2x256x64xf32, #tpu.memory_space<vmem>>, vector<2x1x64xf32>
    %242 = vector.shape_cast %241 : vector<2x1x64xf32> to vector<2x64xf32>
    %243 = arith.maximumf %240, %242 : vector<2x64xf32>
    %c0_197 = arith.constant 0 : index
    %c91 = arith.constant 91 : index
    %c0_198 = arith.constant 0 : index
    %244 = vector.load %arg14[%c0_197, %c91, %c0_198] : memref<2x256x64xf32, #tpu.memory_space<vmem>>, vector<2x1x64xf32>
    %245 = vector.shape_cast %244 : vector<2x1x64xf32> to vector<2x64xf32>
    %c0_199 = arith.constant 0 : index
    %c92 = arith.constant 92 : index
    %c0_200 = arith.constant 0 : index
    %246 = vector.load %arg14[%c0_199, %c92, %c0_200] : memref<2x256x64xf32, #tpu.memory_space<vmem>>, vector<2x1x64xf32>
    %247 = vector.shape_cast %246 : vector<2x1x64xf32> to vector<2x64xf32>
    %248 = arith.maximumf %245, %247 : vector<2x64xf32>
    %249 = arith.maximumf %243, %248 : vector<2x64xf32>
    %c0_201 = arith.constant 0 : index
    %c80 = arith.constant 80 : index
    %c0_202 = arith.constant 0 : index
    %250 = vector.load %arg14[%c0_201, %c80, %c0_202] : memref<2x256x64xf32, #tpu.memory_space<vmem>>, vector<2x1x64xf32>
    %251 = vector.shape_cast %250 : vector<2x1x64xf32> to vector<2x64xf32>
    %c0_203 = arith.constant 0 : index
    %c81 = arith.constant 81 : index
    %c0_204 = arith.constant 0 : index
    %252 = vector.load %arg14[%c0_203, %c81, %c0_204] : memref<2x256x64xf32, #tpu.memory_space<vmem>>, vector<2x1x64xf32>
    %253 = vector.shape_cast %252 : vector<2x1x64xf32> to vector<2x64xf32>
    %254 = arith.maximumf %251, %253 : vector<2x64xf32>
    %c0_205 = arith.constant 0 : index
    %c93 = arith.constant 93 : index
    %c0_206 = arith.constant 0 : index
    %255 = vector.load %arg14[%c0_205, %c93, %c0_206] : memref<2x256x64xf32, #tpu.memory_space<vmem>>, vector<2x1x64xf32>
    %256 = vector.shape_cast %255 : vector<2x1x64xf32> to vector<2x64xf32>
    %c0_207 = arith.constant 0 : index
    %c94 = arith.constant 94 : index
    %c0_208 = arith.constant 0 : index
    %257 = vector.load %arg14[%c0_207, %c94, %c0_208] : memref<2x256x64xf32, #tpu.memory_space<vmem>>, vector<2x1x64xf32>
    %258 = vector.shape_cast %257 : vector<2x1x64xf32> to vector<2x64xf32>
    %259 = arith.maximumf %256, %258 : vector<2x64xf32>
    %260 = arith.maximumf %254, %259 : vector<2x64xf32>
    %c0_209 = arith.constant 0 : index
    %c82 = arith.constant 82 : index
    %c0_210 = arith.constant 0 : index
    %261 = vector.load %arg14[%c0_209, %c82, %c0_210] : memref<2x256x64xf32, #tpu.memory_space<vmem>>, vector<2x1x64xf32>
    %262 = vector.shape_cast %261 : vector<2x1x64xf32> to vector<2x64xf32>
    %c0_211 = arith.constant 0 : index
    %c83 = arith.constant 83 : index
    %c0_212 = arith.constant 0 : index
    %263 = vector.load %arg14[%c0_211, %c83, %c0_212] : memref<2x256x64xf32, #tpu.memory_space<vmem>>, vector<2x1x64xf32>
    %264 = vector.shape_cast %263 : vector<2x1x64xf32> to vector<2x64xf32>
    %265 = arith.maximumf %262, %264 : vector<2x64xf32>
    %c0_213 = arith.constant 0 : index
    %c95 = arith.constant 95 : index
    %c0_214 = arith.constant 0 : index
    %266 = vector.load %arg14[%c0_213, %c95, %c0_214] : memref<2x256x64xf32, #tpu.memory_space<vmem>>, vector<2x1x64xf32>
    %267 = vector.shape_cast %266 : vector<2x1x64xf32> to vector<2x64xf32>
    %c0_215 = arith.constant 0 : index
    %c96 = arith.constant 96 : index
    %c0_216 = arith.constant 0 : index
    %268 = vector.load %arg14[%c0_215, %c96, %c0_216] : memref<2x256x64xf32, #tpu.memory_space<vmem>>, vector<2x1x64xf32>
    %269 = vector.shape_cast %268 : vector<2x1x64xf32> to vector<2x64xf32>
    %270 = arith.maximumf %267, %269 : vector<2x64xf32>
    %271 = arith.maximumf %265, %270 : vector<2x64xf32>
    %c0_217 = arith.constant 0 : index
    %c84 = arith.constant 84 : index
    %c0_218 = arith.constant 0 : index
    %272 = vector.load %arg14[%c0_217, %c84, %c0_218] : memref<2x256x64xf32, #tpu.memory_space<vmem>>, vector<2x1x64xf32>
    %273 = vector.shape_cast %272 : vector<2x1x64xf32> to vector<2x64xf32>
    %c0_219 = arith.constant 0 : index
    %c85 = arith.constant 85 : index
    %c0_220 = arith.constant 0 : index
    %274 = vector.load %arg14[%c0_219, %c85, %c0_220] : memref<2x256x64xf32, #tpu.memory_space<vmem>>, vector<2x1x64xf32>
    %275 = vector.shape_cast %274 : vector<2x1x64xf32> to vector<2x64xf32>
    %276 = arith.maximumf %273, %275 : vector<2x64xf32>
    %c0_221 = arith.constant 0 : index
    %c97 = arith.constant 97 : index
    %c0_222 = arith.constant 0 : index
    %277 = vector.load %arg14[%c0_221, %c97, %c0_222] : memref<2x256x64xf32, #tpu.memory_space<vmem>>, vector<2x1x64xf32>
    %278 = vector.shape_cast %277 : vector<2x1x64xf32> to vector<2x64xf32>
    %c0_223 = arith.constant 0 : index
    %c98 = arith.constant 98 : index
    %c0_224 = arith.constant 0 : index
    %279 = vector.load %arg14[%c0_223, %c98, %c0_224] : memref<2x256x64xf32, #tpu.memory_space<vmem>>, vector<2x1x64xf32>
    %280 = vector.shape_cast %279 : vector<2x1x64xf32> to vector<2x64xf32>
    %281 = arith.maximumf %278, %280 : vector<2x64xf32>
    %282 = arith.maximumf %276, %281 : vector<2x64xf32>
    %c0_225 = arith.constant 0 : index
    %c86 = arith.constant 86 : index
    %c0_226 = arith.constant 0 : index
    %283 = vector.load %arg14[%c0_225, %c86, %c0_226] : memref<2x256x64xf32, #tpu.memory_space<vmem>>, vector<2x1x64xf32>
    %284 = vector.shape_cast %283 : vector<2x1x64xf32> to vector<2x64xf32>
    %c0_227 = arith.constant 0 : index
    %c87 = arith.constant 87 : index
    %c0_228 = arith.constant 0 : index
    %285 = vector.load %arg14[%c0_227, %c87, %c0_228] : memref<2x256x64xf32, #tpu.memory_space<vmem>>, vector<2x1x64xf32>
    %286 = vector.shape_cast %285 : vector<2x1x64xf32> to vector<2x64xf32>
    %287 = arith.maximumf %284, %286 : vector<2x64xf32>
    %c0_229 = arith.constant 0 : index
    %c99 = arith.constant 99 : index
    %c0_230 = arith.constant 0 : index
    %288 = vector.load %arg14[%c0_229, %c99, %c0_230] : memref<2x256x64xf32, #tpu.memory_space<vmem>>, vector<2x1x64xf32>
    %289 = vector.shape_cast %288 : vector<2x1x64xf32> to vector<2x64xf32>
    %c0_231 = arith.constant 0 : index
    %c100 = arith.constant 100 : index
    %c0_232 = arith.constant 0 : index
    %290 = vector.load %arg14[%c0_231, %c100, %c0_232] : memref<2x256x64xf32, #tpu.memory_space<vmem>>, vector<2x1x64xf32>
    %291 = vector.shape_cast %290 : vector<2x1x64xf32> to vector<2x64xf32>
    %292 = arith.maximumf %289, %291 : vector<2x64xf32>
    %293 = arith.maximumf %287, %292 : vector<2x64xf32>
    %c0_233 = arith.constant 0 : index
    %c104 = arith.constant 104 : index
    %c0_234 = arith.constant 0 : index
    %294 = vector.load %arg14[%c0_233, %c104, %c0_234] : memref<2x256x64xf32, #tpu.memory_space<vmem>>, vector<2x1x64xf32>
    %295 = vector.shape_cast %294 : vector<2x1x64xf32> to vector<2x64xf32>
    %c0_235 = arith.constant 0 : index
    %c105 = arith.constant 105 : index
    %c0_236 = arith.constant 0 : index
    %296 = vector.load %arg14[%c0_235, %c105, %c0_236] : memref<2x256x64xf32, #tpu.memory_space<vmem>>, vector<2x1x64xf32>
    %297 = vector.shape_cast %296 : vector<2x1x64xf32> to vector<2x64xf32>
    %298 = arith.maximumf %295, %297 : vector<2x64xf32>
    %c0_237 = arith.constant 0 : index
    %c117 = arith.constant 117 : index
    %c0_238 = arith.constant 0 : index
    %299 = vector.load %arg14[%c0_237, %c117, %c0_238] : memref<2x256x64xf32, #tpu.memory_space<vmem>>, vector<2x1x64xf32>
    %300 = vector.shape_cast %299 : vector<2x1x64xf32> to vector<2x64xf32>
    %c0_239 = arith.constant 0 : index
    %c118 = arith.constant 118 : index
    %c0_240 = arith.constant 0 : index
    %301 = vector.load %arg14[%c0_239, %c118, %c0_240] : memref<2x256x64xf32, #tpu.memory_space<vmem>>, vector<2x1x64xf32>
    %302 = vector.shape_cast %301 : vector<2x1x64xf32> to vector<2x64xf32>
    %303 = arith.maximumf %300, %302 : vector<2x64xf32>
    %304 = arith.maximumf %298, %303 : vector<2x64xf32>
    %c0_241 = arith.constant 0 : index
    %c106 = arith.constant 106 : index
    %c0_242 = arith.constant 0 : index
    %305 = vector.load %arg14[%c0_241, %c106, %c0_242] : memref<2x256x64xf32, #tpu.memory_space<vmem>>, vector<2x1x64xf32>
    %306 = vector.shape_cast %305 : vector<2x1x64xf32> to vector<2x64xf32>
    %c0_243 = arith.constant 0 : index
    %c107 = arith.constant 107 : index
    %c0_244 = arith.constant 0 : index
    %307 = vector.load %arg14[%c0_243, %c107, %c0_244] : memref<2x256x64xf32, #tpu.memory_space<vmem>>, vector<2x1x64xf32>
    %308 = vector.shape_cast %307 : vector<2x1x64xf32> to vector<2x64xf32>
    %309 = arith.maximumf %306, %308 : vector<2x64xf32>
    %c0_245 = arith.constant 0 : index
    %c119 = arith.constant 119 : index
    %c0_246 = arith.constant 0 : index
    %310 = vector.load %arg14[%c0_245, %c119, %c0_246] : memref<2x256x64xf32, #tpu.memory_space<vmem>>, vector<2x1x64xf32>
    %311 = vector.shape_cast %310 : vector<2x1x64xf32> to vector<2x64xf32>
    %c0_247 = arith.constant 0 : index
    %c120 = arith.constant 120 : index
    %c0_248 = arith.constant 0 : index
    %312 = vector.load %arg14[%c0_247, %c120, %c0_248] : memref<2x256x64xf32, #tpu.memory_space<vmem>>, vector<2x1x64xf32>
    %313 = vector.shape_cast %312 : vector<2x1x64xf32> to vector<2x64xf32>
    %314 = arith.maximumf %311, %313 : vector<2x64xf32>
    %315 = arith.maximumf %309, %314 : vector<2x64xf32>
    %c0_249 = arith.constant 0 : index
    %c108 = arith.constant 108 : index
    %c0_250 = arith.constant 0 : index
    %316 = vector.load %arg14[%c0_249, %c108, %c0_250] : memref<2x256x64xf32, #tpu.memory_space<vmem>>, vector<2x1x64xf32>
    %317 = vector.shape_cast %316 : vector<2x1x64xf32> to vector<2x64xf32>
    %c0_251 = arith.constant 0 : index
    %c109 = arith.constant 109 : index
    %c0_252 = arith.constant 0 : index
    %318 = vector.load %arg14[%c0_251, %c109, %c0_252] : memref<2x256x64xf32, #tpu.memory_space<vmem>>, vector<2x1x64xf32>
    %319 = vector.shape_cast %318 : vector<2x1x64xf32> to vector<2x64xf32>
    %320 = arith.maximumf %317, %319 : vector<2x64xf32>
    %c0_253 = arith.constant 0 : index
    %c121 = arith.constant 121 : index
    %c0_254 = arith.constant 0 : index
    %321 = vector.load %arg14[%c0_253, %c121, %c0_254] : memref<2x256x64xf32, #tpu.memory_space<vmem>>, vector<2x1x64xf32>
    %322 = vector.shape_cast %321 : vector<2x1x64xf32> to vector<2x64xf32>
    %c0_255 = arith.constant 0 : index
    %c122 = arith.constant 122 : index
    %c0_256 = arith.constant 0 : index
    %323 = vector.load %arg14[%c0_255, %c122, %c0_256] : memref<2x256x64xf32, #tpu.memory_space<vmem>>, vector<2x1x64xf32>
    %324 = vector.shape_cast %323 : vector<2x1x64xf32> to vector<2x64xf32>
    %325 = arith.maximumf %322, %324 : vector<2x64xf32>
    %326 = arith.maximumf %320, %325 : vector<2x64xf32>
    %c0_257 = arith.constant 0 : index
    %c110 = arith.constant 110 : index
    %c0_258 = arith.constant 0 : index
    %327 = vector.load %arg14[%c0_257, %c110, %c0_258] : memref<2x256x64xf32, #tpu.memory_space<vmem>>, vector<2x1x64xf32>
    %328 = vector.shape_cast %327 : vector<2x1x64xf32> to vector<2x64xf32>
    %c0_259 = arith.constant 0 : index
    %c111 = arith.constant 111 : index
    %c0_260 = arith.constant 0 : index
    %329 = vector.load %arg14[%c0_259, %c111, %c0_260] : memref<2x256x64xf32, #tpu.memory_space<vmem>>, vector<2x1x64xf32>
    %330 = vector.shape_cast %329 : vector<2x1x64xf32> to vector<2x64xf32>
    %331 = arith.maximumf %328, %330 : vector<2x64xf32>
    %c0_261 = arith.constant 0 : index
    %c123 = arith.constant 123 : index
    %c0_262 = arith.constant 0 : index
    %332 = vector.load %arg14[%c0_261, %c123, %c0_262] : memref<2x256x64xf32, #tpu.memory_space<vmem>>, vector<2x1x64xf32>
    %333 = vector.shape_cast %332 : vector<2x1x64xf32> to vector<2x64xf32>
    %c0_263 = arith.constant 0 : index
    %c124 = arith.constant 124 : index
    %c0_264 = arith.constant 0 : index
    %334 = vector.load %arg14[%c0_263, %c124, %c0_264] : memref<2x256x64xf32, #tpu.memory_space<vmem>>, vector<2x1x64xf32>
    %335 = vector.shape_cast %334 : vector<2x1x64xf32> to vector<2x64xf32>
    %336 = arith.maximumf %333, %335 : vector<2x64xf32>
    %337 = arith.maximumf %331, %336 : vector<2x64xf32>
    %c0_265 = arith.constant 0 : index
    %c112 = arith.constant 112 : index
    %c0_266 = arith.constant 0 : index
    %338 = vector.load %arg14[%c0_265, %c112, %c0_266] : memref<2x256x64xf32, #tpu.memory_space<vmem>>, vector<2x1x64xf32>
    %339 = vector.shape_cast %338 : vector<2x1x64xf32> to vector<2x64xf32>
    %c0_267 = arith.constant 0 : index
    %c113 = arith.constant 113 : index
    %c0_268 = arith.constant 0 : index
    %340 = vector.load %arg14[%c0_267, %c113, %c0_268] : memref<2x256x64xf32, #tpu.memory_space<vmem>>, vector<2x1x64xf32>
    %341 = vector.shape_cast %340 : vector<2x1x64xf32> to vector<2x64xf32>
    %342 = arith.maximumf %339, %341 : vector<2x64xf32>
    %c0_269 = arith.constant 0 : index
    %c125 = arith.constant 125 : index
    %c0_270 = arith.constant 0 : index
    %343 = vector.load %arg14[%c0_269, %c125, %c0_270] : memref<2x256x64xf32, #tpu.memory_space<vmem>>, vector<2x1x64xf32>
    %344 = vector.shape_cast %343 : vector<2x1x64xf32> to vector<2x64xf32>
    %c0_271 = arith.constant 0 : index
    %c126 = arith.constant 126 : index
    %c0_272 = arith.constant 0 : index
    %345 = vector.load %arg14[%c0_271, %c126, %c0_272] : memref<2x256x64xf32, #tpu.memory_space<vmem>>, vector<2x1x64xf32>
    %346 = vector.shape_cast %345 : vector<2x1x64xf32> to vector<2x64xf32>
    %347 = arith.maximumf %344, %346 : vector<2x64xf32>
    %348 = arith.maximumf %342, %347 : vector<2x64xf32>
    %349 = tpu.concatenate %84, %95, %106, %117, %128, %139, %150, %161, %172, %183, %194, %205, %216, %227, %238, %249 in 1 : vector<2x64xf32>, vector<2x64xf32>, vector<2x64xf32>, vector<2x64xf32>, vector<2x64xf32>, vector<2x64xf32>, vector<2x64xf32>, vector<2x64xf32>, vector<2x64xf32>, vector<2x64xf32>, vector<2x64xf32>, vector<2x64xf32>, vector<2x64xf32>, vector<2x64xf32>, vector<2x64xf32>, vector<2x64xf32> -> vector<2x1024xf32>
    %350 = tpu.concatenate %260, %271, %282, %293, %304, %315, %326, %337, %348 in 1 : vector<2x64xf32>, vector<2x64xf32>, vector<2x64xf32>, vector<2x64xf32>, vector<2x64xf32>, vector<2x64xf32>, vector<2x64xf32>, vector<2x64xf32>, vector<2x64xf32> -> vector<2x576xf32>
    %351 = tpu.concatenate %349, %350 in 1 : vector<2x1024xf32>, vector<2x576xf32> -> vector<2x1600xf32>
    %352 = arith.truncf %351 : vector<2x1600xf32> to vector<2x1600xbf16>
    %c0_273 = arith.constant 0 : index
    %c0_274 = arith.constant 0 : index
    %353 = vector.load %arg6[%c0_273, %c0_274] : memref<1600x128xbf16, #tpu.memory_space<vmem>>, vector<1600x128xbf16>
    %cst_275 = arith.constant dense<0.000000e+00> : vector<2x128xf32>
    %354 = tpu.matmul %352, %353, %cst_275 {dimension_numbers = #tpu.dot_dimension_numbers<[1], [0], [0], [1], [0, 0, 1, 1], [], []>} : vector<2x1600xbf16>, vector<1600x128xbf16>, vector<2x128xf32> -> vector<2x128xf32>
    %c0_276 = arith.constant 0 : index
    %c0_277 = arith.constant 0 : index
    %355 = vector.load %arg7[%c0_276, %c0_277] : memref<1x128xf32, #tpu.memory_space<vmem>>, vector<1x128xf32>
    %356 = vector.broadcast %355 : vector<1x128xf32> to vector<2x128xf32>
    %357 = arith.addf %354, %356 : vector<2x128xf32>
    %cst_278 = arith.constant 0.000000e+00 : f32
    %358 = vector.broadcast %cst_278 : f32 to vector<2x128xf32>
    %359 = arith.maximumf %357, %358 : vector<2x128xf32>
    %360 = arith.truncf %359 : vector<2x128xf32> to vector<2x128xbf16>
    %c0_279 = arith.constant 0 : index
    %c0_280 = arith.constant 0 : index
    %361 = vector.load %arg8[%c0_279, %c0_280] : memref<128x64xbf16, #tpu.memory_space<vmem>>, vector<128x64xbf16>
    %cst_281 = arith.constant dense<0.000000e+00> : vector<2x64xf32>
    %362 = tpu.matmul %360, %361, %cst_281 {dimension_numbers = #tpu.dot_dimension_numbers<[1], [0], [0], [1], [0, 0, 1, 1], [], []>} : vector<2x128xbf16>, vector<128x64xbf16>, vector<2x64xf32> -> vector<2x64xf32>
    %c0_282 = arith.constant 0 : index
    %c0_283 = arith.constant 0 : index
    %363 = vector.load %arg9[%c0_282, %c0_283] : memref<1x64xf32, #tpu.memory_space<vmem>>, vector<1x64xf32>
    %364 = vector.broadcast %363 : vector<1x64xf32> to vector<2x64xf32>
    %365 = arith.addf %362, %364 : vector<2x64xf32>
    %cst_284 = arith.constant 0.000000e+00 : f32
    %366 = vector.broadcast %cst_284 : f32 to vector<2x64xf32>
    %367 = arith.maximumf %365, %366 : vector<2x64xf32>
    %368 = arith.truncf %367 : vector<2x64xf32> to vector<2x64xbf16>
    %c0_285 = arith.constant 0 : index
    %c0_286 = arith.constant 0 : index
    %369 = vector.load %arg10[%c0_285, %c0_286] : memref<64x10xbf16, #tpu.memory_space<vmem>>, vector<64x10xbf16>
    %cst_287 = arith.constant dense<0.000000e+00> : vector<2x10xf32>
    %370 = tpu.matmul %368, %369, %cst_287 {dimension_numbers = #tpu.dot_dimension_numbers<[1], [0], [0], [1], [0, 0, 1, 1], [], []>} : vector<2x64xbf16>, vector<64x10xbf16>, vector<2x10xf32> -> vector<2x10xf32>
    %c0_288 = arith.constant 0 : index
    %c0_289 = arith.constant 0 : index
    %371 = vector.load %arg11[%c0_288, %c0_289] : memref<1x10xf32, #tpu.memory_space<vmem>>, vector<1x10xf32>
    %372 = vector.broadcast %371 : vector<1x10xf32> to vector<2x10xf32>
    %373 = arith.addf %370, %372 : vector<2x10xf32>
    %c0_290 = arith.constant 0 : index
    %c0_291 = arith.constant 0 : index
    %374 = vector.load %arg12[%c0_290, %c0_291] : memref<2x10xf32, #tpu.memory_space<vmem>>, vector<2x10xf32>
    tpu.vector_store %arg12[%c0_290, %c0_291], %373 {strides = array<i32>} : memref<2x10xf32, #tpu.memory_space<vmem>>, vector<2x10xf32>,
    return
  }
  func.func @transform_0(%arg0: i32) -> (i32, i32, i32) {
    %c0_i32 = arith.constant 0 : i32
    %c0_i32_0 = arith.constant 0 : i32
    %c0_i32_1 = arith.constant 0 : i32
    return %arg0, %c0_i32, %c0_i32_0 : i32, i32, i32
  }
  func.func @transform_1(%arg0: i32) -> (i32, i32) {
    %c0_i32 = arith.constant 0 : i32
    %c0_i32_0 = arith.constant 0 : i32
    %c0_i32_1 = arith.constant 0 : i32
    return %c0_i32, %c0_i32_0 : i32, i32
  }
  func.func @transform_2(%arg0: i32) -> (i32, i32) {
    %c0_i32 = arith.constant 0 : i32
    %c0_i32_0 = arith.constant 0 : i32
    %c0_i32_1 = arith.constant 0 : i32
    return %c0_i32, %c0_i32_0 : i32, i32
  }
  func.func @transform_3(%arg0: i32) -> (i32, i32, i32) {
    %c0_i32 = arith.constant 0 : i32
    %c0_i32_0 = arith.constant 0 : i32
    %c0_i32_1 = arith.constant 0 : i32
    %c0_i32_2 = arith.constant 0 : i32
    return %c0_i32, %c0_i32_0, %c0_i32_1 : i32, i32, i32
  }
  func.func @transform_4(%arg0: i32) -> (i32, i32) {
    %c0_i32 = arith.constant 0 : i32
    %c0_i32_0 = arith.constant 0 : i32
    %c0_i32_1 = arith.constant 0 : i32
    return %c0_i32, %c0_i32_0 : i32, i32
  }
  func.func @transform_5(%arg0: i32) -> (i32, i32) {
    %c0_i32 = arith.constant 0 : i32
    %c0_i32_0 = arith.constant 0 : i32
    %c0_i32_1 = arith.constant 0 : i32
    return %c0_i32, %c0_i32_0 : i32, i32
  }
  func.func @transform_6(%arg0: i32) -> (i32, i32) {
    %c0_i32 = arith.constant 0 : i32
    %c0_i32_0 = arith.constant 0 : i32
    %c0_i32_1 = arith.constant 0 : i32
    return %c0_i32, %c0_i32_0 : i32, i32
  }
  func.func @transform_7(%arg0: i32) -> (i32, i32) {
    %c0_i32 = arith.constant 0 : i32
    %c0_i32_0 = arith.constant 0 : i32
    %c0_i32_1 = arith.constant 0 : i32
    return %c0_i32, %c0_i32_0 : i32, i32
  }
  func.func @transform_8(%arg0: i32) -> (i32, i32) {
    %c0_i32 = arith.constant 0 : i32
    %c0_i32_0 = arith.constant 0 : i32
    %c0_i32_1 = arith.constant 0 : i32
    return %c0_i32, %c0_i32_0 : i32, i32
  }
  func.func @transform_9(%arg0: i32) -> (i32, i32) {
    %c0_i32 = arith.constant 0 : i32
    %c0_i32_0 = arith.constant 0 : i32
    %c0_i32_1 = arith.constant 0 : i32
    return %c0_i32, %c0_i32_0 : i32, i32
  }
  func.func @transform_10(%arg0: i32) -> (i32, i32) {
    %c0_i32 = arith.constant 0 : i32
    %c0_i32_0 = arith.constant 0 : i32
    %c0_i32_1 = arith.constant 0 : i32
    return %c0_i32, %c0_i32_0 : i32, i32
  }
  func.func @transform_11(%arg0: i32) -> (i32, i32) {
    %c0_i32 = arith.constant 0 : i32
    %c0_i32_0 = arith.constant 0 : i32
    return %arg0, %c0_i32 : i32, i32
  }
}

</mosaic_0001>

<bundles_post_ra>
// kernel: model_forward.1
= control target key start
LH: loop header
LB: loop body
LE: loop exit
PB: predicated region body
PF: predicated region fallthrough
CT: control target
= control target key end

     0   :  { %vm141_vm0 = vcmask 1043456   ;;  %vm142_vm1 = vcmask 1044480   ;;  %v10528_v3 = vmov 65535   ;;  %v13143_v11 = vmov 0   ;;  %s13131_s0 = inlined_call_operand.vmem [shape: bf16[1,9,2048], index: 0, kind: input, shape index: {}]   ;;  %s13132_s1 = inlined_call_operand.vmem [shape: bf16[32,9], index: 1, kind: input, shape index: {}]   ;;  %s13133_s2 = inlined_call_operand.vmem [shape: f32[32,1], index: 2, kind: input, shape index: {}]   ;;  %s13134_s3 = inlined_call_operand.vmem [shape: bf16[9,32,64], index: 3, kind: input, shape index: {}]   ;;  %s13135_s4 = inlined_call_operand.vmem [shape: f32[1,64], index: 4, kind: input, shape index: {}]   ;;  %s13136_s5 = inlined_call_operand.vmem [shape: bf16[1600,128], index: 5, kind: input, shape index: {}]   ;;  %s13137_s6 = inlined_call_operand.vmem [shape: f32[1,128], index: 6, kind: input, shape index: {}]   ;;  %s13138_s7 = inlined_call_operand.vmem [shape: bf16[128,64], index: 7, kind: input, shape index: {}]   ;;  %s13139_s8 = inlined_call_operand.vmem [shape: f32[1,64], index: 8, kind: input, shape index: {}]   ;;  %s13140_s9 = inlined_call_operand.vmem [shape: bf16[64,10], index: 9, kind: input, shape index: {}]   ;;  %s13141_s10 = inlined_call_operand.vmem [shape: f32[1,10], index: 10, kind: input, shape index: {}]   ;;  %s13142_s11 = inlined_call_operand.hbm [shape: f32[2,10], index: 11, kind: output, shape index: {}]  }
   0x1   :  { %v44_v0 = vld [vmem:[%s13131_s0] sm:$0xff]  ;;  %v143_v4 = vsel %vm141_vm0, 4294967295, %v10528_v3  ;;  %v45_v5 = vld [vmem:[%s13131_s0 + $0x8] sm:$0xff]  ;;  %225 = vmatprep.mubr.bf16.mxu0 %v13143_v11  ;;  %278 = vmatprep.mubr.bf16.mxu1 %v13143_v11  ;;  %v46_v14 = vld [vmem:[%s13131_s0 + $0x10] sm:$0xff]  ;;  %vm134_vm2 = vcmask 72704  }
   0x2   :  { %v52_v1 = vld [vmem:[%s13131_s0 + $0x40] sm:$0x11]  ;;  %v53_v6 = vld [vmem:[%s13131_s0 + $0x48] sm:$0x11]  ;;  %v10606_v8 = vsel %vm142_vm1, %v143_v4, 0  ;;  %10315 = vset.pattern.permute.xlu0 %v13143_v11  ;;  %10316 = vset.pattern.permute.xlu1 %v13143_v11  ;;  %v47_v21 = vld [vmem:[%s13131_s0 + $0x18] sm:$0xff] }
   0x3   :  { %v8193_v2 = vcombine.high %v44_v0, %v52_v1  ;;  %v8192_v7 = vcombine.low %v44_v0, %v52_v1  ;;  %v8195_v9 = vcombine.high %v45_v5, %v53_v6  ;;  %v8194_v10 = vcombine.low %v45_v5, %v53_v6  ;;  %v54_v15 = vld [vmem:[%s13131_s0 + $0x50] sm:$0x11]  ;;  %v10625_v18 = vld [vmem:[%s13132_s1] sm:$0xff]   ;;  %v55_v22 = vld [vmem:[%s13131_s0 + $0x58] sm:$0x11] }
   0x4   :  { %v8196_v19 = vcombine.low %v46_v14, %v54_v15  ;;  %v8197_v20 = vcombine.high %v46_v14, %v54_v15  ;;  %v48_v23 = vld [vmem:[%s13131_s0 + $0x20] sm:$0xff]  ;;  %v8198_v27 = vcombine.low %v47_v21, %v55_v22  ;;  %v49_v28 = vld [vmem:[%s13131_s0 + $0x28] sm:$0xff]  ;;  %v8199_v30 = vcombine.high %v47_v21, %v55_v22  ;;  %v667_v37 = vld [vmem:[%s13133_s2 + $0x10] sm:$0xff] }
   0x5   :  { %v149_v12 = vand.u32 %v8193_v2, %v10606_v8  ;;  %v146_v13 = vand.u32 %v8192_v7, %v10606_v8  ;;  %v155_v16 = vand.u32 %v8195_v9, %v10606_v8  ;;  %v152_v17 = vand.u32 %v8194_v10, %v10606_v8  ;;  %v56_v24 = vld [vmem:[%s13131_s0 + $0x60] sm:$0x11]  ;;  %v57_v29 = vld [vmem:[%s13131_s0 + $0x68] sm:$0x11]  ;;  %681 = vperm.xlu1 %10316, %v667_v37   ;;  %v668_v41 = vld [vmem:[%s13133_s2 + $0x18] sm:$0xff] }
   0x6   :  { %v161_v25 = vand.u32 %v8197_v20, %v10606_v8  ;;  %v158_v26 = vand.u32 %v8196_v19, %v10606_v8  ;;  %v8201_v31 = vcombine.high %v48_v23, %v56_v24  ;;  %v8203_v32 = vcombine.high %v49_v28, %v57_v29  ;;  %v665_v33 = vld [vmem:[%s13133_s2] sm:$0xff]  ;;  %v10348_v39 = vld [vmem:[%s13132_s1 + $0x8] sm:$0xff]   ;;  %v50_v42 = vld [vmem:[%s13131_s0 + $0x30] sm:$0xff] }
   0x7   :  { %193 = vmatprep.subr.bf16.mxu0 %v149_v12  ;;  %246 = vmatprep.subr.bf16.mxu1 %v155_v16  ;;  %v167_v34 = vand.u32 %v8199_v30, %v10606_v8  ;;  %v164_v35 = vand.u32 %v8198_v27, %v10606_v8  ;;  %v666_v40 = vld [vmem:[%s13133_s2 + $0x8] sm:$0xff]  ;;  %v58_v43 = vld [vmem:[%s13131_s0 + $0x70] sm:$0x11]  ;;  %v51_v44 = vld [vmem:[%s13131_s0 + $0x38] sm:$0xff]  ;;  %v8200_v46 = vcombine.low %v48_v23, %v56_v24 }
   0x8   :  { %194 = vmatpush1.bf16.msra.mxu0 %v146_v13  ;;  %247 = vmatpush1.bf16.msra.mxu1 %v152_v17  ;;  %v173_v36 = vand.u32 %v8201_v31, %v10606_v8  ;;  %v179_v38 = vand.u32 %v8203_v32, %v10606_v8  ;;  %v59_v45 = vld [vmem:[%s13131_s0 + $0x78] sm:$0x11]  ;;  %v8202_v47 = vcombine.low %v49_v28, %v57_v29 }
   0x9   :  { %299 = vmatprep.subr.bf16.mxu0 %v161_v25  ;;  %352 = vmatprep.subr.bf16.mxu1 %v167_v34  ;;  %v8205_v48 = vcombine.high %v50_v42, %v58_v43  ;;  %v8207_v49 = vcombine.high %v51_v44, %v59_v45  ;;  %v170_v50 = vand.u32 %v8200_v46, %v10606_v8 }
   0xa   :  { %671 = vperm.xlu0 %10315, %v665_v33   ;;  %686 = vperm.xlu1 %10316, %v668_v41   ;;  %v176_v51 = vand.u32 %v8202_v47, %v10606_v8  ;;  %v8204_v54 = vcombine.low %v50_v42, %v58_v43  ;;  %v8206_v55 = vcombine.low %v51_v44, %v59_v45 }
   0xb   :  { %8208 = vmatmul.mubr.msk.bf16.vlgmr.msra.gmra.mrb[0].mxu0 %vm134_vm2, %v10625_v18  ;;  %8210 = vmatmul.mubr.msk.bf16.vlgmr.msra.gmra.mrb[0].mxu1 %vm134_vm2, %v10625_v18  ;;  %v185_v52 = vand.u32 %v8205_v48, %v10606_v8  ;;  %v191_v53 = vand.u32 %v8207_v49, %v10606_v8 }
   0xc   :  { %300 = vmatpush1.bf16.msra.mxu0 %v158_v26  ;;  %235 = vmatprep.mubr.bf16.mxu0 %v13143_v11  ;;  %v182_v56 = vand.u32 %v8204_v54, %v10606_v8  ;;  %v188_v57 = vand.u32 %v8206_v55, %v10606_v8 }
   0xd   :  { %288 = vmatprep.mubr.bf16.mxu1 %v13143_v11  ;;  %405 = vmatprep.subr.bf16.mxu0 %v173_v36 }
   0xe   :  { %353 = vmatpush1.bf16.msra.mxu1 %v164_v35  ;;  %676 = vperm.xlu0 %10315, %v666_v40  }
   0xf   :  { %458 = vmatprep.subr.bf16.mxu1 %v179_v38 }
  0x13   :  { %8209 = vmatmul.mubr.msk.bf16.gmra.mrb[4].mxu0 %vm134_vm2, %v10348_v39  ;;  %8211 = vmatmul.mubr.msk.bf16.gmra.mrb[4].mxu1 %vm134_vm2, %v10348_v39 }
  0x14   :  { %331 = vmatprep.mubr.bf16.mxu0 %v13143_v11  ;;  %384 = vmatprep.mubr.bf16.mxu1 %v13143_v11 }
  0x1b   :  { %8212 = vmatmul.mubr.msk.bf16.vlgmr.msra.gmra.mrb[8].mxu0 %vm134_vm2, %v10625_v18  ;;  %8214 = vmatmul.mubr.msk.bf16.vlgmr.msra.gmra.mrb[8].mxu1 %vm134_vm2, %v10625_v18 }
  0x1c   :  { %406 = vmatpush1.bf16.msra.mxu0 %v170_v50  ;;  %341 = vmatprep.mubr.bf16.mxu0 %v13143_v11 }
  0x1d   :  { %394 = vmatprep.mubr.bf16.mxu1 %v13143_v11  ;;  %459 = vmatpush1.bf16.msra.mxu1 %v176_v51 }
  0x1e   :  { %511 = vmatprep.subr.bf16.mxu0 %v185_v52  ;;  %564 = vmatprep.subr.bf16.mxu1 %v191_v53 }
  0x23   :  { %8213 = vmatmul.mubr.msk.bf16.gmra.mrb[12].mxu0 %vm134_vm2, %v10348_v39  ;;  %8215 = vmatmul.mubr.msk.bf16.gmra.mrb[12].mxu1 %vm134_vm2, %v10348_v39 }
  0x24   :  { %437 = vmatprep.mubr.bf16.mxu0 %v13143_v11  ;;  %490 = vmatprep.mubr.bf16.mxu1 %v13143_v11 }
  0x2b   :  { %8216 = vmatmul.mubr.msk.bf16.vlgmr.msra.gmra.mrb[16].mxu0 %vm134_vm2, %v10625_v18  ;;  %8218 = vmatmul.mubr.msk.bf16.vlgmr.msra.gmra.mrb[16].mxu1 %vm134_vm2, %v10625_v18 }
  0x2c   :  { %512 = vmatpush1.bf16.msra.mxu0 %v182_v56  ;;  %447 = vmatprep.mubr.bf16.mxu0 %v13143_v11 }
  0x2d   :  { %500 = vmatprep.mubr.bf16.mxu1 %v13143_v11  ;;  %565 = vmatpush1.bf16.msra.mxu1 %v188_v57 }
  0x33   :  { %8217 = vmatmul.mubr.msk.bf16.gmra.mrb[20].mxu0 %vm134_vm2, %v10348_v39  ;;  %8219 = vmatmul.mubr.msk.bf16.gmra.mrb[20].mxu1 %vm134_vm2, %v10348_v39 }
  0x34   :  { %543 = vmatprep.mubr.bf16.mxu0 %v13143_v11  ;;  %596 = vmatprep.mubr.bf16.mxu1 %v13143_v11 }
  0x3b   :  { %8220 = vmatmul.mubr.msk.bf16.vlgmr.msra.gmra.mrb[24].mxu0 %vm134_vm2, %v10625_v18  ;;  %8222 = vmatmul.mubr.msk.bf16.vlgmr.msra.gmra.mrb[24].mxu1 %vm134_vm2, %v10625_v18 }
  0x3c   :  { %553 = vmatprep.mubr.bf16.mxu0 %v13143_v11  ;;  %606 = vmatprep.mubr.bf16.mxu1 %v13143_v11 }
  0x43   :  { %8221 = vmatmul.mubr.msk.bf16.gmra.mrb[28].mxu0 %vm134_vm2, %v10348_v39  ;;  %8223 = vmatmul.mubr.msk.bf16.gmra.mrb[28].mxu1 %vm134_vm2, %v10348_v39 }
  0x44   :  { %16 = vsyncpa [#allocation5], 0  ;;  %vm881_vm3 = vcmask 261120   ;;  %vm958_vm4 = vsmask.f32 7424  ;;  %vm3165_vm7 = vcmask 1040384  }
  0x45   :  { %vm2554_vm5 = vsmask.f32 1280  ;;  %vm3698_vm6 = vsmask.f32 256  ;;  %vm2020_vm8 = vcmask 1046528   ;;  %vm4336_vm9 = vcmask 1042432  }
  0x46   :  { %vm4869_vm10 = vsmask.f32 2304  ;;  %vm5635_vm11 = vcmask 1041408   ;;  %vm6297_vm12 = vcmask 523264   ;;  %vm6715_vm13 = vcmask 1041409   ;;  %s10530_s26 = smov 64  }
  0x47   :  { %vm10532_vm14 = vmmov 0   ;;  %vm8174_vm15 = vcmask 74752  }
  0xde   :  { %v10722_v58 = vpop.f32.mrb[0].mxu0  ;;  %v10726_v60 = vpop.f32.mrb[0].mxu1 }
  0xdf   :  { %v10724_v59 = vpop.f32.mrb[1].mxu0  ;;  %v10730_v62 = vpop.f32.mrb[1].mxu1 }
  0xe0   :  { %v10728_v61 = vpop.f32.mrb[2].mxu0  ;;  %v10734_v0 = vpop.f32.mrb[2].mxu1 }
  0xe1   :  { %v10732_v63 = vpop.f32.mrb[3].mxu0  ;;  %v10736_v1 = vpop.f32.mrb[3].mxu1 }
  0xe6   :  { %v10738_v2 = vpop.f32.mrb[4].mxu0  ;;  %v10742_v4 = vpop.f32.mrb[4].mxu1 }
  0xe7   :  { %v10740_v3 = vpop.f32.mrb[5].mxu0  ;;  %v10746_v6 = vpop.f32.mrb[5].mxu1 }
  0xe8   :  { %v10744_v5 = vpop.f32.mrb[6].mxu0  ;;  %v10750_v8 = vpop.f32.mrb[6].mxu1 }
  0xe9   :  { %v10748_v7 = vpop.f32.mrb[7].mxu0  ;;  %v10752_v9 = vpop.f32.mrb[7].mxu1 }
  0xee   :  { %v333_v10 = vpop.f32.mrb[8].mxu0  ;;  %v386_v14 = vpop.f32.mrb[8].mxu1 }
  0xef   :  { %v617_v12 = vmax.f32 %v10722_v58, %v333_v10  ;;  %v335_v13 = vpop.f32.mrb[9].mxu0  ;;  %v619_v17 = vmax.f32 %v10726_v60, %v386_v14  ;;  %v388_v18 = vpop.f32.mrb[9].mxu1 }
  0xf0   :  { %v618_v15 = vmax.f32 %v10724_v59, %v335_v13  ;;  %v10756_v16 = vpop.f32.mrb[10].mxu0  ;;  %v620_v21 = vmax.f32 %v10730_v62, %v388_v18  ;;  %v390_v22 = vpop.f32.mrb[10].mxu1 }
  0xf1   :  { %v621_v19 = vmax.f32 %v10728_v61, %v10756_v16  ;;  %v10761_v20 = vpop.f32.mrb[11].mxu0  ;;  %v623_v24 = vmax.f32 %v10734_v0, %v390_v22  ;;  %v392_v25 = vpop.f32.mrb[11].mxu1 }
  0xf2   :  { %v622_v23 = vmax.f32 %v10732_v63, %v10761_v20  ;;  %v624_v26 = vmax.f32 %v10736_v1, %v392_v25  ;;  %v10808_v60 = vpop.permute.xlu0 %671 }
  0xf6   :  { %v10768_v27 = vpop.f32.mrb[12].mxu0  ;;  %v10774_v30 = vpop.f32.mrb[12].mxu1 }
  0xf7   :  { %v625_v28 = vmax.f32 %v10738_v2, %v10768_v27  ;;  %v10772_v29 = vpop.f32.mrb[13].mxu0  ;;  %v627_v33 = vmax.f32 %v10742_v4, %v10774_v30  ;;  %v10782_v34 = vpop.f32.mrb[13].mxu1 }
  0xf8   :  { %v626_v31 = vmax.f32 %v10740_v3, %v10772_v29  ;;  %v10778_v32 = vpop.f32.mrb[14].mxu0  ;;  %v628_v37 = vmax.f32 %v10746_v6, %v10782_v34  ;;  %v10790_v38 = vpop.f32.mrb[14].mxu1 }
  0xf9   :  { %v10786_v36 = vpop.f32.mrb[15].mxu0  ;;  %v10796_v41 = vpop.f32.mrb[15].mxu1  ;;  %v13164_v29 = vmax.f32 %v10750_v8, %v10790_v38  ;;  %v10351_v38 = vld [vmem:[%s13134_s3 + $0x18] sm:$0xff]  }
  0xfe   :  { %v439_v43 = vpop.f32.mrb[16].mxu0  ;;  %v492_v45 = vpop.f32.mrb[16].mxu1 }
  0xff   :  { %v441_v44 = vpop.f32.mrb[17].mxu0  ;;  %v494_v47 = vpop.f32.mrb[17].mxu1 }
 0x100   :  { %v443_v46 = vpop.f32.mrb[18].mxu0  ;;  %v496_v49 = vpop.f32.mrb[18].mxu1 }
 0x101   :  { %v445_v48 = vpop.f32.mrb[19].mxu0  ;;  %v498_v50 = vpop.f32.mrb[19].mxu1 }
 0x106   :  { %v449_v51 = vpop.f32.mrb[20].mxu0  ;;  %v502_v53 = vpop.f32.mrb[20].mxu1 }
 0x107   :  { %v451_v52 = vpop.f32.mrb[21].mxu0  ;;  %v504_v55 = vpop.f32.mrb[21].mxu1 }
 0x108   :  { %v10800_v54 = vpop.f32.mrb[22].mxu0  ;;  %v10804_v57 = vpop.f32.mrb[22].mxu1 }
 0x109   :  { %v10802_v56 = vpop.f32.mrb[23].mxu0  ;;  %v10806_v58 = vpop.f32.mrb[23].mxu1 }
 0x10e   :  { %v545_v59 = vpop.f32.mrb[24].mxu0  ;;  %v598_v62 = vpop.f32.mrb[24].mxu1 }
 0x10f   :  { %v633_v61 = vmax.f32 %v439_v43, %v545_v59  ;;  %v547_v63 = vpop.f32.mrb[25].mxu0  ;;  %v635_v0 = vmax.f32 %v492_v45, %v598_v62  ;;  %v600_v10 = vpop.f32.mrb[25].mxu1 }
 0x110   :  { %v634_v1 = vmax.f32 %v441_v44, %v547_v63  ;;  %v549_v13 = vpop.f32.mrb[26].mxu0  ;;  %v636_v16 = vmax.f32 %v494_v47, %v600_v10  ;;  %v602_v20 = vpop.f32.mrb[26].mxu1 }
 0x111   :  { %v649_v14 = vmax.f32 %v617_v12, %v633_v61  ;;  %v637_v18 = vmax.f32 %v443_v46, %v549_v13  ;;  %v551_v22 = vpop.f32.mrb[27].mxu0  ;;  %v10810_v25 = vmax.f32 %v619_v17, %v635_v0  ;;  %v639_v42 = vmax.f32 %v496_v49, %v602_v20  ;;  %v604_v40 = vpop.f32.mrb[27].mxu1 }
 0x112   :  { %v650_v11 = vmax.f32 %v618_v15, %v634_v1  ;;  %v638_v39 = vmax.f32 %v445_v48, %v551_v22  ;;  %v10812_v35 = vmax.f32 %v620_v21, %v636_v16  ;;  %v640_v59 = vmax.f32 %v498_v50, %v604_v40  ;;  %v10817_v12 = vpop.permute.xlu0 %676  ;;  %v10824_v49 = vpop.permute.xlu1 %681 }
 0x113   :  { %v653_v43 = vmax.f32 %v621_v19, %v637_v18  ;;  %v689_v45 = vadd.f32 %v10808_v60, %v649_v14  ;;  %v10815_v44 = vmax.f32 %v623_v24, %v639_v42  ;;  %v10877_v18 = vld [vmem:[%s13134_s3 + $0x40] sm:$0xff]  }
 0x114   :  { %v654_v62 = vmax.f32 %v622_v23, %v638_v39  ;;  %v690_v46 = vadd.f32 %v10808_v60, %v650_v11  ;;  %v10820_v47 = vmax.f32 %v624_v26, %v640_v59  ;;  %v692_v20 = vadd.f32 %v10808_v60, %v10812_v35 }
 0x115   :  { %v693_v15 = vadd.f32 %v10817_v12, %v653_v43  ;;  %v705_v17 = vmax.f32 %v689_v45, 0.0  ;;  %v695_v22 = vadd.f32 %v10817_v12, %v10815_v44 }
 0x116   :  { %v694_v48 = vadd.f32 %v10817_v12, %v654_v62  ;;  %v555_v21 = vpop.f32.mrb[28].mxu0  ;;  %v706_v19 = vmax.f32 %v690_v46, 0.0  ;;  %v608_v50 = vpop.f32.mrb[28].mxu1  ;;  %v696_v59 = vadd.f32 %v10817_v12, %v10820_v47  ;;  %v708_v45 = vmax.f32 %v692_v20, 0.0 }
 0x117   :  { %v641_v40 = vmax.f32 %v449_v51, %v555_v21  ;;  %721 = vxpose.xlu0.b32.start [1/4] (short) %v705_v17, 128  ;;  %v557_v24 = vpop.f32.mrb[29].mxu0  ;;  %v709_v23 = vmax.f32 %v693_v15, 0.0  ;;  %v643_v39 = vmax.f32 %v502_v53, %v608_v50  ;;  %v610_v42 = vpop.f32.mrb[29].mxu1 }
 0x118   :  { %v642_v61 = vmax.f32 %v451_v52, %v557_v24  ;;  %753 = vxpose.xlu1.b32.start [1/4] (short) %v706_v19, 128  ;;  %v559_v11 = vpop.f32.mrb[30].mxu0  ;;  %v710_v26 = vmax.f32 %v694_v48, 0.0  ;;  %v644_v0 = vmax.f32 %v504_v55, %v610_v42  ;;  %v612_v1 = vpop.f32.mrb[30].mxu1  ;;  %v712_v46 = vmax.f32 %v696_v59, 0.0 }
 0x119   :  { %v657_v63 = vmax.f32 %v625_v28, %v641_v40  ;;  %v645_v10 = vmax.f32 %v10800_v54, %v559_v11  ;;  %v561_v13 = vpop.f32.mrb[31].mxu0  ;;  %v659_v51 = vmax.f32 %v627_v33, %v643_v39  ;;  %v647_v53 = vmax.f32 %v10804_v57, %v612_v1  ;;  %v614_v16 = vpop.f32.mrb[31].mxu1 }
 0x11a   :  { %v658_v52 = vmax.f32 %v626_v31, %v642_v61  ;;  %v646_v14 = vmax.f32 %v10802_v56, %v561_v13  ;;  %v660_v27 = vmax.f32 %v628_v37, %v644_v0  ;;  %v13163_v28 = vmax.f32 %v10744_v5, %v10778_v32  ;;  %v687_v55 = vpop.permute.xlu1 %686 }
 0x11b   :  { %v697_v2 = vadd.f32 %v10824_v49, %v657_v63  ;;  %v648_v30 = vmax.f32 %v10806_v58, %v614_v16  ;;  %722 = vxpose.xlu0.b32.cont [2/4] (short) %v709_v23, 128  ;;  %v663_v31 = vmax.f32 %v13164_v29, %v647_v53  ;;  %v13165_v33 = vmax.f32 %v10748_v7, %v10786_v36  ;;  %v10350_v36 = vld [vmem:[%s13134_s3 + $0x30] sm:$0xff]  }
 0x11c   :  { %v661_v4 = vmax.f32 %v13163_v28, %v645_v10  ;;  %v698_v3 = vadd.f32 %v10824_v49, %v658_v52  ;;  %754 = vxpose.xlu1.b32.cont [2/4] (short) %v710_v26, 128  ;;  %v13166_v5 = vmax.f32 %v10752_v9, %v10796_v41  ;;  %v13167_v57 = vmov 0   ;;  %v10349_v9 = vld [vmem:[%s13134_s3 + $0x10] sm:$0xff]   ;;  %9341 = vmatprep.subr.bf16.mxu0 %v10350_v36  ;;  %v10352_v41 = vld [vmem:[%s13134_s3 + $0x38] sm:$0xff]  }
 0x11d   :  { %v662_v54 = vmax.f32 %v13165_v33, %v646_v14  ;;  %v713_v6 = vmax.f32 %v697_v2, 0.0  ;;  %914 = vst.msk [vmem:[#allocation2 + $0x100] sm:$0xff] %vm881_vm3, %v13167_v57  ;;  %915 = vst.msk [vmem:[#allocation2 + $0x108] sm:$0xff] %vm881_vm3, %v13167_v57  ;;  %9137 = vmatprep.subr.bf16.mxu1 %v10349_v9  ;;  %9342 = vmatpush3.bf16.msra.mxu0 %v10350_v36  ;;  %v691_v58 = vadd.f32 %v10808_v60, %v10810_v25 }
 0x11e   :  { %v664_v32 = vmax.f32 %v13166_v5, %v648_v30  ;;  %v701_v34 = vadd.f32 %v687_v55, %v661_v4  ;;  %v714_v37 = vmax.f32 %v698_v3, 0.0  ;;  %9138 = vmatpush3.bf16.msra.mxu1 %v10349_v9  ;;  %9343 = vmatprep.subr.bf16.mxu0 %v10352_v41  ;;  %v711_v25 = vmax.f32 %v695_v22, 0.0 }
 0x11f   :  { %v702_v56 = vadd.f32 %v687_v55, %v662_v54  ;;  %723 = vxpose.xlu0.b32.cont [3/4] (short) %v713_v6, 128  ;;  %9139 = vmatprep.subr.bf16.mxu1 %v10351_v38  ;;  %v707_v43 = vmax.f32 %v691_v58, 0.0  ;;  %v699_v62 = vadd.f32 %v10824_v49, %v659_v51  ;;  %v700_v15 = vadd.f32 %v10824_v49, %v660_v27 }
 0x120   :  { %755 = vxpose.xlu1.b32.cont [3/4] (short) %v714_v37, 128  ;;  %v717_v7 = vmax.f32 %v701_v34, 0.0  ;;  %v703_v60 = vadd.f32 %v687_v55, %v663_v31  ;;  %v704_v48 = vadd.f32 %v687_v55, %v664_v32 }
 0x121   :  { %v718_v8 = vmax.f32 %v702_v56, 0.0  ;;  %9344 = vmatpush3.bf16.msra.mxu0 %v10352_v41  ;;  %v715_v35 = vmax.f32 %v699_v62, 0.0  ;;  %v716_v17 = vmax.f32 %v700_v15, 0.0 }
 0x122   :  { %9140 = vmatpush3.bf16.msra.mxu1 %v10351_v38  ;;  %9409 = vmatprep.subr.bf16.mxu0 %v10877_v18  ;;  %v719_v44 = vmax.f32 %v703_v60, 0.0  ;;  %v720_v21 = vmax.f32 %v704_v48, 0.0 }
 0x123   :  { %724 = vxpose.xlu0.b32.end [4/4] (short) %v717_v7, 128 }
 0x124   :  { %756 = vxpose.xlu1.b32.end [4/4] (short) %v718_v8, 128 }
 0x154   :  { %785 = vxpose.xlu0.b32.start [1/4] (short) %v707_v43, 128 }
 0x155   :  { %817 = vxpose.xlu1.b32.start [1/4] (short) %v708_v45, 128 }
 0x158   :  { %786 = vxpose.xlu0.b32.cont [2/4] (short) %v711_v25, 128 }
 0x159   :  { %818 = vxpose.xlu1.b32.cont [2/4] (short) %v712_v46, 128 }
 0x15c   :  { %787 = vxpose.xlu0.b32.cont [3/4] (short) %v715_v35, 128 }
 0x15d   :  { %819 = vxpose.xlu1.b32.cont [3/4] (short) %v716_v17, 128 }
 0x160   :  { %788 = vxpose.xlu0.b32.end [4/4] (short) %v719_v44, 128 }
 0x161   :  { %820 = vxpose.xlu1.b32.end [4/4] (short) %v720_v21, 128 }
 0x197   :  { %v737_v12 = vpop.trf.xlu0 }
 0x198   :  { %v769_v47 = vpop.trf.xlu1 }
 0x19b   :  { %v738_v19 = vpop.trf.xlu0 }
 0x19c   :  { %v849_v40 = vpack.c.bf16 %v738_v19, %v737_v12  ;;  %v770_v50 = vpop.trf.xlu1 }
 0x19d   :  { %v857_v24 = vpack.c.bf16 %v770_v50, %v769_v47 }
 0x19e   :  { %882 = vst.msk [vmem:[#allocation2] sm:$0xff] %vm881_vm3, %v849_v40 }
 0x19f   :  { %v739_v49 = vpop.trf.xlu0  ;;  %890 = vst.msk [vmem:[#allocation2 + $0x40] sm:$0xff] %vm881_vm3, %v857_v24 }
 0x1a0   :  { %v771_v23 = vpop.trf.xlu1 }
 0x1a3   :  { %v740_v39 = vpop.trf.xlu0 }
 0x1a4   :  { %v850_v42 = vpack.c.bf16 %v740_v39, %v739_v49  ;;  %v772_v61 = vpop.trf.xlu1 }
 0x1a5   :  { %v916_v11 = vld [vmem:[#allocation2] sm:$0xff]  ;;  %v858_v26 = vpack.c.bf16 %v772_v61, %v771_v23 }
 0x1a6   :  { %883 = vst.msk [vmem:[#allocation2 + $0x8] sm:$0xff] %vm881_vm3, %v850_v42  ;;  %v10891_v63 = vld [vmem:[#allocation2 + $0x40] sm:$0xff]  ;;  %v962_v13 = vshll.u32 %v916_v11, 16  ;;  %v960_v31 = vshrl.u32 %v916_v11, 16 }
 0x1a7   :  { %v741_v0 = vpop.trf.xlu0  ;;  %v2547_v1 = vld [vmem:[#allocation2] sm:$0xc0]  ;;  %891 = vst.msk [vmem:[#allocation2 + $0x48] sm:$0xff] %vm881_vm3, %v858_v26  ;;  %v10895_v10 = vshrl.u32 %v10891_v63, 16  ;;  %v10898_v52 = vshll.u32 %v10891_v63, 16 }
 0x1a8   :  { %v773_v51 = vpop.trf.xlu1  ;;  %v2556_v14 = vshrl.u32 %v2547_v1, 16  ;;  %v2559_v16 = vshll.u32 %v2547_v1, 16  ;;  %v964_v4 = vrot.slane %v962_v13, 1  ;;  %v10904_v3 = vld [vmem:[#allocation2] sm:$0x80]  ;;  %v10354_v1 = vld [vmem:[%s13134_s3 + $0x48] sm:$0xff]  }
 0x1a9   :  { %v3724_v53 = vrot.slane %v10895_v10, 7  ;;  %v3700_v56 = vshrl.u32 %v10904_v3, 16 }
 0x1aa   :  { %v2558_v6 = vrot.slane %v2556_v14, 6  ;;  %v2561_v5 = vrot.slane %v2559_v16, 7  ;;  %v965_v57 = vor.u32 %v964_v4, %v960_v31 }
 0x1ab   :  { %v742_v2 = vpop.trf.xlu0  ;;  %v10902_v27 = vor.u32 %v3724_v53, %v10898_v52  ;;  %v3702_v46 = vrot.slane %v3700_v56, 7 }
 0x1ac   :  { %v851_v28 = vpack.c.bf16 %v742_v2, %v741_v0  ;;  %v774_v30 = vpop.trf.xlu1  ;;  %v2562_v58 = vor.u32 %v2561_v5, %v2558_v6  ;;  %v10985_v5 = vld [vmem:[%s13134_s3 + $0x50] sm:$0xff]  }
 0x1ad   :  { %v10906_v29 = vld [vmem:[#allocation2 + $0x8] sm:$0xff]  ;;  %v859_v33 = vpack.c.bf16 %v774_v30, %v773_v51 }
 0x1ae   :  { %884 = vst.msk [vmem:[#allocation2 + $0x10] sm:$0xff] %vm881_vm3, %v851_v28  ;;  %v967_v54 = vshll.u32 %v10906_v29, 16  ;;  %v10911_v55 = vshrl.u32 %v10906_v29, 16  ;;  %v10913_v32 = vld [vmem:[#allocation2 + $0x48] sm:$0xff] }
 0x1af   :  { %v743_v34 = vpop.trf.xlu0  ;;  %892 = vst.msk [vmem:[#allocation2 + $0x50] sm:$0xff] %vm881_vm3, %v859_v33  ;;  %v10917_v37 = vshrl.u32 %v10913_v32, 16  ;;  %v10922_v38 = vshll.u32 %v10913_v32, 16 }
 0x1b0   :  { %v969_v7 = vrot.slane %v967_v54, 1  ;;  %v2563_v8 = vrot.slane %v10911_v55, 6  ;;  %v2564_v9 = vrot.slane %v967_v54, 7  ;;  %v775_v36 = vpop.trf.xlu1  ;;  %v3703_v22 = vrot.slane %v10911_v55, 7 }
 0x1b1   :  { %v3727_v59 = vrot.slane %v10917_v37, 7 }
 0x1b2   :  { %v970_v41 = vsel %vm958_vm4, %v965_v57, %v969_v7  ;;  %v2565_v20 = vor.u32 %v2564_v9, %v2563_v8  ;;  %v3704_v15 = vor.u32 %v3703_v22, %v967_v54  ;;  %v973_v50 = vor.u32 %v10911_v55, %v969_v7 }
 0x1b3   :  { %9141 = vmatprep.mubr.msk.bf16.mxu1 %vm881_vm3, %v970_v41  ;;  %v744_v43 = vpop.trf.xlu0  ;;  %v3728_v17 = vor.u32 %v3727_v59, %v10922_v38 }
 0x1b4   :  { %v852_v45 = vpack.c.bf16 %v744_v43, %v743_v34  ;;  %v2566_v25 = vsel %vm2554_vm5, %v2562_v58, %v2565_v20  ;;  %v776_v62 = vpop.trf.xlu1  ;;  %v10941_v12 = vsel %vm3698_vm6, %v3702_v46, %v3704_v15 }
 0x1b5   :  { %9345 = vmatprep.mubr.msk.bf16.mxu0 %vm881_vm3, %v2566_v25  ;;  %v10930_v35 = vld [vmem:[#allocation2 + $0x10] sm:$0xff]  ;;  %v860_v60 = vpack.c.bf16 %v776_v62, %v775_v36  ;;  %13168 = vst [vmem:[#allocation7_spill] sm:$0xff] %v10941_v12  ;;  %v10948_v40 = vsel %vm3698_vm6, %v3724_v53, %v3728_v17 }
 0x1b6   :  { %885 = vst.msk [vmem:[#allocation2 + $0x18] sm:$0xff] %vm881_vm3, %v852_v45  ;;  %v975_v48 = vshll.u32 %v10930_v35, 16  ;;  %v10936_v44 = vshrl.u32 %v10930_v35, 16  ;;  %v10938_v21 = vld [vmem:[#allocation2 + $0x50] sm:$0xff]  ;;  %13169 = vst [vmem:[#allocation8_spill] sm:$0xff] %v10948_v40  ;;  %v10356_v45 = vld [vmem:[%s13134_s3] sm:$0xff]  }
 0x1b7   :  { %v745_v47 = vpop.trf.xlu0  ;;  %893 = vst.msk [vmem:[#allocation2 + $0x58] sm:$0xff] %vm881_vm3, %v860_v60  ;;  %v10945_v19 = vshrl.u32 %v10938_v21, 16  ;;  %v10953_v42 = vshll.u32 %v10938_v21, 16  ;;  %9205 = vmatprep.subr.bf16.mxu1 %v10356_v45 }
 0x1b8   :  { %v977_v24 = vrot.slane %v975_v48, 1  ;;  %v2567_v49 = vrot.slane %v10936_v44, 6  ;;  %v2568_v23 = vrot.slane %v975_v48, 7  ;;  %v777_v39 = vpop.trf.xlu1  ;;  %v3706_v26 = vrot.slane %v10936_v44, 7 }
 0x1b9   :  { %v3730_v13 = vrot.slane %v10945_v19, 7 }
 0x1ba   :  { %v978_v61 = vsel %vm958_vm4, %v973_v50, %v977_v24  ;;  %v2569_v11 = vor.u32 %v2568_v23, %v2567_v49  ;;  %v3707_v16 = vor.u32 %v3706_v26, %v975_v48  ;;  %v981_v6 = vor.u32 %v10936_v44, %v977_v24  ;;  %v10358_v24 = vld [vmem:[%s13134_s3 + $0x8] sm:$0xff]  }
 0x1bb   :  { %9142 = vmatmul.mubr.msk.bf16.vlgmr.msra.gmra.mrb[32].mxu1 %vm881_vm3, %v978_v61  ;;  %v746_v0 = vpop.trf.xlu0  ;;  %v3731_v4 = vor.u32 %v3730_v13, %v10953_v42 }
 0x1bc   :  { %v853_v51 = vpack.c.bf16 %v746_v0, %v745_v47  ;;  %v2570_v53 = vsel %vm2554_vm5, %v2565_v20, %v2569_v11  ;;  %v778_v14 = vpop.trf.xlu1  ;;  %v10978_v54 = vsel %vm3698_vm6, %v3703_v22, %v3707_v16  ;;  %9206 = vmatpush3.bf16.msra.mxu1 %v10356_v45 }
 0x1bd   :  { %9346 = vmatmul.mubr.msk.bf16.vlgmr.msra.gmra.mrb[32].mxu0 %vm881_vm3, %v2570_v53  ;;  %v10964_v2 = vld [vmem:[#allocation2 + $0x18] sm:$0xff]  ;;  %v861_v28 = vpack.c.bf16 %v778_v14, %v777_v39  ;;  %13170 = vst [vmem:[#allocation9_spill] sm:$0xff] %v10978_v54  ;;  %v10988_v34 = vsel %vm3698_vm6, %v3727_v59, %v3731_v4  ;;  %9207 = vmatprep.subr.bf16.mxu1 %v10358_v24 }
 0x1be   :  { %886 = vst.msk [vmem:[#allocation2 + $0x20] sm:$0xff] %vm881_vm3, %v853_v51  ;;  %v983_v30 = vshll.u32 %v10964_v2, 16  ;;  %v10972_v31 = vshrl.u32 %v10964_v2, 16  ;;  %9410 = vmatpush3.bf16.msra.mxu0 %v10877_v18  ;;  %v10975_v33 = vld [vmem:[#allocation2 + $0x58] sm:$0xff]  ;;  %13171 = vst [vmem:[#allocation10_spill] sm:$0xff] %v10988_v34 }
 0x1bf   :  { %v747_v55 = vpop.trf.xlu0  ;;  %894 = vst.msk [vmem:[#allocation2 + $0x60] sm:$0xff] %vm881_vm3, %v861_v28  ;;  %9411 = vmatprep.subr.bf16.mxu0 %v10354_v1  ;;  %v10992_v8 = vshrl.u32 %v10975_v33, 16  ;;  %v10996_v41 = vshll.u32 %v10975_v33, 16 }
 0x1c0   :  { %v985_v18 = vrot.slane %v983_v30, 1  ;;  %v2571_v56 = vrot.slane %v10972_v31, 6  ;;  %v2572_v57 = vrot.slane %v983_v30, 7  ;;  %v779_v7 = vpop.trf.xlu1  ;;  %v3709_v20 = vrot.slane %v10972_v31, 7  ;;  %9208 = vmatpush3.bf16.msra.mxu1 %v10358_v24 }
 0x1c1   :  { %v3733_v25 = vrot.slane %v10992_v8, 7 }
 0x1c2   :  { %v986_v9 = vsel %vm958_vm4, %v981_v6, %v985_v18  ;;  %v2573_v36 = vor.u32 %v2572_v57, %v2571_v56  ;;  %9412 = vmatpush3.bf16.msra.mxu0 %v10354_v1  ;;  %v3710_v15 = vor.u32 %v3709_v20, %v983_v30  ;;  %v989_v50 = vor.u32 %v10972_v31, %v985_v18 }
 0x1c3   :  { %9145 = vmatprep.mubr.msk.bf16.mxu1 %vm881_vm3, %v986_v9  ;;  %v748_v58 = vpop.trf.xlu0  ;;  %9477 = vmatprep.subr.bf16.mxu0 %v10985_v5  ;;  %v3734_v44 = vor.u32 %v3733_v25, %v10996_v41 }
 0x1c4   :  { %v854_v22 = vpack.c.bf16 %v748_v58, %v747_v55  ;;  %v2574_v43 = vsel %vm2554_vm5, %v2569_v11, %v2573_v36  ;;  %v780_v59 = vpop.trf.xlu1  ;;  %v11023_v49 = vsel %vm3698_vm6, %v3706_v26, %v3710_v15 }
 0x1c5   :  { %9349 = vmatprep.mubr.msk.bf16.mxu0 %vm881_vm3, %v2574_v43  ;;  %v11007_v62 = vld [vmem:[#allocation2 + $0x20] sm:$0xff]  ;;  %v862_v46 = vpack.c.bf16 %v780_v59, %v779_v7  ;;  %13172 = vst [vmem:[#allocation11_spill] sm:$0xff] %v11023_v49  ;;  %v11038_v16 = vsel %vm3698_vm6, %v3730_v13, %v3734_v44 }
 0x1c6   :  { %887 = vst.msk [vmem:[#allocation2 + $0x28] sm:$0xff] %vm881_vm3, %v854_v22  ;;  %v991_v60 = vshll.u32 %v11007_v62, 16  ;;  %v11012_v17 = vshrl.u32 %v11007_v62, 16  ;;  %v11014_v48 = vld [vmem:[#allocation2 + $0x60] sm:$0xff]  ;;  %13173 = vst [vmem:[#allocation12_spill] sm:$0xff] %v11038_v16 }
 0x1c7   :  { %v749_v47 = vpop.trf.xlu0  ;;  %895 = vst.msk [vmem:[#allocation2 + $0x68] sm:$0xff] %vm881_vm3, %v862_v46  ;;  %v11027_v0 = vshrl.u32 %v11014_v48, 16  ;;  %v11033_v26 = vshll.u32 %v11014_v48, 16 }
 0x1c8   :  { %v993_v23 = vrot.slane %v991_v60, 1  ;;  %v2575_v39 = vrot.slane %v11012_v17, 6  ;;  %v2576_v61 = vrot.slane %v991_v60, 7  ;;  %v781_v11 = vpop.trf.xlu1  ;;  %v3712_v53 = vrot.slane %v11012_v17, 7 }
 0x1c9   :  { %v3736_v55 = vrot.slane %v11027_v0, 7 }
 0x1ca   :  { %v994_v1 = vsel %vm958_vm4, %v989_v50, %v993_v23  ;;  %v2577_v51 = vor.u32 %v2576_v61, %v2575_v39  ;;  %v3713_v31 = vor.u32 %v3712_v53, %v991_v60 }
 0x1cb   :  { %9146 = vmatmul.mubr.msk.bf16.gmra.mrb[36].mxu1 %vm881_vm3, %v994_v1  ;;  %v750_v14 = vpop.trf.xlu0  ;;  %v3737_v58 = vor.u32 %v3736_v55, %v11033_v26 }
 0x1cc   :  { %v855_v28 = vpack.c.bf16 %v750_v14, %v749_v47  ;;  %v2578_v4 = vsel %vm2554_vm5, %v2573_v36, %v2577_v51  ;;  %v782_v30 = vpop.trf.xlu1  ;;  %v11053_v7 = vsel %vm3698_vm6, %v3709_v20, %v3713_v31  ;;  %v997_v36 = vor.u32 %v11012_v17, %v993_v23 }
 0x1cd   :  { %9350 = vmatmul.mubr.msk.bf16.gmra.mrb[36].mxu0 %vm881_vm3, %v2578_v4  ;;  %v11043_v6 = vld [vmem:[#allocation2 + $0x28] sm:$0xff]  ;;  %v863_v18 = vpack.c.bf16 %v782_v30, %v781_v11  ;;  %13174 = vst [vmem:[#allocation13_spill] sm:$0xff] %v11053_v7  ;;  %v11069_v47 = vsel %vm3698_vm6, %v3733_v25, %v3737_v58 }
 0x1ce   :  { %888 = vst.msk [vmem:[#allocation2 + $0x30] sm:$0xff] %vm881_vm3, %v855_v28  ;;  %v999_v56 = vshll.u32 %v11043_v6, 16  ;;  %v11048_v13 = vshrl.u32 %v11043_v6, 16  ;;  %v11050_v57 = vld [vmem:[#allocation2 + $0x68] sm:$0xff]  ;;  %13175 = vst [vmem:[#allocation14_spill] sm:$0xff] %v11069_v47 }
 0x1cf   :  { %v751_v9 = vpop.trf.xlu0  ;;  %896 = vst.msk [vmem:[#allocation2 + $0x70] sm:$0xff] %vm881_vm3, %v863_v18  ;;  %v11060_v46 = vshrl.u32 %v11050_v57, 16  ;;  %v11066_v44 = vshll.u32 %v11050_v57, 16 }
 0x1d0   :  { %v1001_v22 = vrot.slane %v999_v56, 1  ;;  %v2579_v43 = vrot.slane %v11048_v13, 6  ;;  %v2580_v59 = vrot.slane %v999_v56, 7  ;;  %v783_v45 = vpop.trf.xlu1  ;;  %v3715_v20 = vrot.slane %v11048_v13, 7 }
 0x1d1   :  { %v3739_v61 = vrot.slane %v11060_v46, 7 }
 0x1d2   :  { %v1002_v15 = vsel %vm958_vm4, %v997_v36, %v1001_v22  ;;  %v2581_v60 = vor.u32 %v2580_v59, %v2579_v43  ;;  %v3716_v39 = vor.u32 %v3715_v20, %v999_v56  ;;  %v1005_v30 = vor.u32 %v11048_v13, %v1001_v22 }
 0x1d3   :  { %9149 = vmatprep.mubr.msk.bf16.mxu1 %vm881_vm3, %v1002_v15  ;;  %v752_v17 = vpop.trf.xlu0  ;;  %v3740_v31 = vor.u32 %v3739_v61, %v11066_v44  ;;  %v1025_v22 = vrot.slane %v10898_v52, 1 }
 0x1d4   :  { %v856_v50 = vpack.c.bf16 %v752_v17, %v751_v9  ;;  %v2582_v24 = vsel %vm2554_vm5, %v2577_v51, %v2581_v60  ;;  %v784_v23 = vpop.trf.xlu1  ;;  %v11084_v51 = vsel %vm3698_vm6, %v3712_v53, %v3716_v39 }
 0x1d5   :  { %9353 = vmatprep.mubr.msk.bf16.mxu0 %vm881_vm3, %v2582_v24  ;;  %v11074_v11 = vld [vmem:[#allocation2 + $0x30] sm:$0xff]  ;;  %v864_v1 = vpack.c.bf16 %v784_v23, %v783_v45  ;;  %13176 = vst [vmem:[#allocation15_spill] sm:$0xff] %v11084_v51  ;;  %v2591_v45 = vrot.slane %v10895_v10, 6  ;;  %v11102_v17 = vsel %vm3698_vm6, %v3736_v55, %v3740_v31  ;;  %v1029_v31 = vor.u32 %v10895_v10, %v1025_v22 }
 0x1d6   :  { %889 = vst.msk [vmem:[#allocation2 + $0x38] sm:$0xff] %vm881_vm3, %v856_v50  ;;  %v1007_v14 = vshll.u32 %v11074_v11, 16  ;;  %v11079_v28 = vshrl.u32 %v11074_v11, 16  ;;  %v11081_v25 = vld [vmem:[#allocation2 + $0x70] sm:$0xff]  ;;  %13178 = vst [vmem:[#allocation17_spill] sm:$0xff] %v11102_v17 }
 0x1d7   :  { %v801_v4 = vpop.trf.xlu0  ;;  %897 = vst.msk [vmem:[#allocation2 + $0x78] sm:$0xff] %vm881_vm3, %v864_v1  ;;  %v11091_v58 = vshrl.u32 %v11081_v25, 16  ;;  %v11099_v15 = vshll.u32 %v11081_v25, 16 }
 0x1d8   :  { %v1009_v18 = vrot.slane %v1007_v14, 1  ;;  %v2583_v56 = vrot.slane %v11079_v28, 6  ;;  %v2584_v9 = vrot.slane %v1007_v14, 7  ;;  %v833_v36 = vpop.trf.xlu1  ;;  %v3718_v53 = vrot.slane %v11079_v28, 7 }
 0x1d9   :  { %13177 = vst [vmem:[#allocation16_spill] sm:$0xff] %v11091_v58  ;;  %v13145_v1 = vrot.slane %v11091_v58, 7 }
 0x1da   :  { %v1010_v43 = vsel %vm958_vm4, %v1005_v30, %v1009_v18  ;;  %v2585_v59 = vor.u32 %v2584_v9, %v2583_v56  ;;  %v3719_v39 = vor.u32 %v3718_v53, %v1007_v14  ;;  %v2592_v56 = vrot.slane %v10898_v52, 7 }
 0x1db   :  { %9150 = vmatmul.mubr.msk.bf16.gmra.mrb[40].mxu1 %vm881_vm3, %v1010_v43  ;;  %v802_v13 = vpop.trf.xlu0  ;;  %v2595_v9 = vrot.slane %v10917_v37, 6  ;;  %v2596_v43 = vrot.slane %v10922_v38, 7  ;;  %v3743_v52 = vor.u32 %v13145_v1, %v11099_v15 }
 0x1dc   :  { %v865_v50 = vpack.c.bf16 %v802_v13, %v801_v4  ;;  %v2586_v24 = vsel %vm2554_vm5, %v2581_v60, %v2585_v59  ;;  %v834_v23 = vpop.trf.xlu1  ;;  %v11116_v14 = vsel %vm3698_vm6, %v3715_v20, %v3719_v39  ;;  %v1033_v13 = vrot.slane %v10922_v38, 1 }
 0x1dd   :  { %9354 = vmatmul.mubr.msk.bf16.gmra.mrb[40].mxu0 %vm881_vm3, %v2586_v24  ;;  %v11107_v30 = vld [vmem:[#allocation2 + $0x38] sm:$0xff]  ;;  %v873_v47 = vpack.c.bf16 %v834_v23, %v833_v36  ;;  %13179 = vst [vmem:[#allocation18_spill] sm:$0xff] %v11116_v14  ;;  %v1013_v36 = vor.u32 %v11079_v28, %v1009_v18  ;;  %v2593_v16 = vor.u32 %v2592_v56, %v2591_v45 }
 0x1de   :  { %898 = vst.msk [vmem:[#allocation2 + $0x80] sm:$0xff] %vm881_vm3, %v865_v50  ;;  %v1015_v55 = vshll.u32 %v11107_v30, 16  ;;  %v1019_v60 = vshrl.u32 %v11107_v30, 16  ;;  %v2597_v20 = vor.u32 %v2596_v43, %v2595_v9  ;;  %v11127_v38 = vsel %vm3698_vm6, %v3739_v61, %v3743_v52 }
 0x1df   :  { %v803_v4 = vpop.trf.xlu0  ;;  %906 = vst.msk [vmem:[#allocation2 + $0xc0] sm:$0xff] %vm881_vm3, %v873_v47  ;;  %13180 = vst [vmem:[#allocation19_spill] sm:$0xff] %v11127_v38  ;;  %v1034_v1 = vsel %vm958_vm4, %v1029_v31, %v1033_v13  ;;  %v2600_v61 = vrot.slane %v10953_v42, 7 }
 0x1e0   :  { %v1017_v50 = vrot.slane %v1015_v55, 1  ;;  %v2587_v24 = vrot.slane %v1019_v60, 6  ;;  %v2588_v23 = vrot.slane %v1015_v55, 7  ;;  %v835_v17 = vpop.trf.xlu1  ;;  %v3721_v39 = vrot.slane %v1019_v60, 7 }
 0x1e2   :  { %v1018_v34 = vsel %vm958_vm4, %v1013_v36, %v1017_v50  ;;  %v1021_v10 = vor.u32 %v1019_v60, %v1017_v50  ;;  %v2589_v40 = vor.u32 %v2588_v23, %v2587_v24  ;;  %v3722_v28 = vor.u32 %v3721_v39, %v1015_v55 }
 0x1e3   :  { %9153 = vmatprep.mubr.msk.bf16.mxu1 %vm881_vm3, %v1018_v34  ;;  %v804_v47 = vpop.trf.xlu0  ;;  %v11133_v18 = vsel %vm3698_vm6, %v3721_v39, %v10902_v27  ;;  %v2599_v34 = vrot.slane %v10945_v19, 6  ;;  %v1049_v24 = vrot.slane %v10996_v41, 1 }
 0x1e4   :  { %13181 = vst [vmem:[#allocation20_spill] sm:$0xff] %v11133_v18  ;;  %v866_v45 = vpack.c.bf16 %v804_v47, %v803_v4  ;;  %v1026_v56 = vsel %vm958_vm4, %v1021_v10, %v1025_v22  ;;  %v2590_v9 = vsel %vm2554_vm5, %v2585_v59, %v2589_v40  ;;  %v2594_v43 = vsel %vm2554_vm5, %v2589_v40, %v2593_v16  ;;  %v836_v60 = vpop.trf.xlu1 }
 0x1e5   :  { %9154 = vmatmul.mubr.msk.bf16.gmra.mrb[44].mxu1 %vm881_vm3, %v1026_v56  ;;  %9357 = vmatprep.mubr.msk.bf16.mxu0 %vm881_vm3, %v2590_v9  ;;  %v874_v55 = vpack.c.bf16 %v836_v60, %v835_v17  ;;  %v11142_v31 = vld [vmem:[#allocation2 + $0x80] sm:$0xff]  ;;  %v11145_v27 = vsel %vm3698_vm6, %v3718_v53, %v3722_v28  ;;  %v2598_v40 = vsel %vm2554_vm5, %v2593_v16, %v2597_v20  ;;  %v2603_v59 = vrot.slane %v10992_v8, 6 }
 0x1e6   :  { %13182 = vst [vmem:[#allocation21_spill] sm:$0xff] %v11145_v27  ;;  %899 = vst.msk [vmem:[#allocation2 + $0x88] sm:$0xff] %vm881_vm3, %v866_v45  ;;  %9157 = vmatprep.mubr.msk.bf16.mxu1 %vm881_vm3, %v1034_v1  ;;  %9358 = vmatmul.mubr.msk.bf16.gmra.mrb[44].mxu0 %vm881_vm3, %v2594_v43  ;;  %v2604_v22 = vrot.slane %v10996_v41, 7  ;;  %v11154_v4 = vshrl.u32 %v11142_v31, 16  ;;  %v1041_v53 = vrot.slane %v10953_v42, 1  ;;  %v1037_v1 = vor.u32 %v10917_v37, %v1033_v13 }
 0x1e7   :  { %v805_v17 = vpop.trf.xlu0  ;;  %9361 = vmatprep.mubr.msk.bf16.mxu0 %vm881_vm3, %v2598_v40  ;;  %907 = vst.msk [vmem:[#allocation2 + $0xc8] sm:$0xff] %vm881_vm3, %v874_v55  ;;  %v11161_v52 = vshll.u32 %v11142_v31, 16  ;;  %v2601_v23 = vor.u32 %v2600_v61, %v2599_v34  ;;  %v2607_v37 = vrot.slane %v11027_v0, 6  ;;  %v2608_v13 = vrot.slane %v11033_v26, 7 }
 0x1e8   :  { %v837_v16 = vpop.trf.xlu1  ;;  %v3748_v36 = vrot.slane %v11154_v4, 7  ;;  %v1045_v50 = vor.u32 %v10945_v19, %v1041_v53  ;;  %v2605_v39 = vor.u32 %v2604_v22, %v2603_v59  ;;  %v1042_v28 = vsel %vm958_vm4, %v1037_v1, %v1041_v53 }
 0x1e9   :  { %v2602_v41 = vsel %vm2554_vm5, %v2597_v20, %v2601_v23  ;;  %v1057_v56 = vrot.slane %v11033_v26, 1  ;;  %v2611_v34 = vrot.slane %v11060_v46, 6  ;;  %v2612_v61 = vrot.slane %v11066_v44, 7 }
 0x1ea   :  { %v11167_v10 = vor.u32 %v3748_v36, %v11161_v52  ;;  %v1050_v19 = vsel %vm958_vm4, %v1045_v50, %v1049_v24  ;;  %v2606_v60 = vsel %vm2554_vm5, %v2601_v23, %v2605_v39  ;;  %v1053_v26 = vor.u32 %v10992_v8, %v1049_v24 }
 0x1eb   :  { %v806_v42 = vpop.trf.xlu0  ;;  %v1061_v40 = vor.u32 %v11027_v0, %v1057_v56  ;;  %v1065_v59 = vrot.slane %v11066_v44, 1  ;;  %v2609_v22 = vor.u32 %v2608_v13, %v2607_v37  ;;  %v2615_v13 = vrot.slane %v11091_v58, 6 }
 0x1ec   :  { %13183 = vst [vmem:[#allocation22_spill] sm:$0xff] %v11167_v10  ;;  %v867_v47 = vpack.c.bf16 %v806_v42, %v805_v17  ;;  %v838_v45 = vpop.trf.xlu1  ;;  %v1058_v42 = vsel %vm958_vm4, %v1053_v26, %v1057_v56 }
 0x1ed   :  { %9158 = vmatmul.mubr.msk.bf16.gmra.mrb[48].mxu1 %vm881_vm3, %v1042_v28  ;;  %v875_v9 = vpack.c.bf16 %v838_v45, %v837_v16  ;;  %v11176_v43 = vld [vmem:[#allocation2 + $0x88] sm:$0xff]  ;;  %v2613_v16 = vor.u32 %v2612_v61, %v2611_v34  ;;  %v1066_v0 = vsel %vm958_vm4, %v1061_v40, %v1065_v59  ;;  %v2610_v24 = vsel %vm2554_vm5, %v2605_v39, %v2609_v22 }
 0x1ee   :  { %900 = vst.msk [vmem:[#allocation2 + $0x90] sm:$0xff] %vm881_vm3, %v867_v47  ;;  %9161 = vmatprep.mubr.msk.bf16.mxu1 %vm881_vm3, %v1050_v19  ;;  %9362 = vmatmul.mubr.msk.bf16.gmra.mrb[48].mxu0 %vm881_vm3, %v2602_v41  ;;  %v11185_v55 = vshrl.u32 %v11176_v43, 16  ;;  %v11193_v17 = vshll.u32 %v11176_v43, 16  ;;  %v11200_v47 = vld [vmem:[#allocation2 + $0x78] sm:$0xff]  ;;  %v2616_v45 = vrot.slane %v11099_v15, 7  ;;  %v1073_v39 = vrot.slane %v11099_v15, 1 }
 0x1ef   :  { %v807_v20 = vpop.trf.xlu0  ;;  %9365 = vmatprep.mubr.msk.bf16.mxu0 %vm881_vm3, %v2606_v60  ;;  %908 = vst.msk [vmem:[#allocation2 + $0xd0] sm:$0xff] %vm881_vm3, %v875_v9  ;;  %v11207_v37 = vshll.u32 %v11200_v47, 16  ;;  %v1069_v61 = vor.u32 %v11060_v46, %v1065_v59 }
 0x1f0   :  { %v839_v53 = vpop.trf.xlu1  ;;  %v3751_v1 = vrot.slane %v11185_v55, 7 }
 0x1f1   :  { %13185 = vst [vmem:[#allocation24_spill] sm:$0xff] %v11207_v37 }
 0x1f2   :  { %v3752_v50 = vor.u32 %v3751_v1, %v11193_v17 }
 0x1f3   :  { %v808_v23 = vpop.trf.xlu0 }
 0x1f4   :  { %v868_v8 = vpack.c.bf16 %v808_v23, %v807_v20  ;;  %v840_v44 = vpop.trf.xlu1  ;;  %v11203_v28 = vsel %vm3698_vm6, %v3748_v36, %v3752_v50  ;;  %v2614_v36 = vsel %vm2554_vm5, %v2609_v22, %v2613_v16  ;;  %v1077_v20 = vor.u32 %v11091_v58, %v1073_v39 }
 0x1f5   :  { %13184 = vst [vmem:[#allocation23_spill] sm:$0xff] %v11203_v28  ;;  %9162 = vmatmul.mubr.msk.bf16.gmra.mrb[52].mxu1 %vm881_vm3, %v1058_v42  ;;  %v11211_v19 = vld [vmem:[#allocation2 + $0x90] sm:$0xff]  ;;  %v876_v41 = vpack.c.bf16 %v840_v44, %v839_v53  ;;  %v1081_v22 = vrot.slane %v11207_v37, 1  ;;  %v11235_v53 = vor.u32 %v2616_v45, %v2615_v13  ;;  %v3167_v42 = vrot.slane %v10906_v29, 7 }
 0x1f6   :  { %901 = vst.msk [vmem:[#allocation2 + $0x98] sm:$0xff] %vm881_vm3, %v868_v8  ;;  %9165 = vmatprep.mubr.msk.bf16.mxu1 %vm881_vm3, %v1066_v0  ;;  %9366 = vmatmul.mubr.msk.bf16.gmra.mrb[52].mxu0 %vm881_vm3, %v2610_v24  ;;  %v11219_v56 = vshrl.u32 %v11211_v19, 16  ;;  %v11221_v9 = vld [vmem:[#allocation2 + $0xd0] sm:$0xff]  ;;  %v11231_v26 = vshll.u32 %v11211_v19, 16  ;;  %v3166_v8 = vrot.slane %v10904_v3, 7  ;;  %v1074_v44 = vsel %vm958_vm4, %v1069_v61, %v1073_v39 }
 0x1f7   :  { %v809_v60 = vpop.trf.xlu0  ;;  %9369 = vmatprep.mubr.msk.bf16.mxu0 %vm881_vm3, %v2614_v36  ;;  %909 = vst.msk [vmem:[#allocation2 + $0xd8] sm:$0xff] %vm881_vm3, %v876_v41  ;;  %v11226_v34 = vshrl.u32 %v11221_v9, 16  ;;  %13186 = vst [vmem:[#allocation25_spill] sm:$0xff] %v11235_v53  ;;  %v11238_v50 = vshll.u32 %v11221_v9, 16  ;;  %v11249_v13 = vshrl.u32 %v11200_v47, 16  ;;  %v1082_v29 = vsel %vm958_vm4, %v1077_v20, %v1081_v22 }
 0x1f8   :  { %v841_v15 = vpop.trf.xlu1  ;;  %v3754_v40 = vrot.slane %v11219_v56, 7  ;;  %v2618_v3 = vsel %vm2554_vm5, %v2613_v16, %v11235_v53  ;;  %v1089_v36 = vrot.slane %v11161_v52, 1 }
 0x1f9   :  { %v3778_v23 = vrot.slane %v11226_v34, 7  ;;  %13188 = vst [vmem:[#allocation27_spill] sm:$0xff] %v11249_v13  ;;  %v1085_v39 = vor.u32 %v11249_v13, %v1081_v22 }
 0x1fa   :  { %v3755_v46 = vor.u32 %v3754_v40, %v11231_v26 }
 0x1fb   :  { %v810_v59 = vpop.trf.xlu0  ;;  %v11245_v0 = vor.u32 %v3778_v23, %v11238_v50 }
 0x1fc   :  { %v869_v24 = vpack.c.bf16 %v810_v59, %v809_v60  ;;  %v842_v45 = vpop.trf.xlu1  ;;  %v11252_v41 = vsel %vm3698_vm6, %v3751_v1, %v3755_v46  ;;  %v3168_v1 = vsel %vm3165_vm7, %v3166_v8, %v3167_v42  ;;  %v1097_v46 = vrot.slane %v11193_v17, 1 }
 0x1fd   :  { %13187 = vst [vmem:[#allocation26_spill] sm:$0xff] %v11245_v0  ;;  %13189 = vst [vmem:[#allocation28_spill] sm:$0xff] %v11252_v41  ;;  %9166 = vmatmul.mubr.msk.bf16.gmra.mrb[56].mxu1 %vm881_vm3, %v1074_v44  ;;  %v11259_v0 = vld [vmem:[#allocation2 + $0x98] sm:$0xff]  ;;  %v877_v60 = vpack.c.bf16 %v842_v45, %v841_v15  ;;  %v1093_v15 = vor.u32 %v11154_v4, %v1089_v36  ;;  %v3169_v44 = vrot.slane %v10930_v35, 7 }
 0x1fe   :  { %902 = vst.msk [vmem:[#allocation2 + $0xa0] sm:$0xff] %vm881_vm3, %v869_v24  ;;  %9169 = vmatprep.mubr.msk.bf16.mxu1 %vm881_vm3, %v1082_v29  ;;  %9370 = vmatmul.mubr.msk.bf16.gmra.mrb[56].mxu0 %vm881_vm3, %v2618_v3  ;;  %v11267_v61 = vshrl.u32 %v11259_v0, 16  ;;  %v11269_v20 = vld [vmem:[#allocation2 + $0xd8] sm:$0xff]  ;;  %v11279_v8 = vshll.u32 %v11259_v0, 16  ;;  %v1090_v3 = vsel %vm958_vm4, %v1085_v39, %v1089_v36  ;;  %v1105_v36 = vrot.slane %v11231_v26, 1 }
 0x1ff   :  { %v811_v16 = vpop.trf.xlu0  ;;  %9413 = vmatprep.mubr.msk.bf16.mxu0 %vm881_vm3, %v3168_v1  ;;  %910 = vst.msk [vmem:[#allocation2 + $0xe0] sm:$0xff] %vm881_vm3, %v877_v60  ;;  %v11276_v59 = vshrl.u32 %v11269_v20, 16  ;;  %v11284_v45 = vshll.u32 %v11269_v20, 16  ;;  %v3171_v60 = vrot.slane %v10964_v2, 7  ;;  %v1098_v41 = vsel %vm958_vm4, %v1093_v15, %v1097_v46  ;;  %v10357_v35 = vld [vmem:[%s13134_s3 + $0x58] sm:$0xff]  }
 0x200   :  { %v843_v22 = vpop.trf.xlu1  ;;  %v3757_v24 = vrot.slane %v11267_v61, 7  ;;  %v3170_v2 = vsel %vm3165_vm7, %v3167_v42, %v3169_v44 }
 0x201   :  { %v3781_v29 = vrot.slane %v11276_v59, 7 }
 0x202   :  { %v3758_v1 = vor.u32 %v3757_v24, %v11279_v8 }
 0x203   :  { %v812_v53 = vpop.trf.xlu0  ;;  %v3782_v28 = vor.u32 %v3781_v29, %v11284_v45 }
 0x204   :  { %v870_v10 = vpack.c.bf16 %v812_v53, %v811_v16  ;;  %v844_v58 = vpop.trf.xlu1  ;;  %v11296_v38 = vsel %vm3698_vm6, %v3754_v40, %v3758_v1  ;;  %v3172_v53 = vsel %vm3165_vm7, %v3169_v44, %v3171_v60  ;;  %v1101_v40 = vor.u32 %v11185_v55, %v1097_v46  ;;  %v11330_v46 = vld [vmem:[%s13134_s3 + $0x60] sm:$0xff]  }
 0x205   :  { %13190 = vst [vmem:[#allocation29_spill] sm:$0xff] %v11296_v38  ;;  %9170 = vmatmul.mubr.msk.bf16.gmra.mrb[60].mxu1 %vm881_vm3, %v1090_v3  ;;  %v11301_v39 = vld [vmem:[#allocation2 + $0xa0] sm:$0xff]  ;;  %v878_v15 = vpack.c.bf16 %v844_v58, %v843_v22  ;;  %v11304_v37 = vsel %vm3698_vm6, %v3778_v23, %v3782_v28  ;;  %v1109_v58 = vor.u32 %v11219_v56, %v1105_v36  ;;  %13192 = vst [vmem:[#allocation31_spill] sm:$0xff] %v11330_v46 }
 0x206   :  { %13191 = vst [vmem:[#allocation30_spill] sm:$0xff] %v11304_v37  ;;  %903 = vst.msk [vmem:[#allocation2 + $0xa8] sm:$0xff] %vm881_vm3, %v870_v10  ;;  %9414 = vmatmul.mubr.msk.bf16.vlgmr.msra.gmra.mrb[32].mxu0 %vm881_vm3, %v3170_v2  ;;  %9173 = vmatprep.mubr.msk.bf16.mxu1 %vm881_vm3, %v1098_v41  ;;  %v11312_v42 = vshrl.u32 %v11301_v39, 16  ;;  %v11314_v16 = vld [vmem:[#allocation2 + $0xe0] sm:$0xff]  ;;  %v1113_v10 = vrot.slane %v11279_v8, 1  ;;  %v11325_v23 = vshll.u32 %v11301_v39, 16  ;;  %v1106_v2 = vsel %vm958_vm4, %v1101_v40, %v1105_v36 }
 0x207   :  { %v813_v3 = vpop.trf.xlu0  ;;  %9417 = vmatprep.mubr.msk.bf16.mxu0 %vm881_vm3, %v3172_v53  ;;  %9478 = vmatpush3.bf16.msra.mxu0 %v10985_v5  ;;  %911 = vst.msk [vmem:[#allocation2 + $0xe8] sm:$0xff] %vm881_vm3, %v878_v15  ;;  %v11322_v28 = vshrl.u32 %v11314_v16, 16  ;;  %v3173_v22 = vrot.slane %v11007_v62, 7  ;;  %v11335_v44 = vshll.u32 %v11314_v16, 16  ;;  %v3175_v15 = vrot.slane %v11043_v6, 7 }
 0x208   :  { %v845_v41 = vpop.trf.xlu1  ;;  %9479 = vmatprep.subr.bf16.mxu0 %v10357_v35  ;;  %v3760_v5 = vrot.slane %v11312_v42, 7  ;;  %v1114_v38 = vsel %vm958_vm4, %v1109_v58, %v1113_v10  ;;  %v1121_v40 = vrot.slane %v11325_v23, 1 }
 0x209   :  { %v3784_v1 = vrot.slane %v11322_v28, 7  ;;  %v3174_v36 = vsel %vm3165_vm7, %v3171_v60, %v3173_v22 }
 0x20a   :  { %v3761_v53 = vor.u32 %v3760_v5, %v11325_v23 }
 0x20b   :  { %v814_v37 = vpop.trf.xlu0  ;;  %9480 = vmatpush3.bf16.msra.mxu0 %v10357_v35  ;;  %v3785_v13 = vor.u32 %v3784_v1, %v11335_v44 }
 0x20c   :  { %v871_v18 = vpack.c.bf16 %v814_v37, %v813_v3  ;;  %v846_v27 = vpop.trf.xlu1  ;;  %9545 = vmatprep.subr.bf16.mxu0 %v11330_v46  ;;  %v11345_v62 = vsel %vm3698_vm6, %v3757_v24, %v3761_v53  ;;  %v3176_v37 = vsel %vm3165_vm7, %v3173_v22, %v3175_v15  ;;  %v1117_v24 = vor.u32 %v11267_v61, %v1113_v10 }
 0x20d   :  { %13193 = vst [vmem:[#allocation32_spill] sm:$0xff] %v11345_v62  ;;  %9174 = vmatmul.mubr.msk.bf16.gmra.mrb[64].mxu1 %vm881_vm3, %v1106_v2  ;;  %v11350_v14 = vld [vmem:[#allocation2 + $0xa8] sm:$0xff]  ;;  %v879_v51 = vpack.c.bf16 %v846_v27, %v845_v41  ;;  %v11353_v35 = vsel %vm3698_vm6, %v3781_v29, %v3785_v13  ;;  %v3177_v41 = vrot.slane %v11074_v11, 7 }
 0x20e   :  { %13194 = vst [vmem:[#allocation33_spill] sm:$0xff] %v11353_v35  ;;  %904 = vst.msk [vmem:[#allocation2 + $0xb0] sm:$0xff] %vm881_vm3, %v871_v18  ;;  %9418 = vmatmul.mubr.msk.bf16.gmra.mrb[36].mxu0 %vm881_vm3, %v3174_v36  ;;  %9177 = vmatprep.mubr.msk.bf16.mxu1 %vm881_vm3, %v1114_v38  ;;  %v11361_v60 = vshll.u32 %v11350_v14, 16  ;;  %v11364_v3 = vshrl.u32 %v11350_v14, 16  ;;  %v11366_v27 = vld [vmem:[#allocation2 + $0xe8] sm:$0xff]  ;;  %v1125_v18 = vor.u32 %v11312_v42, %v1121_v40  ;;  %v3179_v36 = vrot.slane %v11107_v30, 7 }
 0x20f   :  { %v815_v13 = vpop.trf.xlu0  ;;  %9421 = vmatprep.mubr.msk.bf16.mxu0 %vm881_vm3, %v3176_v37  ;;  %912 = vst.msk [vmem:[#allocation2 + $0xf0] sm:$0xff] %vm881_vm3, %v879_v51  ;;  %v11372_v29 = vshrl.u32 %v11366_v27, 16  ;;  %v11378_v22 = vshll.u32 %v11366_v27, 16  ;;  %v1122_v53 = vsel %vm958_vm4, %v1117_v24, %v1121_v40  ;;  %v3178_v40 = vsel %vm3165_vm7, %v3175_v15, %v3177_v41 }
 0x210   :  { %v1129_v38 = vrot.slane %v11361_v60, 1  ;;  %v847_v58 = vpop.trf.xlu1  ;;  %v3763_v10 = vrot.slane %v11364_v3, 7 }
 0x211   :  { %v13153_v2 = vrot.slane %v11372_v29, 7 }
 0x212   :  { %v3764_v51 = vor.u32 %v3763_v10, %v11361_v60  ;;  %v1130_v35 = vsel %vm958_vm4, %v1125_v18, %v1129_v38 }
 0x213   :  { %v816_v37 = vpop.trf.xlu0  ;;  %v3788_v62 = vor.u32 %v13153_v2, %v11378_v22 }
 0x214   :  { %v872_v7 = vpack.c.bf16 %v816_v37, %v815_v13  ;;  %v848_v46 = vpop.trf.xlu1  ;;  %v11389_v49 = vsel %vm3698_vm6, %v3760_v5, %v3764_v51  ;;  %v3180_v13 = vsel %vm3165_vm7, %v3177_v41, %v3179_v36  ;;  %v1133_v5 = vor.u32 %v11364_v3, %v1129_v38 }
 0x215   :  { %9178 = vmatmul.mubr.msk.bf16.gmra.mrb[68].mxu1 %vm881_vm3, %v1122_v53  ;;  %v11393_v24 = vld [vmem:[#allocation2 + $0xb0] sm:$0xff]  ;;  %v880_v54 = vpack.c.bf16 %v848_v46, %v847_v58  ;;  %v11396_v12 = vsel %vm3698_vm6, %v3784_v1, %v3788_v62  ;;  %v11409_v46 = vld [vmem:[#allocation2 + $0xc0] sm:$0xff]  ;;  %v11414_v1 = vld [vmem:[#allocation2 + $0xc8] sm:$0xff]  ;;  %v3181_v58 = vrot.slane %v10891_v63, 7  ;;  %v3183_v41 = vrot.slane %v10913_v32, 7 }
 0x216   :  { %13195 = vst [vmem:[#allocation34_spill] sm:$0xff] %v11396_v12  ;;  %905 = vst.msk [vmem:[#allocation2 + $0xb8] sm:$0xff] %vm881_vm3, %v872_v7  ;;  %9422 = vmatmul.mubr.msk.bf16.gmra.mrb[40].mxu0 %vm881_vm3, %v3178_v40  ;;  %9181 = vmatprep.mubr.msk.bf16.mxu1 %vm881_vm3, %v1130_v35  ;;  %v11404_v18 = vshll.u32 %v11393_v24, 16  ;;  %v11407_v15 = vshrl.u32 %v11393_v24, 16  ;;  %v11418_v35 = vshll.u32 %v11409_v46, 16  ;;  %v11425_v51 = vshrl.u32 %v11409_v46, 16 }
 0x217   :  { %9425 = vmatprep.mubr.msk.bf16.mxu0 %vm881_vm3, %v3180_v13  ;;  %913 = vst.msk [vmem:[#allocation2 + $0xf8] sm:$0xff] %vm881_vm3, %v880_v54  ;;  %v11428_v54 = vshll.u32 %v11414_v1, 16  ;;  %v3182_v40 = vsel %vm3165_vm7, %v3179_v36, %v3181_v58  ;;  %v3184_v32 = vsel %vm3165_vm7, %v3181_v58, %v3183_v41  ;;  %v3185_v58 = vrot.slane %v10938_v21, 7 }
 0x218   :  { %v1137_v7 = vrot.slane %v11404_v18, 1  ;;  %v3766_v62 = vrot.slane %v11407_v15, 7  ;;  %13196 = vst [vmem:[#allocation35_spill] sm:$0xff] %v11418_v35  ;;  %13197 = vst [vmem:[#allocation36_spill] sm:$0xff] %v11425_v51  ;;  %v1153_v63 = vrot.slane %v11418_v35, 1 }
 0x219   :  { %13198 = vst [vmem:[#allocation37_spill] sm:$0xff] %v11428_v54 }
 0x21a   :  { %v1138_v38 = vsel %vm958_vm4, %v1133_v5, %v1137_v7  ;;  %v3767_v53 = vor.u32 %v3766_v62, %v11404_v18  ;;  %v1141_v5 = vor.u32 %v11407_v15, %v1137_v7  ;;  %v1157_v36 = vor.u32 %v11425_v51, %v1153_v63 }
 0x21b   :  { %v3187_v7 = vrot.slane %v10975_v33, 7  ;;  %v3186_v33 = vsel %vm3165_vm7, %v3183_v41, %v3185_v58  ;;  %v2623_v41 = vrot.slane %v11154_v4, 6  ;;  %v2632_v4 = vrot.slane %v11231_v26, 7 }
 0x21c   :  { %v11431_v37 = vsel %vm3698_vm6, %v3763_v10, %v3767_v53  ;;  %v2636_v26 = vrot.slane %v11279_v8, 7 }
 0x21d   :  { %13199 = vst [vmem:[#allocation38_spill] sm:$0xff] %v11431_v37  ;;  %9182 = vmatmul.mubr.msk.bf16.gmra.mrb[72].mxu1 %vm881_vm3, %v1138_v38  ;;  %v11435_v13 = vld [vmem:[#allocation2 + $0xb8] sm:$0xff]  ;;  %v1161_v38 = vrot.slane %v11428_v54, 1  ;;  %v11457_v37 = vshrl.u32 %v11414_v1, 16 }
 0x21e   :  { %9426 = vmatmul.mubr.msk.bf16.gmra.mrb[44].mxu0 %vm881_vm3, %v3182_v40  ;;  %v11442_v2 = vshll.u32 %v11435_v13, 16  ;;  %v11445_v10 = vshrl.u32 %v11435_v13, 16 }
 0x21f   :  { %9429 = vmatprep.mubr.msk.bf16.mxu0 %vm881_vm3, %v3184_v32  ;;  %v1162_v54 = vsel %vm958_vm4, %v1157_v36, %v1161_v38  ;;  %v2624_v36 = vrot.slane %v11161_v52, 7  ;;  %v3193_v52 = vrot.slane %v11081_v25, 7 }
 0x220   :  { %v1145_v53 = vrot.slane %v11442_v2, 1  ;;  %v13160_v40 = vrot.slane %v11445_v10, 7 }
 0x222   :  { %v1146_v12 = vsel %vm958_vm4, %v1141_v5, %v1145_v53  ;;  %v1149_v35 = vor.u32 %v11445_v10, %v1145_v53  ;;  %v3770_v32 = vor.u32 %v13160_v40, %v11442_v2  ;;  %v1169_v5 = vrot.slane %v11238_v50, 1 }
 0x223   :  { %9185 = vmatprep.mubr.msk.bf16.mxu1 %vm881_vm3, %v1146_v12  ;;  %v3188_v53 = vsel %vm3165_vm7, %v3185_v58, %v3187_v7  ;;  %v1165_v12 = vor.u32 %v11457_v37, %v1161_v38  ;;  %v2627_v58 = vrot.slane %v11185_v55, 6  ;;  %v2631_v40 = vrot.slane %v11219_v56, 6 }
 0x224   :  { %v1154_v51 = vsel %vm958_vm4, %v1149_v35, %v1153_v63  ;;  %v11466_v21 = vsel %vm3698_vm6, %v3766_v62, %v3770_v32  ;;  %v3189_v35 = vrot.slane %v11014_v48, 7  ;;  %v1173_v62 = vor.u32 %v11226_v34, %v1169_v5 }
 0x225   :  { %9186 = vmatmul.mubr.msk.bf16.gmra.mrb[76].mxu1 %vm881_vm3, %v1154_v51  ;;  %v1177_v51 = vrot.slane %v11284_v45, 1  ;;  %v3191_v63 = vrot.slane %v11050_v57, 7  ;;  %v1170_v38 = vsel %vm958_vm4, %v1165_v12, %v1169_v5  ;;  %v11485_v32 = vor.u32 %v2624_v36, %v2623_v41  ;;  %v11501_v12 = vld [vmem:[#allocation2 + $0xf0] sm:$0xff] }
 0x226   :  { %9430 = vmatmul.mubr.msk.bf16.gmra.mrb[48].mxu0 %vm881_vm3, %v3186_v33  ;;  %9189 = vmatprep.mubr.msk.bf16.mxu1 %vm881_vm3, %v1162_v54  ;;  %v2628_v54 = vrot.slane %v11193_v17, 7  ;;  %v3190_v48 = vsel %vm3165_vm7, %v3187_v7, %v3189_v35  ;;  %v2635_v17 = vrot.slane %v11267_v61, 6  ;;  %v1185_v5 = vrot.slane %v11335_v44, 1 }
 0x227   :  { %9433 = vmatprep.mubr.msk.bf16.mxu0 %vm881_vm3, %v3188_v53  ;;  %v1178_v53 = vsel %vm958_vm4, %v1173_v62, %v1177_v51  ;;  %v3192_v57 = vsel %vm3165_vm7, %v3189_v35, %v3191_v63  ;;  %v1181_v7 = vor.u32 %v11276_v59, %v1177_v51  ;;  %v2633_v56 = vor.u32 %v2632_v4, %v2631_v40 }
 0x228   :  { %v2629_v33 = vor.u32 %v2628_v54, %v2627_v58  ;;  %v2639_v35 = vrot.slane %v11312_v42, 6  ;;  %v2640_v62 = vrot.slane %v11325_v23, 7  ;;  %v2643_v61 = vrot.slane %v11364_v3, 6  ;;  %v11520_v23 = vld [vmem:[#allocation2 + $0xf8] sm:$0xff] }
 0x229   :  { %v2644_v41 = vrot.slane %v11361_v60, 7  ;;  %v1189_v51 = vor.u32 %v11322_v28, %v1185_v5  ;;  %v1193_v40 = vrot.slane %v11378_v22, 1  ;;  %v2637_v36 = vor.u32 %v2636_v26, %v2635_v17 }
 0x22a   :  { %v11495_v55 = vsel %vm2554_vm5, %v11485_v32, %v2629_v33  ;;  %v11514_v8 = vsel %vm2554_vm5, %v2629_v33, %v2633_v56  ;;  %v3195_v58 = vrot.slane %v11200_v47, 7  ;;  %v11518_v42 = vshll.u32 %v11501_v12, 16 }
 0x22b   :  { %v2641_v3 = vor.u32 %v2640_v62, %v2639_v35  ;;  %v2645_v54 = vor.u32 %v2644_v41, %v2643_v61  ;;  %v11523_v60 = vsel %vm2554_vm5, %v2633_v56, %v2637_v36  ;;  %v2651_v33 = vrot.slane %v11445_v10, 6 }
 0x22c   :  { %v11530_v4 = vshrl.u32 %v11501_v12, 16  ;;  %v1194_v56 = vsel %vm958_vm4, %v1189_v51, %v1193_v40  ;;  %v11540_v26 = vshll.u32 %v11520_v23, 16  ;;  %v1201_v35 = vrot.slane %v11518_v42, 1  ;;  %v11556_v51 = vld [vmem:[#allocation2 + $0x100] sm:$0x1] }
 0x22d   :  { %9190 = vmatmul.mubr.msk.bf16.gmra.mrb[80].mxu1 %vm881_vm3, %v1170_v38  ;;  %v2647_v38 = vrot.slane %v11407_v15, 6  ;;  %v11536_v17 = vsel %vm2554_vm5, %v2641_v3, %v2645_v54  ;;  %v3196_v61 = vsel %vm3165_vm7, %v3193_v52, %v3195_v58  ;;  %v1197_v41 = vor.u32 %v11372_v29, %v1193_v40 }
 0x22e   :  { %9434 = vmatmul.mubr.msk.bf16.gmra.mrb[52].mxu0 %vm881_vm3, %v3190_v48  ;;  %9193 = vmatprep.mubr.msk.bf16.mxu1 %vm881_vm3, %v1178_v53  ;;  %v2648_v48 = vrot.slane %v11404_v18, 7  ;;  %v1186_v53 = vsel %vm958_vm4, %v1181_v7, %v1185_v5  ;;  %v2652_v18 = vrot.slane %v11442_v2, 7  ;;  %v3194_v7 = vsel %vm3165_vm7, %v3191_v63, %v3193_v52 }
 0x22f   :  { %9437 = vmatprep.mubr.msk.bf16.mxu0 %vm881_vm3, %v3192_v57  ;;  %v11533_v57 = vsel %vm2554_vm5, %v2637_v36, %v2641_v3  ;;  %v1205_v2 = vor.u32 %v11530_v4, %v1201_v35  ;;  %v1209_v63 = vrot.slane %v11540_v26, 1  ;;  %v2663_v3 = vrot.slane %v11226_v34, 6 }
 0x230   :  { %v2649_v15 = vor.u32 %v2648_v48, %v2647_v38  ;;  %v11549_v62 = vor.u32 %v2652_v18, %v2651_v33  ;;  %v2664_v52 = vrot.slane %v11238_v50, 7  ;;  %v3197_v40 = vrot.slane %v11142_v31, 7 }
 0x231   :  { %v1215_v38 = vshll.u32 %v11556_v51, 16  ;;  %v2668_v33 = vrot.slane %v11284_v45, 7  ;;  %v2671_v34 = vrot.slane %v11322_v28, 6  ;;  %v1210_v50 = vsel %vm958_vm4, %v1205_v2, %v1209_v63 }
 0x232   :  { %v11547_v5 = vsel %vm2554_vm5, %v2645_v54, %v2649_v15  ;;  %v11562_v36 = vsel %vm2554_vm5, %v2649_v15, %v11549_v62  ;;  %v2667_v54 = vrot.slane %v11276_v59, 6  ;;  %v11569_v48 = vor.u32 %v2664_v52, %v2663_v3 }
 0x233   :  { %v11575_v15 = vshrl.u32 %v11520_v23, 16  ;;  %v2672_v18 = vrot.slane %v11335_v44, 7  ;;  %v3198_v45 = vsel %vm3165_vm7, %v3195_v58, %v3197_v40  ;;  %v1217_v2 = vrot.slane %v1215_v38, 1  ;;  %v10360_v38 = vld [vmem:[%s13134_s3 + $0x20] sm:$0xff]  }
 0x234   :  { %v2669_v59 = vor.u32 %v2668_v33, %v2667_v54  ;;  %v3201_v52 = vrot.slane %v11211_v19, 7  ;;  %v10479_v33 = vld [vmem:[#allocation2] sm:$0xff]  ;;  %9273 = vmatprep.subr.bf16.mxu1 %v10360_v38 }
 0x235   :  { %9194 = vmatmul.mubr.msk.bf16.gmra.mrb[84].mxu1 %vm881_vm3, %v1186_v53  ;;  %v1202_v53 = vsel %vm958_vm4, %v1197_v41, %v1201_v35  ;;  %v2673_v41 = vor.u32 %v2672_v18, %v2671_v34  ;;  %v1213_v44 = vor.u32 %v11575_v15, %v1209_v63  ;;  %v3205_v34 = vrot.slane %v11301_v39, 7 }
 0x236   :  { %9438 = vmatmul.mubr.msk.bf16.gmra.mrb[56].mxu0 %vm881_vm3, %v3194_v7  ;;  %9197 = vmatprep.mubr.msk.bf16.mxu1 %vm881_vm3, %v1194_v56  ;;  %v3199_v56 = vrot.slane %v11176_v43, 7  ;;  %v2675_v7 = vrot.slane %v11372_v29, 6  ;;  %v11586_v35 = vsel %vm2554_vm5, %v11569_v48, %v2669_v59 }
 0x237   :  { %9441 = vmatprep.mubr.msk.bf16.mxu0 %vm881_vm3, %v3196_v61  ;;  %v2676_v61 = vrot.slane %v11378_v22, 7  ;;  %v11596_v22 = vsel %vm2554_vm5, %v2669_v59, %v2673_v41  ;;  %v1218_v54 = vsel %vm958_vm4, %v1213_v44, %v1217_v2  ;;  %v11619_v59 = vld [vmem:[#allocation2 + $0x8] sm:$0xff]  ;;  %v11639_v44 = vld [vmem:[#allocation2 + $0x18] sm:$0xff] }
 0x238   :  { %v3200_v28 = vsel %vm3165_vm7, %v3197_v40, %v3199_v56  ;;  %v3203_v40 = vrot.slane %v11259_v0, 7  ;;  %v3202_v63 = vsel %vm3165_vm7, %v3199_v56, %v3201_v52  ;;  %v10362_v56 = vld [vmem:[%s13134_s3 + $0x28] sm:$0xff]  }
 0x239   :  { %v11592_v3 = vor.u32 %v2676_v61, %v2675_v7  ;;  %v11624_v7 = vld [vmem:[#allocation2 + $0x10] sm:$0xff] }
 0x23a   :  { %v3206_v18 = vsel %vm3165_vm7, %v3203_v40, %v3205_v34 }
 0x23b   :  { %v11600_v58 = vsel %vm2554_vm5, %v2673_v41, %v11592_v3  ;;  %v3211_v41 = vrot.slane %v11435_v13, 7 }
 0x23d   :  { %9198 = vmatmul.mubr.msk.bf16.gmra.mrb[88].mxu1 %vm881_vm3, %v1202_v53  ;;  %v3204_v53 = vsel %vm3165_vm7, %v3201_v52, %v3203_v40  ;;  %v11644_v52 = vld [vmem:[#allocation2 + $0x20] sm:$0xff]  ;;  %v3213_v40 = vrot.slane %v11409_v46, 7 }
 0x23e   :  { %9442 = vmatmul.mubr.msk.bf16.gmra.mrb[60].mxu0 %vm881_vm3, %v3198_v45  ;;  %9201 = vmatprep.mubr.msk.bf16.mxu1 %vm881_vm3, %v1210_v50  ;;  %v3207_v50 = vrot.slane %v11350_v14, 7  ;;  %v3209_v45 = vrot.slane %v11393_v24, 7 }
 0x23f   :  { %9445 = vmatprep.mubr.msk.bf16.mxu0 %vm881_vm3, %v3200_v28  ;;  %v11636_v28 = vld [vmem:[%s13134_s3 + $0x30] sm:$0xff]  }
 0x240   :  { %v3208_v61 = vsel %vm3165_vm7, %v3205_v34, %v3207_v50  ;;  %v3210_v2 = vsel %vm3165_vm7, %v3207_v50, %v3209_v45  ;;  %v3219_v34 = vrot.slane %v11269_v20, 7  ;;  %v11666_v50 = vld [vmem:[#allocation2 + $0x40] sm:$0xff] }
 0x245   :  { %9202 = vmatmul.mubr.msk.bf16.gmra.mrb[92].mxu1 %vm881_vm3, %v1218_v54  ;;  %v3212_v54 = vsel %vm3165_vm7, %v3209_v45, %v3211_v41  ;;  %v11680_v45 = vld [vmem:[#allocation2 + $0x50] sm:$0xff] }
 0x246   :  { %9209 = vmatprep.mubr.msk.bf16.mxu1 %vm881_vm3, %v10479_v33  ;;  %9446 = vmatmul.mubr.msk.bf16.gmra.mrb[64].mxu0 %vm881_vm3, %v3202_v63  ;;  %v3215_v63 = vrot.slane %v11414_v1, 7 }
 0x247   :  { %9449 = vmatprep.mubr.msk.bf16.mxu0 %vm881_vm3, %v3204_v53  ;;  %v3217_v53 = vrot.slane %v11221_v9, 7 }
 0x248   :  { %v3216_v33 = vsel %vm3165_vm7, %v3213_v40, %v3215_v63 }
 0x24d   :  { %9210 = vmatmul.mubr.msk.bf16.vlgmr.msra.gmra.mrb[32].mxu1 %vm881_vm3, %v11619_v59 }
 0x24e   :  { %9213 = vmatprep.mubr.msk.bf16.mxu1 %vm881_vm3, %v11624_v7  ;;  %9450 = vmatmul.mubr.msk.bf16.gmra.mrb[68].mxu0 %vm881_vm3, %v3206_v18  ;;  %v3223_v18 = vrot.slane %v11366_v27, 7 }
 0x24f   :  { %9453 = vmatprep.mubr.msk.bf16.mxu0 %vm881_vm3, %v3208_v61  ;;  %9274 = vmatpush3.bf16.msra.mxu1 %v10360_v38  ;;  %v3214_v38 = vsel %vm3165_vm7, %v3211_v41, %v3213_v40  ;;  %v11675_v61 = vld [vmem:[#allocation2 + $0x48] sm:$0xff]  ;;  %v11689_v40 = vld [vmem:[#allocation2 + $0x58] sm:$0xff] }
 0x250   :  { %9275 = vmatprep.subr.bf16.mxu1 %v10362_v56 }
 0x253   :  { %9276 = vmatpush3.bf16.msra.mxu1 %v10362_v56  ;;  %v3221_v56 = vrot.slane %v11314_v16, 7 }
 0x254   :  { %9793 = vmatprep.subr.bf16.mxu1 %v11636_v28 }
 0x255   :  { %9214 = vmatmul.mubr.msk.bf16.gmra.mrb[36].mxu1 %vm881_vm3, %v11639_v44  ;;  %v3224_v41 = vsel %vm3165_vm7, %v3221_v56, %v3223_v18 }
 0x256   :  { %9217 = vmatprep.mubr.msk.bf16.mxu1 %vm881_vm3, %v11644_v52  ;;  %9454 = vmatmul.mubr.msk.bf16.gmra.mrb[72].mxu0 %vm881_vm3, %v3210_v2  ;;  %v3225_v2 = vrot.slane %v11501_v12, 7 }
 0x257   :  { %9457 = vmatprep.mubr.msk.bf16.mxu0 %vm881_vm3, %v3212_v54  ;;  %v3227_v54 = vrot.slane %v11520_v23, 7 }
 0x25d   :  { %9218 = vmatmul.mubr.msk.bf16.gmra.mrb[40].mxu1 %vm881_vm3, %v11043_v6  ;;  %v3218_v6 = vsel %vm3165_vm7, %v3215_v63, %v3217_v53  ;;  %v3226_v63 = vsel %vm3165_vm7, %v3223_v18, %v3225_v2  ;;  %v10361_v18 = vld [vmem:[%s13134_s3 + $0x68] sm:$0xff]  }
 0x25e   :  { %9221 = vmatprep.mubr.msk.bf16.mxu1 %vm881_vm3, %v11074_v11  ;;  %9458 = vmatmul.mubr.msk.bf16.gmra.mrb[76].mxu0 %vm881_vm3, %v3214_v38  ;;  %v3220_v11 = vsel %vm3165_vm7, %v3217_v53, %v3219_v34  ;;  %v11694_v38 = vld [vmem:[#allocation2 + $0x60] sm:$0xff] }
 0x25f   :  { %9461 = vmatprep.mubr.msk.bf16.mxu0 %vm881_vm3, %v3216_v33  ;;  %v3228_v33 = vsel %vm3165_vm7, %v3225_v2, %v3227_v54  ;;  %v11700_v53 = vld [vmem:[#allocation2 + $0x100] sm:$0x7f]  ;;  %v11729_v2 = vld [vmem:[%s13134_s3 + $0x70] sm:$0xff]  }
 0x265   :  { %9222 = vmatmul.mubr.msk.bf16.gmra.mrb[44].mxu1 %vm881_vm3, %v11107_v30  ;;  %v3222_v30 = vsel %vm3165_vm7, %v3219_v34, %v3221_v56  ;;  %v3229_v34 = vrot.slane %v11700_v53, 7  ;;  %v13200_v56 = vld [vmem:[#allocation7_spill] sm:$0xff] }
 0x266   :  { %9225 = vmatprep.mubr.msk.bf16.mxu1 %vm881_vm3, %v11666_v50  ;;  %9462 = vmatmul.mubr.msk.bf16.gmra.mrb[80].mxu0 %vm881_vm3, %v3218_v6  ;;  %v11704_v6 = vld [vmem:[#allocation2 + $0x68] sm:$0xff] }
 0x267   :  { %9465 = vmatprep.mubr.msk.bf16.mxu0 %vm881_vm3, %v3220_v11  ;;  %v3230_v11 = vsel %vm3165_vm7, %v3227_v54, %v3229_v34  ;;  %v13205_v54 = vld [vmem:[#allocation15_spill] sm:$0xff]  ;;  %v13210_v34 = vld [vmem:[#allocation10_spill] sm:$0xff] }
 0x26d   :  { %9226 = vmatmul.mubr.msk.bf16.gmra.mrb[48].mxu1 %vm881_vm3, %v11675_v61 }
 0x26e   :  { %9229 = vmatprep.mubr.msk.bf16.mxu1 %vm881_vm3, %v11680_v45  ;;  %9466 = vmatmul.mubr.msk.bf16.gmra.mrb[84].mxu0 %vm881_vm3, %v3222_v30  ;;  %v13201_v30 = vld [vmem:[#allocation9_spill] sm:$0xff] }
 0x26f   :  { %9469 = vmatprep.mubr.msk.bf16.mxu0 %vm881_vm3, %v3224_v41  ;;  %v13202_v41 = vld [vmem:[#allocation11_spill] sm:$0xff] }
 0x275   :  { %9230 = vmatmul.mubr.msk.bf16.gmra.mrb[52].mxu1 %vm881_vm3, %v11689_v40 }
 0x276   :  { %9233 = vmatprep.mubr.msk.bf16.mxu1 %vm881_vm3, %v11694_v38  ;;  %9470 = vmatmul.mubr.msk.bf16.gmra.mrb[88].mxu0 %vm881_vm3, %v3226_v63  ;;  %v13206_v63 = vld [vmem:[#allocation18_spill] sm:$0xff] }
 0x277   :  { %9473 = vmatprep.mubr.msk.bf16.mxu0 %vm881_vm3, %v3228_v33  ;;  %v13207_v33 = vld [vmem:[#allocation21_spill] sm:$0xff] }
 0x27d   :  { %9234 = vmatmul.mubr.msk.bf16.gmra.mrb[56].mxu1 %vm881_vm3, %v11704_v6 }
 0x27e   :  { %9237 = vmatprep.mubr.msk.bf16.mxu1 %vm881_vm3, %v11081_v25  ;;  %9474 = vmatmul.mubr.msk.bf16.gmra.mrb[92].mxu0 %vm881_vm3, %v3230_v11  ;;  %v13203_v25 = vld [vmem:[#allocation31_spill] sm:$0xff]  ;;  %v13211_v11 = vld [vmem:[#allocation12_spill] sm:$0xff] }
 0x27f   :  { %9481 = vmatprep.mubr.msk.bf16.mxu0 %vm881_vm3, %v13200_v56  ;;  %v13212_v56 = vld [vmem:[#allocation14_spill] sm:$0xff] }
 0x285   :  { %9238 = vmatmul.mubr.msk.bf16.gmra.mrb[60].mxu1 %vm881_vm3, %v11200_v47 }
 0x286   :  { %9241 = vmatprep.mubr.msk.bf16.mxu1 %vm881_vm3, %v11142_v31  ;;  %9482 = vmatmul.mubr.msk.bf16.vlgmr.msra.gmra.mrb[32].mxu0 %vm881_vm3, %v13201_v30  ;;  %v13204_v31 = vld [vmem:[#allocation13_spill] sm:$0xff] }
 0x287   :  { %9485 = vmatprep.mubr.msk.bf16.mxu0 %vm881_vm3, %v13202_v41  ;;  %9546 = vmatpush3.bf16.msra.mxu0 %v13203_v25  ;;  %v13214_v41 = vld [vmem:[#allocation17_spill] sm:$0xff]  ;;  %v13215_v25 = vld [vmem:[#allocation24_spill] sm:$0xff] }
 0x288   :  { %9547 = vmatprep.subr.bf16.mxu0 %v10361_v18 }
 0x28b   :  { %9548 = vmatpush3.bf16.msra.mxu0 %v10361_v18  ;;  %v13213_v18 = vld [vmem:[#allocation27_spill] sm:$0xff] }
 0x28c   :  { %9613 = vmatprep.subr.bf16.mxu0 %v11729_v2  ;;  %v3745_v30 = vrot.slane %v13213_v18, 7 }
 0x28d   :  { %9242 = vmatmul.mubr.msk.bf16.gmra.mrb[64].mxu1 %vm881_vm3, %v11176_v43  ;;  %v13208_v43 = vld [vmem:[#allocation20_spill] sm:$0xff] }
 0x28e   :  { %9245 = vmatprep.mubr.msk.bf16.mxu1 %vm881_vm3, %v11211_v19  ;;  %9486 = vmatmul.mubr.msk.bf16.gmra.mrb[36].mxu0 %vm881_vm3, %v13204_v31  ;;  %v13209_v19 = vld [vmem:[#allocation8_spill] sm:$0xff]  ;;  %v3746_v31 = vor.u32 %v3745_v30, %v13215_v25 }
 0x28f   :  { %9489 = vmatprep.mubr.msk.bf16.mxu0 %vm881_vm3, %v13205_v54  ;;  %v13216_v54 = vld [vmem:[#allocation19_spill] sm:$0xff] }
 0x295   :  { %9246 = vmatmul.mubr.msk.bf16.gmra.mrb[68].mxu1 %vm881_vm3, %v11259_v0 }
 0x296   :  { %9249 = vmatprep.mubr.msk.bf16.mxu1 %vm881_vm3, %v11301_v39  ;;  %9490 = vmatmul.mubr.msk.bf16.gmra.mrb[40].mxu0 %vm881_vm3, %v13206_v63 }
 0x297   :  { %9493 = vmatprep.mubr.msk.bf16.mxu0 %vm881_vm3, %v13207_v33 }
 0x29d   :  { %9250 = vmatmul.mubr.msk.bf16.gmra.mrb[72].mxu1 %vm881_vm3, %v11350_v14 }
 0x29e   :  { %9253 = vmatprep.mubr.msk.bf16.mxu1 %vm881_vm3, %v11393_v24  ;;  %9494 = vmatmul.mubr.msk.bf16.gmra.mrb[44].mxu0 %vm881_vm3, %v13208_v43  ;;  %v13219_v43 = vld [vmem:[#allocation22_spill] sm:$0xff] }
 0x29f   :  { %9497 = vmatprep.mubr.msk.bf16.mxu0 %vm881_vm3, %v13209_v19  ;;  %v3750_v19 = vsel %vm3698_vm6, %v3745_v30, %v13219_v43  ;;  %v13221_v30 = vld [vmem:[#allocation28_spill] sm:$0xff] }
 0x2a5   :  { %9254 = vmatmul.mubr.msk.bf16.gmra.mrb[76].mxu1 %vm881_vm3, %v11435_v13 }
 0x2a6   :  { %9257 = vmatprep.mubr.msk.bf16.mxu1 %vm881_vm3, %v11409_v46  ;;  %9498 = vmatmul.mubr.msk.bf16.gmra.mrb[48].mxu0 %vm881_vm3, %v13210_v34  ;;  %v2022_v34 = vrot.slane %v11619_v59, 1 }
 0x2a7   :  { %9501 = vmatprep.mubr.msk.bf16.mxu0 %vm881_vm3, %v13211_v11 }
 0x2ad   :  { %9258 = vmatmul.mubr.msk.bf16.gmra.mrb[80].mxu1 %vm881_vm3, %v11414_v1 }
 0x2ae   :  { %9261 = vmatprep.mubr.msk.bf16.mxu1 %vm881_vm3, %v11221_v9  ;;  %9502 = vmatmul.mubr.msk.bf16.gmra.mrb[52].mxu0 %vm881_vm3, %v13212_v56  ;;  %v13217_v9 = vld [vmem:[#allocation16_spill] sm:$0xff] }
 0x2af   :  { %9505 = vmatprep.mubr.msk.bf16.mxu0 %vm881_vm3, %v13214_v41  ;;  %v13218_v63 = vrot.slane %v13217_v9, 7  ;;  %v13222_v41 = vld [vmem:[#allocation29_spill] sm:$0xff] }
 0x2b1   :  { %v3747_v33 = vsel %vm3698_vm6, %v13218_v63, %v3746_v31  ;;  %v2024_v31 = vrot.slane %v11624_v7, 1  ;;  %v13223_v63 = vld [vmem:[#allocation32_spill] sm:$0xff]  ;;  %v2028_v7 = vrot.slane %v11644_v52, 1  ;;  %v3775_v52 = vrot.slane %v11457_v37, 7 }
 0x2b3   :  { %v2025_v59 = vsel %vm2020_vm8, %v2022_v34, %v2024_v31 }
 0x2b5   :  { %9262 = vmatmul.mubr.msk.bf16.gmra.mrb[84].mxu1 %vm881_vm3, %v11269_v20  ;;  %v13220_v20 = vld [vmem:[#allocation23_spill] sm:$0xff] }
 0x2b6   :  { %9265 = vmatprep.mubr.msk.bf16.mxu1 %vm881_vm3, %v11314_v16  ;;  %9506 = vmatmul.mubr.msk.bf16.gmra.mrb[56].mxu0 %vm881_vm3, %v13216_v54  ;;  %v1981_v16 = vld [vmem:[#allocation2] sm:$0xfe]  ;;  %v2026_v54 = vrot.slane %v11639_v44, 1  ;;  %v10491_v44 = vld [vmem:[%s13134_s3 + $0x38] sm:$0xff]  }
 0x2b7   :  { %9509 = vmatprep.mubr.msk.bf16.mxu0 %vm881_vm3, %v3747_v33  ;;  %v2021_v11 = vrot.slane %v1981_v16, 1  ;;  %v10492_v33 = vld [vmem:[#allocation2 + $0x28] sm:$0xff]  ;;  %v13224_v16 = vld [vmem:[#allocation36_spill] sm:$0xff] }
 0x2b8   :  { %v2027_v9 = vsel %vm2020_vm8, %v2024_v31, %v2026_v54  ;;  %v2030_v43 = vrot.slane %v10492_v33, 1  ;;  %v2036_v33 = vrot.slane %v11666_v50, 1  ;;  %v2040_v50 = vrot.slane %v11680_v45, 1  ;;  %v13232_v45 = vld [vmem:[#allocation34_spill] sm:$0xff] }
 0x2b9   :  { %v2023_v56 = vsel %vm2020_vm8, %v2021_v11, %v2022_v34  ;;  %v10493_v34 = vld [vmem:[#allocation2 + $0x30] sm:$0xff] }
 0x2ba   :  { %v2032_v11 = vrot.slane %v10493_v34, 1 }
 0x2bd   :  { %9266 = vmatmul.mubr.msk.bf16.gmra.mrb[88].mxu1 %vm881_vm3, %v11366_v27 }
 0x2be   :  { %9269 = vmatprep.mubr.msk.bf16.mxu1 %vm881_vm3, %v11501_v12  ;;  %9510 = vmatmul.mubr.msk.bf16.gmra.mrb[60].mxu0 %vm881_vm3, %v3750_v19  ;;  %v2029_v19 = vsel %vm2020_vm8, %v2026_v54, %v2028_v7  ;;  %v13227_v54 = vld [vmem:[#allocation37_spill] sm:$0xff] }
 0x2bf   :  { %9513 = vmatprep.mubr.msk.bf16.mxu0 %vm881_vm3, %v13220_v20  ;;  %v2031_v20 = vsel %vm2020_vm8, %v2028_v7, %v2030_v43  ;;  %v13228_v7 = vrot.slane %v11445_v10, 7 }
 0x2c5   :  { %9270 = vmatmul.mubr.msk.bf16.gmra.mrb[92].mxu1 %vm881_vm3, %v11520_v23 }
 0x2c6   :  { %9277 = vmatprep.mubr.msk.bf16.mxu1 %vm881_vm3, %v2023_v56  ;;  %9514 = vmatmul.mubr.msk.bf16.gmra.mrb[64].mxu0 %vm881_vm3, %v13221_v30  ;;  %v10494_v56 = vld [vmem:[#allocation2 + $0x38] sm:$0xff] }
 0x2c7   :  { %9517 = vmatprep.mubr.msk.bf16.mxu0 %vm881_vm3, %v13222_v41  ;;  %v2034_v30 = vrot.slane %v10494_v56, 1  ;;  %v13226_v41 = vld [vmem:[#allocation35_spill] sm:$0xff]  ;;  %v3790_v56 = vrot.slane %v11530_v4, 7 }
 0x2cd   :  { %9278 = vmatmul.mubr.msk.bf16.vlgmr.msra.gmra.mrb[32].mxu1 %vm881_vm3, %v2025_v59  ;;  %v3776_v59 = vor.u32 %v3775_v52, %v13227_v54 }
 0x2ce   :  { %9281 = vmatprep.mubr.msk.bf16.mxu1 %vm881_vm3, %v2027_v9  ;;  %9518 = vmatmul.mubr.msk.bf16.gmra.mrb[68].mxu0 %vm881_vm3, %v13223_v63  ;;  %v2033_v9 = vsel %vm2020_vm8, %v2030_v43, %v2032_v11  ;;  %v2035_v63 = vsel %vm2020_vm8, %v2032_v11, %v2034_v30  ;;  %v2038_v43 = vrot.slane %v11675_v61, 1  ;;  %v2042_v61 = vrot.slane %v11689_v40, 1 }
 0x2cf   :  { %9521 = vmatprep.mubr.msk.bf16.mxu0 %vm881_vm3, %v11389_v49  ;;  %9795 = vmatpush3.bf16.msra.mxu1 %v11636_v28  ;;  %v3772_v49 = vrot.slane %v13224_v16, 7  ;;  %v13225_v28 = vld [vmem:[#allocation38_spill] sm:$0xff]  ;;  %v2044_v40 = vrot.slane %v11694_v38, 1 }
 0x2d0   :  { %9794 = vmatprep.subr.bf16.mxu1 %v10491_v44  ;;  %v2039_v10 = vsel %vm2020_vm8, %v2036_v33, %v2038_v43  ;;  %v2041_v34 = vsel %vm2020_vm8, %v2038_v43, %v2040_v50  ;;  %v2043_v11 = vsel %vm2020_vm8, %v2040_v50, %v2042_v61  ;;  %v11887_v50 = vld [vmem:[#allocation2 + $0x8] sm:$0xe0] }
 0x2d1   :  { %v3773_v31 = vor.u32 %v3772_v49, %v13226_v41 }
 0x2d3   :  { %9796 = vmatpush3.bf16.msra.mxu1 %v10491_v44  ;;  %v3774_v44 = vsel %vm3698_vm6, %v13228_v7, %v3773_v31  ;;  %v11860_v31 = vld [vmem:[#allocation2 + $0x100] sm:$0xff] }
 0x2d5   :  { %9282 = vmatmul.mubr.msk.bf16.gmra.mrb[36].mxu1 %vm881_vm3, %v2029_v19  ;;  %v2037_v19 = vsel %vm2020_vm8, %v2034_v30, %v2036_v33  ;;  %v3793_v30 = vrot.slane %v11575_v15, 7  ;;  %v13233_v33 = vrot.slane %v11372_v29, 7  ;;  %v2050_v29 = vrot.slane %v11200_v47, 1 }
 0x2d6   :  { %9285 = vmatprep.mubr.msk.bf16.mxu1 %vm881_vm3, %v2031_v20  ;;  %9522 = vmatmul.mubr.msk.bf16.gmra.mrb[72].mxu0 %vm881_vm3, %v13225_v28  ;;  %v13229_v20 = vld [vmem:[#allocation26_spill] sm:$0xff] }
 0x2d7   :  { %9525 = vmatprep.mubr.msk.bf16.mxu0 %vm881_vm3, %v11466_v21  ;;  %v3777_v21 = vsel %vm3698_vm6, %v3772_v49, %v3776_v59  ;;  %v3780_v28 = vsel %vm3698_vm6, %v3775_v52, %v13229_v20  ;;  %v13230_v49 = vld [vmem:[#allocation30_spill] sm:$0xff]  ;;  %v13231_v52 = vld [vmem:[#allocation33_spill] sm:$0xff]  ;;  %v2046_v59 = vrot.slane %v11704_v6, 1  ;;  %v3794_v7 = vor.u32 %v3793_v30, %v11540_v26 }
 0x2d8   :  { %v13161_v6 = vshll.u32 %v11860_v31, 16  ;;  %v10495_v20 = vld [vmem:[#allocation2 + $0x70] sm:$0xff] }
 0x2dd   :  { %9286 = vmatmul.mubr.msk.bf16.gmra.mrb[40].mxu1 %vm881_vm3, %v2033_v9  ;;  %v3791_v9 = vor.u32 %v3790_v56, %v11518_v42 }
 0x2de   :  { %9289 = vmatprep.mubr.msk.bf16.mxu1 %vm881_vm3, %v2035_v63  ;;  %9526 = vmatmul.mubr.msk.bf16.gmra.mrb[76].mxu0 %vm881_vm3, %v3774_v44  ;;  %v13162_v63 = vshrl.u32 %v11860_v31, 16  ;;  %v2045_v44 = vsel %vm2020_vm8, %v2042_v61, %v2044_v40 }
 0x2df   :  { %9529 = vmatprep.mubr.msk.bf16.mxu0 %vm881_vm3, %v3777_v21  ;;  %v2047_v21 = vsel %vm2020_vm8, %v2044_v40, %v2046_v59  ;;  %v3792_v43 = vsel %vm3698_vm6, %v13233_v33, %v3791_v9  ;;  %v11901_v40 = vld [vmem:[#allocation2 + $0x20] sm:$0xff] }
 0x2e0   :  { %v3799_v38 = vrot.slane %v13162_v63, 7 }
 0x2e5   :  { %9290 = vmatmul.mubr.msk.bf16.gmra.mrb[44].mxu1 %vm881_vm3, %v2037_v19  ;;  %v3795_v19 = vsel %vm3698_vm6, %v3790_v56, %v3794_v7  ;;  %v10497_v7 = vld [vmem:[#allocation2 + $0x88] sm:$0xff] }
 0x2e6   :  { %9293 = vmatprep.mubr.msk.bf16.mxu1 %vm881_vm3, %v2039_v10  ;;  %9530 = vmatmul.mubr.msk.bf16.gmra.mrb[80].mxu0 %vm881_vm3, %v3780_v28  ;;  %v11882_v10 = vld [vmem:[#allocation2 + $0x10] sm:$0xff]  ;;  %v2048_v28 = vrot.slane %v10495_v20, 1 }
 0x2e7   :  { %9533 = vmatprep.mubr.msk.bf16.mxu0 %vm881_vm3, %v13230_v49  ;;  %v3802_v49 = vor.u32 %v13161_v6, %v3799_v38  ;;  %v4338_v61 = vrot.slane %v11882_v10, 5 }
 0x2e8   :  { %v2051_v56 = vsel %vm2020_vm8, %v2048_v28, %v2050_v29 }
 0x2ed   :  { %9294 = vmatmul.mubr.msk.bf16.gmra.mrb[48].mxu1 %vm881_vm3, %v2041_v34  ;;  %v2049_v34 = vsel %vm2020_vm8, %v2046_v59, %v2048_v28  ;;  %v10496_v59 = vld [vmem:[#allocation2 + $0x80] sm:$0xff]  ;;  %v11915_v28 = vld [vmem:[#allocation2 + $0x28] sm:$0xff] }
 0x2ee   :  { %9297 = vmatprep.mubr.msk.bf16.mxu1 %vm881_vm3, %v2043_v11  ;;  %9534 = vmatmul.mubr.msk.bf16.gmra.mrb[84].mxu0 %vm881_vm3, %v13231_v52  ;;  %v4337_v11 = vrot.slane %v11887_v50, 5  ;;  %v3803_v52 = vsel %vm3698_vm6, %v3793_v30, %v3802_v49  ;;  %v2052_v9 = vrot.slane %v10496_v59, 1  ;;  %v4342_v30 = vrot.slane %v11901_v40, 5  ;;  %v10498_v49 = vld [vmem:[#allocation2 + $0x90] sm:$0xff] }
 0x2ef   :  { %9537 = vmatprep.mubr.msk.bf16.mxu0 %vm881_vm3, %v13232_v45  ;;  %v11898_v45 = vld [vmem:[#allocation2 + $0x18] sm:$0xff] }
 0x2f0   :  { %v4339_v47 = vsel %vm4336_vm9, %v4337_v11, %v4338_v61  ;;  %v2053_v33 = vsel %vm2020_vm8, %v2050_v29, %v2052_v9  ;;  %v11919_v29 = vld [vmem:[#allocation2 + $0x30] sm:$0xff]  ;;  %v2058_v11 = vrot.slane %v11259_v0, 1 }
 0x2f5   :  { %9298 = vmatmul.mubr.msk.bf16.gmra.mrb[52].mxu1 %vm881_vm3, %v2045_v44  ;;  %v2054_v44 = vrot.slane %v10497_v7, 1  ;;  %v2060_v7 = vrot.slane %v11301_v39, 1  ;;  %v11953_v39 = vld [vmem:[#allocation2 + $0x48] sm:$0xff] }
 0x2f6   :  { %9301 = vmatprep.mubr.msk.bf16.mxu1 %vm881_vm3, %v2047_v21  ;;  %9538 = vmatmul.mubr.msk.bf16.gmra.mrb[88].mxu0 %vm881_vm3, %v3792_v43  ;;  %v4340_v21 = vrot.slane %v11898_v45, 5  ;;  %v10364_v43 = vld [vmem:[%s13134_s3 + $0x78] sm:$0xff]  }
 0x2f7   :  { %9541 = vmatprep.mubr.msk.bf16.mxu0 %vm881_vm3, %v3795_v19  ;;  %v2055_v38 = vsel %vm2020_vm8, %v2052_v9, %v2054_v44  ;;  %v11937_v9 = vld [vmem:[#allocation2 + $0x38] sm:$0xff] }
 0x2f8   :  { %v4341_v19 = vsel %vm4336_vm9, %v4338_v61, %v4340_v21  ;;  %v4343_v20 = vsel %vm4336_vm9, %v4340_v21, %v4342_v30  ;;  %v11924_v61 = vld [vmem:[%s13134_s3 + $0x80] sm:$0xff]   ;;  %v4348_v21 = vrot.slane %v11937_v9, 5 }
 0x2fd   :  { %9302 = vmatmul.mubr.msk.bf16.gmra.mrb[56].mxu1 %vm881_vm3, %v2049_v34  ;;  %v2056_v34 = vrot.slane %v10498_v49, 1  ;;  %v2064_v49 = vrot.slane %v11393_v24, 1 }
 0x2fe   :  { %9305 = vmatprep.mubr.msk.bf16.mxu1 %vm881_vm3, %v2051_v56  ;;  %9542 = vmatmul.mubr.msk.bf16.gmra.mrb[92].mxu0 %vm881_vm3, %v3803_v52  ;;  %v4344_v56 = vrot.slane %v11915_v28, 5  ;;  %v4346_v52 = vrot.slane %v11919_v29, 5 }
 0x2ff   :  { %9549 = vmatprep.mubr.msk.bf16.mxu0 %vm881_vm3, %v4339_v47  ;;  %v2057_v47 = vsel %vm2020_vm8, %v2054_v44, %v2056_v34  ;;  %v2062_v44 = vrot.slane %v11350_v14, 1 }
 0x300   :  { %v4345_v59 = vsel %vm4336_vm9, %v4342_v30, %v4344_v56  ;;  %v4347_v0 = vsel %vm4336_vm9, %v4344_v56, %v4346_v52  ;;  %v2061_v30 = vsel %vm2020_vm8, %v2058_v11, %v2060_v7  ;;  %v2066_v56 = vrot.slane %v11435_v13, 1 }
 0x301   :  { %v2068_v13 = vrot.slane %v11409_v46, 1 }
 0x305   :  { %9306 = vmatmul.mubr.msk.bf16.gmra.mrb[60].mxu1 %vm881_vm3, %v2053_v33  ;;  %v11943_v33 = vld [vmem:[#allocation2 + $0x40] sm:$0xff] }
 0x306   :  { %9309 = vmatprep.mubr.msk.bf16.mxu1 %vm881_vm3, %v2055_v38  ;;  %9550 = vmatmul.mubr.msk.bf16.vlgmr.msra.gmra.mrb[32].mxu0 %vm881_vm3, %v4341_v19  ;;  %v2063_v38 = vsel %vm2020_vm8, %v2060_v7, %v2062_v44  ;;  %v4349_v19 = vsel %vm4336_vm9, %v4346_v52, %v4348_v21  ;;  %v2065_v52 = vsel %vm2020_vm8, %v2062_v44, %v2064_v49  ;;  %v2070_v7 = vrot.slane %v11414_v1, 1  ;;  %v11988_v1 = vld [vmem:[#allocation2 + $0x70] sm:$0xff] }
 0x307   :  { %9553 = vmatprep.mubr.msk.bf16.mxu0 %vm881_vm3, %v4343_v20  ;;  %9614 = vmatpush3.bf16.msra.mxu0 %v11729_v2  ;;  %v2059_v2 = vsel %vm2020_vm8, %v2056_v34, %v2058_v11  ;;  %v11956_v20 = vld [vmem:[#allocation2 + $0x50] sm:$0xff]  ;;  %v4352_v34 = vrot.slane %v11953_v39, 5 }
 0x308   :  { %9615 = vmatprep.subr.bf16.mxu0 %v10364_v43  ;;  %v4354_v11 = vrot.slane %v11956_v20, 5 }
 0x30a   :  { %v4355_v24 = vsel %vm4336_vm9, %v4352_v34, %v4354_v11 }
 0x30b   :  { %9616 = vmatpush3.bf16.msra.mxu0 %v10364_v43  ;;  %v4350_v43 = vrot.slane %v11943_v33, 5 }
 0x30c   :  { %9681 = vmatprep.subr.bf16.mxu0 %v11924_v61 }
 0x30d   :  { %9310 = vmatmul.mubr.msk.bf16.gmra.mrb[64].mxu1 %vm881_vm3, %v2057_v47  ;;  %v4351_v14 = vsel %vm4336_vm9, %v4348_v21, %v4350_v43  ;;  %v2067_v47 = vsel %vm2020_vm8, %v2064_v49, %v2066_v56 }
 0x30e   :  { %9313 = vmatprep.mubr.msk.bf16.mxu1 %vm881_vm3, %v2059_v2  ;;  %9554 = vmatmul.mubr.msk.bf16.gmra.mrb[36].mxu0 %vm881_vm3, %v4345_v59  ;;  %v4353_v2 = vsel %vm4336_vm9, %v4350_v43, %v4352_v34  ;;  %v11969_v59 = vld [vmem:[#allocation2 + $0x58] sm:$0xff]  ;;  %v2071_v43 = vsel %vm2020_vm8, %v2068_v13, %v2070_v7 }
 0x30f   :  { %9557 = vmatprep.mubr.msk.bf16.mxu0 %vm881_vm3, %v4347_v0  ;;  %v11972_v0 = vld [vmem:[#allocation2 + $0x60] sm:$0xff]  ;;  %v4356_v44 = vrot.slane %v11969_v59, 5  ;;  %v10500_v34 = vld [vmem:[#allocation2 + $0xd8] sm:$0xff] }
 0x310   :  { %v4358_v21 = vrot.slane %v11972_v0, 5 }
 0x312   :  { %v4359_v46 = vsel %vm4336_vm9, %v4356_v44, %v4358_v21 }
 0x315   :  { %9314 = vmatmul.mubr.msk.bf16.gmra.mrb[68].mxu1 %vm881_vm3, %v2061_v30  ;;  %v2069_v30 = vsel %vm2020_vm8, %v2066_v56, %v2068_v13  ;;  %v2074_v56 = vrot.slane %v10500_v34, 1 }
 0x316   :  { %9317 = vmatprep.mubr.msk.bf16.mxu1 %vm881_vm3, %v2063_v38  ;;  %9558 = vmatmul.mubr.msk.bf16.gmra.mrb[40].mxu0 %vm881_vm3, %v4349_v19  ;;  %v4357_v38 = vsel %vm4336_vm9, %v4354_v11, %v4356_v44  ;;  %v11985_v19 = vld [vmem:[#allocation2 + $0x68] sm:$0xff]  ;;  %v4362_v11 = vrot.slane %v11988_v1, 5  ;;  %v11999_v44 = vld [vmem:[#allocation2 + $0x78] sm:$0xff] }
 0x317   :  { %9561 = vmatprep.mubr.msk.bf16.mxu0 %vm881_vm3, %v4351_v14  ;;  %v10499_v14 = vld [vmem:[#allocation2 + $0xd0] sm:$0xff] }
 0x318   :  { %v2072_v49 = vrot.slane %v10499_v14, 1 }
 0x31d   :  { %9318 = vmatmul.mubr.msk.bf16.gmra.mrb[72].mxu1 %vm881_vm3, %v2065_v52  ;;  %v4360_v52 = vrot.slane %v11985_v19, 5 }
 0x31e   :  { %9321 = vmatprep.mubr.msk.bf16.mxu1 %vm881_vm3, %v2067_v47  ;;  %9562 = vmatmul.mubr.msk.bf16.gmra.mrb[44].mxu0 %vm881_vm3, %v4353_v2  ;;  %v2073_v47 = vsel %vm2020_vm8, %v2070_v7, %v2072_v49  ;;  %v2075_v2 = vsel %vm2020_vm8, %v2072_v49, %v2074_v56 }
 0x31f   :  { %9565 = vmatprep.mubr.msk.bf16.mxu0 %vm881_vm3, %v4355_v24  ;;  %v4361_v24 = vsel %vm4336_vm9, %v4358_v21, %v4360_v52  ;;  %v4363_v13 = vsel %vm4336_vm9, %v4360_v52, %v4362_v11 }
 0x325   :  { %9322 = vmatmul.mubr.msk.bf16.gmra.mrb[76].mxu1 %vm881_vm3, %v2069_v30  ;;  %v12002_v30 = vld [vmem:[#allocation2 + $0x80] sm:$0xff] }
 0x326   :  { %9325 = vmatprep.mubr.msk.bf16.mxu1 %vm881_vm3, %v2071_v43  ;;  %9566 = vmatmul.mubr.msk.bf16.gmra.mrb[48].mxu0 %vm881_vm3, %v4357_v38  ;;  %v10501_v43 = vld [vmem:[#allocation2 + $0xe0] sm:$0xff]  ;;  %v2078_v38 = vrot.slane %v11366_v27, 1  ;;  %v4366_v21 = vrot.slane %v12002_v30, 5  ;;  %v12017_v27 = vld [vmem:[#allocation2 + $0x90] sm:$0xff] }
 0x327   :  { %9569 = vmatprep.mubr.msk.bf16.mxu0 %vm881_vm3, %v4359_v46  ;;  %v2076_v7 = vrot.slane %v10501_v43, 1  ;;  %v4364_v46 = vrot.slane %v11999_v44, 5 }
 0x329   :  { %v2077_v14 = vsel %vm2020_vm8, %v2074_v56, %v2076_v7  ;;  %v2079_v49 = vsel %vm2020_vm8, %v2076_v7, %v2078_v38  ;;  %v4365_v34 = vsel %vm4336_vm9, %v4362_v11, %v4364_v46  ;;  %v4367_v52 = vsel %vm4336_vm9, %v4364_v46, %v4366_v21 }
 0x32a   :  { %v2080_v56 = vrot.slane %v11501_v12, 1  ;;  %v4370_v11 = vrot.slane %v12017_v27, 5  ;;  %v2619_v46 = vrot.slane %v13213_v18, 6 }
 0x32d   :  { %9326 = vmatmul.mubr.msk.bf16.gmra.mrb[80].mxu1 %vm881_vm3, %v2073_v47  ;;  %v12014_v47 = vld [vmem:[#allocation2 + $0x88] sm:$0xff] }
 0x32e   :  { %9329 = vmatprep.mubr.msk.bf16.mxu1 %vm881_vm3, %v2075_v2  ;;  %9570 = vmatmul.mubr.msk.bf16.gmra.mrb[52].mxu0 %vm881_vm3, %v4361_v24  ;;  %v2082_v2 = vrot.slane %v11520_v23, 1  ;;  %v4368_v24 = vrot.slane %v12014_v47, 5  ;;  %v12032_v23 = vld [vmem:[#allocation2 + $0x98] sm:$0xff] }
 0x32f   :  { %9573 = vmatprep.mubr.msk.bf16.mxu0 %vm881_vm3, %v4363_v13  ;;  %v2081_v13 = vsel %vm2020_vm8, %v2078_v38, %v2080_v56  ;;  %v12035_v38 = vld [vmem:[#allocation2 + $0xa0] sm:$0xff] }
 0x330   :  { %v2083_v43 = vsel %vm2020_vm8, %v2080_v56, %v2082_v2  ;;  %v4369_v7 = vsel %vm4336_vm9, %v4366_v21, %v4368_v24  ;;  %v4371_v12 = vsel %vm4336_vm9, %v4368_v24, %v4370_v11  ;;  %v4372_v21 = vrot.slane %v12032_v23, 5 }
 0x331   :  { %v4374_v18 = vrot.slane %v12035_v38, 5 }
 0x332   :  { %v4373_v24 = vsel %vm4336_vm9, %v4370_v11, %v4372_v21 }
 0x335   :  { %9330 = vmatmul.mubr.msk.bf16.gmra.mrb[84].mxu1 %vm881_vm3, %v2077_v14  ;;  %v2620_v14 = vrot.slane %v13215_v25, 7 }
 0x336   :  { %9333 = vmatprep.mubr.msk.bf16.mxu1 %vm881_vm3, %v2079_v49  ;;  %9574 = vmatmul.mubr.msk.bf16.gmra.mrb[56].mxu0 %vm881_vm3, %v4365_v34  ;;  %v2084_v49 = vrot.slane %v11556_v51, 1  ;;  %v4375_v51 = vsel %vm4336_vm9, %v4372_v21, %v4374_v18 }
 0x337   :  { %9577 = vmatprep.mubr.msk.bf16.mxu0 %vm881_vm3, %v4367_v52  ;;  %v2621_v34 = vor.u32 %v2620_v14, %v2619_v46  ;;  %v13234_v52 = vld [vmem:[#allocation25_spill] sm:$0xff] }
 0x338   :  { %v2085_v25 = vsel %vm2020_vm8, %v2082_v2, %v2084_v49  ;;  %v12066_v49 = vld [vmem:[#allocation2 + $0xc0] sm:$0xff] }
 0x339   :  { %v2622_v56 = vsel %vm2554_vm5, %v13234_v52, %v2621_v34  ;;  %v2626_v46 = vsel %vm2554_vm5, %v2621_v34, %v11485_v32  ;;  %v4382_v32 = vrot.slane %v12066_v49, 5 }
 0x33d   :  { %9334 = vmatmul.mubr.msk.bf16.gmra.mrb[88].mxu1 %vm881_vm3, %v2081_v13  ;;  %v12048_v13 = vld [vmem:[#allocation2 + $0xa8] sm:$0xff] }
 0x33e   :  { %9337 = vmatprep.mubr.msk.bf16.mxu1 %vm881_vm3, %v2083_v43  ;;  %9578 = vmatmul.mubr.msk.bf16.gmra.mrb[60].mxu0 %vm881_vm3, %v4369_v7  ;;  %v12051_v43 = vld [vmem:[#allocation2 + $0xb0] sm:$0xff]  ;;  %v4376_v2 = vrot.slane %v12048_v13, 5  ;;  %v5050_v63 = vshrl.u32 %v12048_v13, 16 }
 0x33f   :  { %9581 = vmatprep.mubr.msk.bf16.mxu0 %vm881_vm3, %v4371_v12  ;;  %v4378_v7 = vrot.slane %v12051_v43, 5  ;;  %v12064_v12 = vld [vmem:[#allocation2 + $0xb8] sm:$0xff] }
 0x340   :  { %v4377_v11 = vsel %vm4336_vm9, %v4374_v18, %v4376_v2  ;;  %v4380_v21 = vrot.slane %v12064_v12, 5  ;;  %v12077_v18 = vld [vmem:[#allocation2 + $0xc8] sm:$0xff] }
 0x341   :  { %v4379_v14 = vsel %vm4336_vm9, %v4376_v2, %v4378_v7  ;;  %v4384_v52 = vrot.slane %v12077_v18, 5 }
 0x342   :  { %v4381_v34 = vsel %vm4336_vm9, %v4378_v7, %v4380_v21 }
 0x345   :  { %9338 = vmatmul.mubr.msk.bf16.gmra.mrb[92].mxu1 %vm881_vm3, %v2085_v25  ;;  %v12080_v25 = vld [vmem:[#allocation2 + $0xd0] sm:$0xff] }
 0x346   :  { %9373 = vmatprep.mubr.msk.bf16.mxu1 %vm881_vm3, %v2622_v56  ;;  %9582 = vmatmul.mubr.msk.bf16.gmra.mrb[64].mxu0 %vm881_vm3, %v4373_v24  ;;  %v4386_v56 = vrot.slane %v12080_v25, 5  ;;  %v12091_v24 = vld [vmem:[#allocation2 + $0xd8] sm:$0xff] }
 0x347   :  { %9585 = vmatprep.mubr.msk.bf16.mxu0 %vm881_vm3, %v4375_v51  ;;  %v12094_v51 = vld [vmem:[#allocation2 + $0xe0] sm:$0xff]  ;;  %v4388_v2 = vrot.slane %v12091_v24, 5 }
 0x348   :  { %v4390_v7 = vrot.slane %v12094_v51, 5 }
 0x34d   :  { %9374 = vmatmul.mubr.msk.bf16.vlgmr.msra.gmra.mrb[60].mxu1 %vm881_vm3, %v2626_v46  ;;  %v2656_v46 = vrot.slane %v13226_v41, 7 }
 0x34e   :  { %9377 = vmatprep.mubr.msk.bf16.mxu1 %vm881_vm3, %v11495_v55  ;;  %9586 = vmatmul.mubr.msk.bf16.gmra.mrb[68].mxu0 %vm881_vm3, %v4377_v11  ;;  %v4383_v55 = vsel %vm4336_vm9, %v4380_v21, %v4382_v32  ;;  %v2659_v11 = vrot.slane %v11457_v37, 6  ;;  %v4391_v21 = vsel %vm4336_vm9, %v4388_v2, %v4390_v7 }
 0x34f   :  { %9589 = vmatprep.mubr.msk.bf16.mxu0 %vm881_vm3, %v4379_v14  ;;  %v2660_v14 = vrot.slane %v13227_v54, 7 }
 0x351   :  { %v2661_v41 = vor.u32 %v2660_v14, %v2659_v11 }
 0x355   :  { %9378 = vmatmul.mubr.msk.bf16.gmra.mrb[64].mxu1 %vm881_vm3, %v11514_v8  ;;  %v4385_v8 = vsel %vm4336_vm9, %v4382_v32, %v4384_v52  ;;  %v12109_v32 = vld [vmem:[#allocation2 + $0xe8] sm:$0xff] }
 0x356   :  { %9381 = vmatprep.mubr.msk.bf16.mxu1 %vm881_vm3, %v11523_v60  ;;  %9590 = vmatmul.mubr.msk.bf16.gmra.mrb[72].mxu0 %vm881_vm3, %v4381_v34  ;;  %v4387_v60 = vsel %vm4336_vm9, %v4384_v52, %v4386_v56  ;;  %v4392_v34 = vrot.slane %v12109_v32, 5 }
 0x357   :  { %9593 = vmatprep.mubr.msk.bf16.mxu0 %vm881_vm3, %v4383_v55 }
 0x358   :  { %v4393_v55 = vsel %vm4336_vm9, %v4390_v7, %v4392_v34  ;;  %v2666_v7 = vsel %vm2554_vm5, %v2661_v41, %v11569_v48 }
 0x35d   :  { %9382 = vmatmul.mubr.msk.bf16.gmra.mrb[68].mxu1 %vm881_vm3, %v11533_v57  ;;  %v2655_v57 = vrot.slane %v13224_v16, 6  ;;  %v12112_v16 = vld [vmem:[#allocation2 + $0xf0] sm:$0xff] }
 0x35e   :  { %9385 = vmatprep.mubr.msk.bf16.mxu1 %vm881_vm3, %v11536_v17  ;;  %9594 = vmatmul.mubr.msk.bf16.gmra.mrb[76].mxu0 %vm881_vm3, %v4385_v8  ;;  %v4389_v17 = vsel %vm4336_vm9, %v4386_v56, %v4388_v2  ;;  %v4394_v37 = vrot.slane %v12112_v16, 5  ;;  %v12124_v56 = vld [vmem:[#allocation2 + $0xf8] sm:$0xff]  ;;  %v4882_v2 = vshll.u32 %v11882_v10, 16 }
 0x35f   :  { %9597 = vmatprep.mubr.msk.bf16.mxu0 %vm881_vm3, %v4387_v60  ;;  %v4396_v8 = vrot.slane %v12124_v56, 5  ;;  %v4879_v60 = vshrl.u32 %v11882_v10, 16 }
 0x360   :  { %v4395_v52 = vsel %vm4336_vm9, %v4392_v34, %v4394_v37 }
 0x361   :  { %v4397_v11 = vsel %vm4336_vm9, %v4394_v37, %v4396_v8  ;;  %v4897_v37 = vshrl.u32 %v11901_v40, 16 }
 0x365   :  { %9386 = vmatmul.mubr.msk.bf16.gmra.mrb[72].mxu1 %vm881_vm3, %v11547_v5  ;;  %v2657_v5 = vor.u32 %v2656_v46, %v2655_v57  ;;  %v4297_v57 = vld [vmem:[#allocation2 + $0x108] sm:$0x1f]  ;;  %v4871_v46 = vshrl.u32 %v11887_v50, 16 }
 0x366   :  { %9389 = vmatprep.mubr.msk.bf16.mxu1 %vm881_vm3, %v11562_v36  ;;  %9598 = vmatmul.mubr.msk.bf16.gmra.mrb[80].mxu0 %vm881_vm3, %v4389_v17  ;;  %v4874_v17 = vshll.u32 %v11887_v50, 16  ;;  %v4400_v48 = vrot.slane %v4297_v57, 5  ;;  %v4888_v50 = vshrl.u32 %v11898_v45, 16 }
 0x367   :  { %9601 = vmatprep.mubr.msk.bf16.mxu0 %vm881_vm3, %v4391_v21  ;;  %v2658_v54 = vsel %vm2554_vm5, %v11549_v62, %v2657_v5  ;;  %v2662_v36 = vsel %vm2554_vm5, %v2657_v5, %v2661_v41  ;;  %v4398_v62 = vrot.slane %v11860_v31, 5  ;;  %v4881_v21 = vrot.slane %v4879_v60, 5 }
 0x368   :  { %v4884_v5 = vrot.slane %v4882_v2, 6  ;;  %v4873_v41 = vrot.slane %v4871_v46, 5  ;;  %v4876_v34 = vrot.slane %v4874_v17, 6  ;;  %v2680_v60 = vrot.slane %v11518_v42, 7 }
 0x369   :  { %v4399_v14 = vsel %vm4336_vm9, %v4396_v8, %v4398_v62  ;;  %v2679_v8 = vrot.slane %v11530_v4, 6  ;;  %v2683_v2 = vrot.slane %v11575_v15, 6  ;;  %v4890_v57 = vrot.slane %v4888_v50, 5 }
 0x36a   :  { %v4899_v17 = vrot.slane %v4897_v37, 5  ;;  %v2691_v15 = vshll.u32 %v11700_v53, 16 }
 0x36b   :  { %v2681_v42 = vor.u32 %v2680_v60, %v2679_v8 }
 0x36c   :  { %v2693_v50 = vrot.slane %v2691_v15, 7 }
 0x36d   :  { %9390 = vmatmul.mubr.msk.bf16.gmra.mrb[76].mxu1 %vm881_vm3, %v2658_v54  ;;  %v4891_v54 = vshll.u32 %v11898_v45, 16 }
 0x36e   :  { %9393 = vmatprep.mubr.msk.bf16.mxu1 %vm881_vm3, %v2662_v36  ;;  %9602 = vmatmul.mubr.msk.bf16.gmra.mrb[84].mxu0 %vm881_vm3, %v4393_v55  ;;  %v4885_v36 = vor.u32 %v4884_v5, %v4881_v21  ;;  %v4401_v55 = vsel %vm4336_vm9, %v4398_v62, %v4400_v48  ;;  %v4909_v21 = vshll.u32 %v11915_v28, 16  ;;  %v4915_v5 = vshrl.u32 %v11919_v29, 16 }
 0x36f   :  { %9605 = vmatprep.mubr.msk.bf16.mxu0 %vm881_vm3, %v4395_v52  ;;  %v4877_v52 = vor.u32 %v4876_v34, %v4873_v41  ;;  %v4893_v46 = vrot.slane %v4891_v54, 6  ;;  %v4918_v48 = vshll.u32 %v11919_v29, 16  ;;  %v2682_v41 = vsel %vm2554_vm5, %v11592_v3, %v2681_v42 }
 0x371   :  { %v4886_v62 = vsel %vm4869_vm10, %v4877_v52, %v4885_v36  ;;  %v4917_v52 = vrot.slane %v4915_v5, 5  ;;  %v4920_v8 = vrot.slane %v4918_v48, 6  ;;  %v4951_v5 = vshrl.u32 %v11956_v20, 16 }
 0x372   :  { %v4954_v48 = vshll.u32 %v11956_v20, 16 }
 0x375   :  { %9394 = vmatmul.mubr.msk.bf16.gmra.mrb[80].mxu1 %vm881_vm3, %v2666_v7  ;;  %v2684_v7 = vrot.slane %v11540_v26, 7  ;;  %v4894_v26 = vor.u32 %v4893_v46, %v4890_v57  ;;  %v4921_v57 = vor.u32 %v4920_v8, %v4917_v52  ;;  %v4969_v8 = vshrl.u32 %v11972_v0, 16 }
 0x376   :  { %9397 = vmatprep.mubr.msk.bf16.mxu1 %vm881_vm3, %v11586_v35  ;;  %9606 = vmatmul.mubr.msk.bf16.gmra.mrb[88].mxu0 %vm881_vm3, %v4397_v11  ;;  %v4900_v35 = vshll.u32 %v11901_v40, 16 }
 0x377   :  { %9609 = vmatprep.mubr.msk.bf16.mxu0 %vm881_vm3, %v4399_v14  ;;  %v2685_v11 = vor.u32 %v2684_v7, %v2683_v2  ;;  %v4906_v14 = vshrl.u32 %v11915_v28, 16  ;;  %v4895_v37 = vsel %vm4869_vm10, %v4885_v36, %v4894_v26  ;;  %v4924_v7 = vshrl.u32 %v11937_v9, 16 }
 0x378   :  { %v4902_v4 = vrot.slane %v4900_v35, 6  ;;  %v4927_v36 = vshll.u32 %v11937_v9, 16 }
 0x379   :  { %v2686_v54 = vsel %vm2554_vm5, %v2681_v42, %v2685_v11  ;;  %v4908_v35 = vrot.slane %v4906_v14, 5 }
 0x37a   :  { %v4929_v42 = vrot.slane %v4927_v36, 6 }
 0x37d   :  { %9398 = vmatmul.mubr.msk.bf16.gmra.mrb[84].mxu1 %vm881_vm3, %v11596_v22  ;;  %v2688_v22 = vshrl.u32 %v11700_v53, 16  ;;  %v10366_v53 = vld [vmem:[%s13134_s3 + $0x88] sm:$0xff]  }
 0x37e   :  { %9401 = vmatprep.mubr.msk.bf16.mxu1 %vm881_vm3, %v11600_v58  ;;  %9610 = vmatmul.mubr.msk.bf16.gmra.mrb[92].mxu0 %vm881_vm3, %v4401_v55  ;;  %v4903_v58 = vor.u32 %v4902_v4, %v4899_v17  ;;  %v4911_v55 = vrot.slane %v4909_v21, 6  ;;  %v4936_v17 = vshll.u32 %v11943_v33, 16  ;;  %v4945_v21 = vshll.u32 %v11953_v39, 16 }
 0x37f   :  { %9617 = vmatprep.mubr.msk.bf16.mxu0 %vm881_vm3, %v4886_v62  ;;  %v2690_v34 = vrot.slane %v2688_v22, 6  ;;  %v4933_v62 = vshrl.u32 %v11943_v33, 16 }
 0x380   :  { %v4904_v3 = vsel %vm4869_vm10, %v4894_v26, %v4903_v58  ;;  %v4912_v2 = vor.u32 %v4911_v55, %v4908_v35  ;;  %v4938_v26 = vrot.slane %v4936_v17, 6  ;;  %v4960_v55 = vshrl.u32 %v11969_v59, 16 }
 0x381   :  { %v2694_v60 = vor.u32 %v2693_v50, %v2690_v34  ;;  %v4935_v15 = vrot.slane %v4933_v62, 5  ;;  %v4947_v50 = vrot.slane %v4945_v21, 6 }
 0x382   :  { %v4913_v4 = vsel %vm4869_vm10, %v4903_v58, %v4912_v2  ;;  %v4922_v22 = vsel %vm4869_vm10, %v4912_v2, %v4921_v57 }
 0x383   :  { %v2695_v46 = vsel %vm2554_vm5, %v2685_v11, %v2694_v60  ;;  %v4942_v11 = vshrl.u32 %v11953_v39, 16  ;;  %v4939_v58 = vor.u32 %v4938_v26, %v4935_v15  ;;  %v4972_v60 = vshll.u32 %v11972_v0, 16 }
 0x385   :  { %9402 = vmatmul.mubr.msk.bf16.gmra.mrb[88].mxu1 %vm881_vm3, %v2682_v41  ;;  %v4944_v34 = vrot.slane %v4942_v11, 5  ;;  %v4974_v62 = vrot.slane %v4972_v60, 6  ;;  %v4990_v11 = vshll.u32 %v11988_v1, 16  ;;  %v5008_v60 = vshll.u32 %v12002_v30, 16 }
 0x386   :  { %9405 = vmatprep.mubr.msk.bf16.mxu1 %vm881_vm3, %v2686_v54  ;;  %9618 = vmatmul.mubr.msk.bf16.vlgmr.msra.gmra.mrb[32].mxu0 %vm881_vm3, %v4895_v37  ;;  %v4953_v54 = vrot.slane %v4951_v5, 5  ;;  %v4956_v37 = vrot.slane %v4954_v48, 6 }
 0x387   :  { %9621 = vmatprep.mubr.msk.bf16.mxu0 %vm881_vm3, %v4904_v3  ;;  %9682 = vmatpush3.bf16.msra.mxu0 %v11924_v61  ;;  %v4926_v61 = vrot.slane %v4924_v7, 5  ;;  %v4948_v35 = vor.u32 %v4947_v50, %v4944_v34  ;;  %v4963_v3 = vshll.u32 %v11969_v59, 16  ;;  %v4962_v7 = vrot.slane %v4960_v55, 5 }
 0x388   :  { %9683 = vmatprep.subr.bf16.mxu0 %v10366_v53  ;;  %v4957_v52 = vor.u32 %v4956_v37, %v4953_v54  ;;  %v4992_v50 = vrot.slane %v4990_v11, 6  ;;  %v4999_v55 = vshll.u32 %v11999_v44, 16  ;;  %v5014_v11 = vshrl.u32 %v12014_v47, 16 }
 0x389   :  { %v4930_v14 = vor.u32 %v4929_v42, %v4926_v61  ;;  %v4949_v2 = vsel %vm4869_vm10, %v4939_v58, %v4948_v35  ;;  %v4965_v36 = vrot.slane %v4963_v3, 6  ;;  %v4978_v42 = vshrl.u32 %v11985_v19, 16 }
 0x38b   :  { %9684 = vmatpush3.bf16.msra.mxu0 %v10366_v53  ;;  %v4931_v41 = vsel %vm4869_vm10, %v4921_v57, %v4930_v14  ;;  %v4940_v53 = vsel %vm4869_vm10, %v4930_v14, %v4939_v58  ;;  %v4958_v57 = vsel %vm4869_vm10, %v4948_v35, %v4957_v52  ;;  %v4966_v61 = vor.u32 %v4965_v36, %v4962_v7 }
 0x38c   :  { %v4987_v14 = vshrl.u32 %v11988_v1, 16  ;;  %v4980_v48 = vrot.slane %v4978_v42, 5  ;;  %v4996_v35 = vshrl.u32 %v11999_v44, 16 }
 0x38d   :  { %9406 = vmatmul.mubr.msk.bf16.gmra.mrb[92].mxu1 %vm881_vm3, %v2695_v46  ;;  %v4971_v46 = vrot.slane %v4969_v8, 5  ;;  %v4967_v5 = vsel %vm4869_vm10, %v4957_v52, %v4966_v61  ;;  %v5005_v8 = vshrl.u32 %v12002_v30, 16 }
 0x38e   :  { %9622 = vmatmul.mubr.msk.bf16.gmra.mrb[36].mxu0 %vm881_vm3, %v4913_v4  ;;  %v4989_v34 = vrot.slane %v4987_v14, 5  ;;  %v4998_v36 = vrot.slane %v4996_v35, 5 }
 0x38f   :  { %9625 = vmatprep.mubr.msk.bf16.mxu0 %vm881_vm3, %v4922_v22  ;;  %v4981_v22 = vshll.u32 %v11985_v19, 16  ;;  %v4975_v26 = vor.u32 %v4974_v62, %v4971_v46  ;;  %v5007_v62 = vrot.slane %v5005_v8, 5 }
 0x390   :  { %v4993_v52 = vor.u32 %v4992_v50, %v4989_v34 }
 0x391   :  { %v4983_v58 = vrot.slane %v4981_v22, 6 }
 0x393   :  { %v4984_v37 = vor.u32 %v4983_v58, %v4980_v48  ;;  %v5023_v58 = vshrl.u32 %v12017_v27, 16 }
 0x395   :  { %v4985_v7 = vsel %vm4869_vm10, %v4975_v26, %v4984_v37  ;;  %v4994_v46 = vsel %vm4869_vm10, %v4984_v37, %v4993_v52  ;;  %v5016_v37 = vrot.slane %v5014_v11, 5  ;;  %v5025_v8 = vrot.slane %v5023_v58, 5 }
 0x396   :  { %9626 = vmatmul.mubr.msk.bf16.gmra.mrb[40].mxu0 %vm881_vm3, %v4931_v41  ;;  %v4976_v41 = vsel %vm4869_vm10, %v4966_v61, %v4975_v26  ;;  %v5010_v61 = vrot.slane %v5008_v60, 6  ;;  %v5041_v11 = vshrl.u32 %v12035_v38, 16 }
 0x397   :  { %9629 = vmatprep.mubr.msk.bf16.mxu0 %vm881_vm3, %v4940_v53 }
 0x398   :  { %v5011_v48 = vor.u32 %v5010_v61, %v5007_v62  ;;  %v5035_v62 = vshll.u32 %v12032_v23, 16 }
 0x39e   :  { %9630 = vmatmul.mubr.msk.bf16.gmra.mrb[44].mxu0 %vm881_vm3, %v4949_v2 }
 0x39f   :  { %9633 = vmatprep.mubr.msk.bf16.mxu0 %vm881_vm3, %v4958_v57  ;;  %v5001_v57 = vrot.slane %v4999_v55, 6 }
 0x3a0   :  { %v12203_v17 = vpop.f32.mrb[32].mxu1 }
 0x3a1   :  { %v12205_v4 = vpop.f32.mrb[33].mxu1  ;;  %v5002_v14 = vor.u32 %v5001_v57, %v4998_v36 }
 0x3a2   :  { %v12209_v15 = vpop.f32.mrb[34].mxu1 }
 0x3a3   :  { %v12213_v21 = vpop.f32.mrb[35].mxu1  ;;  %v5003_v50 = vsel %vm4869_vm10, %v4993_v52, %v5002_v14  ;;  %v5012_v55 = vsel %vm4869_vm10, %v5002_v14, %v5011_v48  ;;  %v5044_v14 = vshll.u32 %v12035_v38, 16 }
 0x3a6   :  { %9634 = vmatmul.mubr.msk.bf16.gmra.mrb[48].mxu0 %vm881_vm3, %v4967_v5  ;;  %v5017_v5 = vshll.u32 %v12014_v47, 16 }
 0x3a7   :  { %9637 = vmatprep.mubr.msk.bf16.mxu0 %vm881_vm3, %v4976_v41  ;;  %v5026_v41 = vshll.u32 %v12017_v27, 16 }
 0x3a8   :  { %v12219_v53 = vpop.f32.mrb[36].mxu1  ;;  %v5019_v35 = vrot.slane %v5017_v5, 6 }
 0x3a9   :  { %v12221_v54 = vpop.f32.mrb[37].mxu1  ;;  %v5028_v60 = vrot.slane %v5026_v41, 6 }
 0x3aa   :  { %v12225_v3 = vpop.f32.mrb[38].mxu1  ;;  %v5020_v57 = vor.u32 %v5019_v35, %v5016_v37  ;;  %v5043_v35 = vrot.slane %v5041_v11, 5  ;;  %v5052_v11 = vrot.slane %v5050_v63, 5  ;;  %v5077_v63 = vshrl.u32 %v12066_v49, 16 }
 0x3ab   :  { %v12229_v2 = vpop.f32.mrb[39].mxu1  ;;  %v5029_v61 = vor.u32 %v5028_v60, %v5025_v8 }
 0x3ac   :  { %v5021_v58 = vsel %vm4869_vm10, %v5011_v48, %v5020_v57  ;;  %v5059_v48 = vshrl.u32 %v12051_v43, 16 }
 0x3ad   :  { %v5030_v37 = vsel %vm4869_vm10, %v5020_v57, %v5029_v61 }
 0x3ae   :  { %9638 = vmatmul.mubr.msk.bf16.gmra.mrb[52].mxu0 %vm881_vm3, %v4985_v7 }
 0x3af   :  { %9641 = vmatprep.mubr.msk.bf16.mxu0 %vm881_vm3, %v4994_v46  ;;  %v5032_v46 = vshrl.u32 %v12032_v23, 16 }
 0x3b0   :  { %v12235_v42 = vpop.f32.mrb[40].mxu1 }
 0x3b1   :  { %v12237_v22 = vpop.f32.mrb[41].mxu1  ;;  %v5034_v41 = vrot.slane %v5032_v46, 5  ;;  %v5062_v46 = vshll.u32 %v12051_v43, 16 }
 0x3b2   :  { %v12241_v26 = vpop.f32.mrb[42].mxu1 }
 0x3b3   :  { %v12245_v34 = vpop.f32.mrb[43].mxu1 }
 0x3b6   :  { %9642 = vmatmul.mubr.msk.bf16.gmra.mrb[56].mxu0 %vm881_vm3, %v5003_v50  ;;  %v5037_v50 = vrot.slane %v5035_v62, 6 }
 0x3b7   :  { %9645 = vmatprep.mubr.msk.bf16.mxu0 %vm881_vm3, %v5012_v55  ;;  %v5046_v55 = vrot.slane %v5044_v14, 6 }
 0x3b8   :  { %v12251_v7 = vpop.f32.mrb[44].mxu1  ;;  %v5038_v60 = vor.u32 %v5037_v50, %v5034_v41  ;;  %v5064_v41 = vrot.slane %v5062_v46, 6 }
 0x3b9   :  { %v12253_v36 = vpop.f32.mrb[45].mxu1 }
 0x3ba   :  { %13235 = vst [vmem:[#allocation7_spill] sm:$0xff] %v12253_v36  ;;  %v12257_v52 = vpop.f32.mrb[46].mxu1  ;;  %v5047_v36 = vor.u32 %v5046_v55, %v5043_v35  ;;  %v5039_v57 = vsel %vm4869_vm10, %v5029_v61, %v5038_v60  ;;  %v5068_v35 = vshrl.u32 %v12064_v12, 16 }
 0x3bb   :  { %13236 = vst [vmem:[#allocation9_spill] sm:$0xff] %v12257_v52  ;;  %v12261_v5 = vpop.f32.mrb[47].mxu1  ;;  %v5053_v52 = vshll.u32 %v12048_v13, 16 }
 0x3bc   :  { %13237 = vst [vmem:[#allocation11_spill] sm:$0xff] %v12261_v5 }
 0x3bd   :  { %v5055_v14 = vrot.slane %v5053_v52, 6  ;;  %v5080_v52 = vshll.u32 %v12066_v49, 16 }
 0x3be   :  { %9646 = vmatmul.mubr.msk.bf16.gmra.mrb[60].mxu0 %vm881_vm3, %v5021_v58  ;;  %v5061_v58 = vrot.slane %v5059_v48, 5  ;;  %v5070_v48 = vrot.slane %v5068_v35, 5  ;;  %v5098_v35 = vshll.u32 %v12080_v25, 16 }
 0x3bf   :  { %9649 = vmatprep.mubr.msk.bf16.mxu0 %vm881_vm3, %v5030_v37  ;;  %v5056_v37 = vor.u32 %v5055_v14, %v5052_v11  ;;  %v5079_v11 = vrot.slane %v5077_v63, 5  ;;  %v5082_v14 = vrot.slane %v5080_v52, 6 }
 0x3c0   :  { %v9295_v6 = vpop.f32.mrb[48].mxu1 }
 0x3c1   :  { %v2292_v8 = vpop.f32.mrb[49].mxu1  ;;  %v5048_v6 = vsel %vm4869_vm10, %v5038_v60, %v5047_v36  ;;  %v5057_v60 = vsel %vm4869_vm10, %v5047_v36, %v5056_v37  ;;  %v5095_v36 = vshrl.u32 %v12080_v25, 16 }
 0x3c2   :  { %v9296_v5 = vpop.f32.mrb[50].mxu1  ;;  %v5065_v8 = vor.u32 %v5064_v41, %v5061_v58  ;;  %v5086_v41 = vshrl.u32 %v12077_v18, 16 }
 0x3c3   :  { %v2295_v62 = vpop.f32.mrb[51].mxu1 }
 0x3c4   :  { %v5071_v62 = vshll.u32 %v12064_v12, 16  ;;  %v5066_v46 = vsel %vm4869_vm10, %v5056_v37, %v5065_v8 }
 0x3c6   :  { %9650 = vmatmul.mubr.msk.bf16.gmra.mrb[64].mxu0 %vm881_vm3, %v5039_v57  ;;  %v5073_v57 = vrot.slane %v5071_v62, 6  ;;  %v5088_v62 = vrot.slane %v5086_v41, 5 }
 0x3c7   :  { %9653 = vmatprep.mubr.msk.bf16.mxu0 %vm881_vm3, %v5048_v6 }
 0x3c8   :  { %v9299_v50 = vpop.f32.mrb[52].mxu1 }
 0x3c9   :  { %v2308_v5 = vpop.f32.mrb[53].mxu1  ;;  %v5089_v50 = vshll.u32 %v12077_v18, 16 }
 0x3ca   :  { %v9300_v55 = vpop.f32.mrb[54].mxu1 }
 0x3cb   :  { %v2311_v61 = vpop.f32.mrb[55].mxu1  ;;  %v5074_v55 = vor.u32 %v5073_v57, %v5070_v48  ;;  %v5091_v63 = vrot.slane %v5089_v50, 6  ;;  %v5104_v48 = vshrl.u32 %v12091_v24, 16  ;;  %v5107_v57 = vshll.u32 %v12091_v24, 16 }
 0x3cc   :  { %v5083_v61 = vor.u32 %v5082_v14, %v5079_v11  ;;  %v5113_v14 = vshrl.u32 %v12094_v51, 16 }
 0x3cd   :  { %v5075_v37 = vsel %vm4869_vm10, %v5065_v8, %v5074_v55  ;;  %v5116_v8 = vshll.u32 %v12094_v51, 16  ;;  %v5106_v50 = vrot.slane %v5104_v48, 5 }
 0x3ce   :  { %9654 = vmatmul.mubr.msk.bf16.gmra.mrb[68].mxu0 %vm881_vm3, %v5057_v60  ;;  %v5084_v52 = vsel %vm4869_vm10, %v5074_v55, %v5083_v61 }
 0x3cf   :  { %9657 = vmatprep.mubr.msk.bf16.mxu0 %vm881_vm3, %v5066_v46  ;;  %v5097_v46 = vrot.slane %v5095_v36, 5  ;;  %v5115_v36 = vrot.slane %v5113_v14, 5 }
 0x3d0   :  { %v9303_v6 = vpop.f32.mrb[56].mxu1 }
 0x3d1   :  { %v2324_v58 = vpop.f32.mrb[57].mxu1  ;;  %v5100_v6 = vrot.slane %v5098_v35, 6  ;;  %v5118_v35 = vrot.slane %v5116_v8, 6 }
 0x3d2   :  { %v9304_v5 = vpop.f32.mrb[58].mxu1  ;;  %v5092_v58 = vor.u32 %v5091_v63, %v5088_v62  ;;  %v5125_v62 = vshll.u32 %v12109_v32, 16 }
 0x3d3   :  { %v2327_v60 = vpop.f32.mrb[59].mxu1  ;;  %v5101_v11 = vor.u32 %v5100_v6, %v5097_v46  ;;  %v5109_v5 = vrot.slane %v5107_v57, 6  ;;  %v5119_v63 = vor.u32 %v5118_v35, %v5115_v36 }
 0x3d4   :  { %v5093_v41 = vsel %vm4869_vm10, %v5083_v61, %v5092_v58  ;;  %v5134_v61 = vshll.u32 %v12112_v16, 16  ;;  %v5127_v48 = vrot.slane %v5125_v62, 6 }
 0x3d5   :  { %v5102_v55 = vsel %vm4869_vm10, %v5092_v58, %v5101_v11  ;;  %v5110_v60 = vor.u32 %v5109_v5, %v5106_v50  ;;  %v5143_v50 = vshll.u32 %v12124_v56, 16 }
 0x3d6   :  { %9658 = vmatmul.mubr.msk.bf16.gmra.mrb[72].mxu0 %vm881_vm3, %v5075_v37  ;;  %v5122_v37 = vshrl.u32 %v12109_v32, 16  ;;  %v5136_v14 = vrot.slane %v5134_v61, 6 }
 0x3d7   :  { %9661 = vmatprep.mubr.msk.bf16.mxu0 %vm881_vm3, %v5084_v52  ;;  %v5131_v52 = vshrl.u32 %v12112_v16, 16  ;;  %v5111_v46 = vsel %vm4869_vm10, %v5101_v11, %v5110_v60  ;;  %v5120_v58 = vsel %vm4869_vm10, %v5110_v60, %v5119_v63  ;;  %v5145_v35 = vrot.slane %v5143_v50, 6 }
 0x3d8   :  { %v5124_v6 = vrot.slane %v5122_v37, 5  ;;  %v13238_v37 = vshrl.u32 %v11860_v31, 16  ;;  %v5637_v50 = vrot.slane %v11882_v10, 6 }
 0x3d9   :  { %v5133_v57 = vrot.slane %v5131_v52, 5  ;;  %v13239_v52 = vshll.u32 %v11860_v31, 16 }
 0x3da   :  { %v5128_v8 = vor.u32 %v5127_v48, %v5124_v6  ;;  %v5151_v62 = vrot.slane %v13238_v37, 5 }
 0x3db   :  { %v5137_v5 = vor.u32 %v5136_v14, %v5133_v57  ;;  %v5154_v61 = vrot.slane %v13239_v52, 6  ;;  %v5645_v52 = vrot.slane %v11919_v29, 6  ;;  %v5651_v29 = vrot.slane %v11953_v39, 6 }
 0x3dc   :  { %v5129_v11 = vsel %vm4869_vm10, %v5119_v63, %v5128_v8 }
 0x3dd   :  { %v5138_v60 = vsel %vm4869_vm10, %v5128_v8, %v5137_v5  ;;  %v5155_v63 = vor.u32 %v5154_v61, %v5151_v62  ;;  %v5643_v62 = vrot.slane %v11915_v28, 6 }
 0x3de   :  { %9662 = vmatmul.mubr.msk.bf16.gmra.mrb[76].mxu0 %vm881_vm3, %v5093_v41  ;;  %v5140_v41 = vshrl.u32 %v12124_v56, 16 }
 0x3df   :  { %9665 = vmatprep.mubr.msk.bf16.mxu0 %vm881_vm3, %v5102_v55  ;;  %v12309_v55 = vld [vmem:[#allocation2 + $0x108] sm:$0x3f] }
 0x3e0   :  { %v5142_v36 = vrot.slane %v5140_v41, 5  ;;  %v5161_v6 = vshll.u32 %v12309_v55, 16  ;;  %v5627_v41 = vld [vmem:[#allocation2 + $0x8] sm:$0xc0] }
 0x3e2   :  { %v5146_v48 = vor.u32 %v5145_v35, %v5142_v36  ;;  %v5163_v57 = vrot.slane %v5161_v6, 6  ;;  %v5641_v35 = vrot.slane %v11901_v40, 6  ;;  %v5647_v40 = vrot.slane %v11937_v9, 6 }
 0x3e4   :  { %v5147_v14 = vsel %vm4869_vm10, %v5137_v5, %v5146_v48  ;;  %v5156_v8 = vsel %vm4869_vm10, %v5146_v48, %v5155_v63  ;;  %v5639_v5 = vrot.slane %v11898_v45, 6  ;;  %v5644_v61 = vsel %vm5635_vm11, %v5641_v35, %v5643_v62 }
 0x3e5   :  { %v5646_v45 = vsel %vm5635_vm11, %v5643_v62, %v5645_v52  ;;  %v5648_v6 = vsel %vm5635_vm11, %v5645_v52, %v5647_v40  ;;  %v5653_v48 = vrot.slane %v11956_v20, 6 }
 0x3e6   :  { %9666 = vmatmul.mubr.msk.bf16.gmra.mrb[80].mxu0 %vm881_vm3, %v5111_v46  ;;  %v5158_v46 = vshrl.u32 %v12309_v55, 16  ;;  %v5640_v37 = vsel %vm5635_vm11, %v5637_v50, %v5639_v5  ;;  %v5642_v10 = vsel %vm5635_vm11, %v5639_v5, %v5641_v35 }
 0x3e7   :  { %9669 = vmatprep.mubr.msk.bf16.mxu0 %vm881_vm3, %v5120_v58  ;;  %v5654_v9 = vsel %vm5635_vm11, %v5651_v29, %v5653_v48 }
 0x3e8   :  { %v5160_v58 = vrot.slane %v5158_v46, 5  ;;  %v5649_v46 = vrot.slane %v11943_v33, 6 }
 0x3ea   :  { %v5164_v31 = vor.u32 %v5163_v57, %v5160_v58  ;;  %v5650_v28 = vsel %vm5635_vm11, %v5647_v40, %v5649_v46  ;;  %v5655_v57 = vrot.slane %v11969_v59, 6  ;;  %v5661_v59 = vrot.slane %v11988_v1, 6 }
 0x3eb   :  { %v5665_v1 = vrot.slane %v12002_v30, 6  ;;  %v5669_v30 = vrot.slane %v12017_v27, 6  ;;  %v5673_v27 = vrot.slane %v12035_v38, 6 }
 0x3ec   :  { %v5656_v39 = vsel %vm5635_vm11, %v5653_v48, %v5655_v57 }
 0x3ee   :  { %9670 = vmatmul.mubr.msk.bf16.gmra.mrb[84].mxu0 %vm881_vm3, %v5129_v11  ;;  %v5165_v11 = vsel %vm4869_vm10, %v5155_v63, %v5164_v31  ;;  %v5652_v63 = vsel %vm5635_vm11, %v5649_v46, %v5651_v29 }
 0x3ef   :  { %9673 = vmatprep.mubr.msk.bf16.mxu0 %vm881_vm3, %v5138_v60  ;;  %v5636_v60 = vrot.slane %v5627_v41, 6 }
 0x3f1   :  { %v5638_v36 = vsel %vm5635_vm11, %v5636_v60, %v5637_v50 }
 0x3f6   :  { %9674 = vmatmul.mubr.msk.bf16.gmra.mrb[88].mxu0 %vm881_vm3, %v5147_v14 }
 0x3f7   :  { %9677 = vmatprep.mubr.msk.bf16.mxu0 %vm881_vm3, %v5156_v8  ;;  %v5657_v8 = vrot.slane %v11972_v0, 6 }
 0x3f9   :  { %v5658_v20 = vsel %vm5635_vm11, %v5655_v57, %v5657_v8 }
 0x3fe   :  { %9678 = vmatmul.mubr.msk.bf16.gmra.mrb[92].mxu0 %vm881_vm3, %v5165_v11  ;;  %v5659_v11 = vrot.slane %v11985_v19, 6  ;;  %v5663_v19 = vrot.slane %v11999_v44, 6  ;;  %v5667_v44 = vrot.slane %v12014_v47, 6  ;;  %v5671_v47 = vrot.slane %v12032_v23, 6 }
 0x3ff   :  { %9685 = vmatprep.mubr.msk.bf16.mxu0 %vm881_vm3, %v5638_v36  ;;  %v5677_v23 = vrot.slane %v12051_v43, 6 }
 0x400   :  { %v5660_v36 = vsel %vm5635_vm11, %v5657_v8, %v5659_v11  ;;  %v5662_v5 = vsel %vm5635_vm11, %v5659_v11, %v5661_v59  ;;  %v5664_v52 = vsel %vm5635_vm11, %v5661_v59, %v5663_v19  ;;  %v5670_v29 = vsel %vm5635_vm11, %v5667_v44, %v5669_v30 }
 0x401   :  { %v5674_v57 = vsel %vm5635_vm11, %v5671_v47, %v5673_v27 }
 0x406   :  { %9686 = vmatmul.mubr.msk.bf16.vlgmr.msra.gmra.mrb[32].mxu0 %vm881_vm3, %v5640_v37 }
 0x407   :  { %9689 = vmatprep.mubr.msk.bf16.mxu0 %vm881_vm3, %v5642_v10 }
 0x40e   :  { %9690 = vmatmul.mubr.msk.bf16.gmra.mrb[36].mxu0 %vm881_vm3, %v5644_v61  ;;  %v5666_v61 = vsel %vm5635_vm11, %v5663_v19, %v5665_v1  ;;  %v5679_v19 = vrot.slane %v12064_v12, 6 }
 0x40f   :  { %9693 = vmatprep.mubr.msk.bf16.mxu0 %vm881_vm3, %v5646_v45 }
 0x416   :  { %9694 = vmatmul.mubr.msk.bf16.gmra.mrb[40].mxu0 %vm881_vm3, %v5648_v6 }
 0x417   :  { %9697 = vmatprep.mubr.msk.bf16.mxu0 %vm881_vm3, %v5650_v28  ;;  %v5668_v28 = vsel %vm5635_vm11, %v5665_v1, %v5667_v44  ;;  %v5681_v1 = vrot.slane %v12066_v49, 6 }
 0x419   :  { %v5682_v43 = vsel %vm5635_vm11, %v5679_v19, %v5681_v1 }
 0x41e   :  { %9698 = vmatmul.mubr.msk.bf16.gmra.mrb[44].mxu0 %vm881_vm3, %v5652_v63 }
 0x41f   :  { %9701 = vmatprep.mubr.msk.bf16.mxu0 %vm881_vm3, %v5654_v9 }
 0x420   :  { %v9375_v33 = vpop.f32.mrb[60].mxu1 }
 0x421   :  { %v2950_v58 = vpop.f32.mrb[61].mxu1 }
 0x422   :  { %v9376_v14 = vpop.f32.mrb[62].mxu1  ;;  %v5672_v58 = vsel %vm5635_vm11, %v5669_v30, %v5671_v47  ;;  %v5683_v30 = vrot.slane %v12077_v18, 6 }
 0x423   :  { %v2953_v31 = vpop.f32.mrb[63].mxu1 }
 0x424   :  { %v5675_v31 = vrot.slane %v12048_v13, 6  ;;  %v5684_v12 = vsel %vm5635_vm11, %v5681_v1, %v5683_v30 }
 0x426   :  { %9702 = vmatmul.mubr.msk.bf16.gmra.mrb[48].mxu0 %vm881_vm3, %v5656_v39  ;;  %v5676_v38 = vsel %vm5635_vm11, %v5673_v27, %v5675_v31  ;;  %v5678_v11 = vsel %vm5635_vm11, %v5675_v31, %v5677_v23 }
 0x427   :  { %9705 = vmatprep.mubr.msk.bf16.mxu0 %vm881_vm3, %v5658_v20 }
 0x428   :  { %v12360_v41 = vpop.f32.mrb[64].mxu1 }
 0x429   :  { %v12362_v50 = vpop.f32.mrb[65].mxu1 }
 0x42a   :  { %v12365_v60 = vpop.f32.mrb[66].mxu1 }
 0x42b   :  { %v12368_v0 = vpop.f32.mrb[67].mxu1 }
 0x42e   :  { %9706 = vmatmul.mubr.msk.bf16.gmra.mrb[52].mxu0 %vm881_vm3, %v5660_v36 }
 0x42f   :  { %9709 = vmatprep.mubr.msk.bf16.mxu0 %vm881_vm3, %v5662_v5 }
 0x430   :  { %v12374_v35 = vpop.f32.mrb[68].mxu1 }
 0x431   :  { %v12376_v37 = vpop.f32.mrb[69].mxu1 }
 0x432   :  { %v12379_v10 = vpop.f32.mrb[70].mxu1 }
 0x433   :  { %v12382_v62 = vpop.f32.mrb[71].mxu1 }
 0x436   :  { %9710 = vmatmul.mubr.msk.bf16.gmra.mrb[56].mxu0 %vm881_vm3, %v5664_v52  ;;  %v5680_v52 = vsel %vm5635_vm11, %v5677_v23, %v5679_v19  ;;  %v5693_v23 = vrot.slane %v12112_v16, 6  ;;  %v5699_v16 = vrot.slane %v12309_v55, 6  ;;  %v10367_v55 = vld [vmem:[%s13136_s5 + $0x40] sm:$0xff]  }
 0x437   :  { %9713 = vmatprep.mubr.msk.bf16.mxu0 %vm881_vm3, %v5666_v61  ;;  %8986 = vmatprep.subr.bf16.mxu1 %v10367_v55  ;;  %v10377_v55 = vld [vmem:[%s13136_s5 + $0x68] sm:$0xff]  }
 0x438   :  { %v12388_v45 = vpop.f32.mrb[72].mxu1 }
 0x439   :  { %v12390_v40 = vpop.f32.mrb[73].mxu1 }
 0x43a   :  { %v12393_v46 = vpop.f32.mrb[74].mxu1 }
 0x43b   :  { %v12396_v6 = vpop.f32.mrb[75].mxu1 }
 0x43e   :  { %9714 = vmatmul.mubr.msk.bf16.gmra.mrb[60].mxu0 %vm881_vm3, %v5668_v28 }
 0x43f   :  { %9717 = vmatprep.mubr.msk.bf16.mxu0 %vm881_vm3, %v5670_v29  ;;  %v5685_v29 = vrot.slane %v12080_v25, 6 }
 0x440   :  { %v12402_v48 = vpop.f32.mrb[76].mxu1 }
 0x441   :  { %v12404_v63 = vpop.f32.mrb[77].mxu1  ;;  %v5686_v49 = vsel %vm5635_vm11, %v5683_v30, %v5685_v29 }
 0x442   :  { %v12407_v9 = vpop.f32.mrb[78].mxu1 }
 0x443   :  { %v12410_v33 = vpop.f32.mrb[79].mxu1 }
 0x446   :  { %9718 = vmatmul.mubr.msk.bf16.gmra.mrb[64].mxu0 %vm881_vm3, %v5672_v58 }
 0x447   :  { %9721 = vmatprep.mubr.msk.bf16.mxu0 %vm881_vm3, %v5674_v57  ;;  %v5687_v57 = vrot.slane %v12091_v24, 6 }
 0x448   :  { %v9395_v14 = vpop.f32.mrb[80].mxu1 }
 0x449   :  { %v3030_v8 = vpop.f32.mrb[81].mxu1  ;;  %v5688_v31 = vsel %vm5635_vm11, %v5685_v29, %v5687_v57 }
 0x44a   :  { %v9396_v39 = vpop.f32.mrb[82].mxu1  ;;  %v5689_v8 = vrot.slane %v12094_v51, 6  ;;  %v5695_v51 = vrot.slane %v12124_v56, 6  ;;  %v12457_v56 = vld [vmem:[%s13135_s4] ss:$0 sm:$0xff] }
 0x44b   :  { %v3033_v20 = vpop.f32.mrb[83].mxu1  ;;  %v5691_v39 = vrot.slane %v12109_v32, 6 }
 0x44c   :  { %v5690_v25 = vsel %vm5635_vm11, %v5687_v57, %v5689_v8 }
 0x44d   :  { %v5692_v20 = vsel %vm5635_vm11, %v5689_v8, %v5691_v39  ;;  %v5694_v24 = vsel %vm5635_vm11, %v5691_v39, %v5693_v23  ;;  %v10373_v39 = vld [vmem:[%s13136_s5 + $0x58] sm:$0xff]  }
 0x44e   :  { %9722 = vmatmul.mubr.msk.bf16.gmra.mrb[68].mxu0 %vm881_vm3, %v5676_v38  ;;  %v10502_v38 = vld [vmem:[#allocation2 + $0x100] sm:$0xff] }
 0x44f   :  { %9725 = vmatprep.mubr.msk.bf16.mxu0 %vm881_vm3, %v5678_v11  ;;  %v5697_v11 = vrot.slane %v10502_v38, 6 }
 0x450   :  { %v9399_v59 = vpop.f32.mrb[84].mxu1 }
 0x451   :  { %v3046_v36 = vpop.f32.mrb[85].mxu1  ;;  %v5696_v59 = vsel %vm5635_vm11, %v5693_v23, %v5695_v51  ;;  %v5698_v32 = vsel %vm5635_vm11, %v5695_v51, %v5697_v11 }
 0x452   :  { %v9400_v5 = vpop.f32.mrb[86].mxu1  ;;  %v5700_v36 = vsel %vm5635_vm11, %v5697_v11, %v5699_v16 }
 0x453   :  { %v3049_v13 = vpop.f32.mrb[87].mxu1 }
 0x456   :  { %9726 = vmatmul.mubr.msk.bf16.gmra.mrb[72].mxu0 %vm881_vm3, %v5680_v52 }
 0x457   :  { %9729 = vmatprep.mubr.msk.bf16.mxu0 %vm881_vm3, %v5682_v43  ;;  %v10368_v43 = vld [vmem:[%s13136_s5] sm:$0xff]  }
 0x458   :  { %v9403_v61 = vpop.f32.mrb[88].mxu1  ;;  %8987 = vmatpush3.bf16.msra.mxu1 %v10368_v43 }
 0x459   :  { %v3062_v44 = vpop.f32.mrb[89].mxu1  ;;  %v10369_v61 = vld [vmem:[%s13136_s5 + $0x48] sm:$0xff]  }
 0x45a   :  { %v9404_v28 = vpop.f32.mrb[90].mxu1  ;;  %8988 = vmatprep.subr.bf16.mxu1 %v10369_v61 }
 0x45b   :  { %v3065_v47 = vpop.f32.mrb[91].mxu1 }
 0x45e   :  { %9730 = vmatmul.mubr.msk.bf16.gmra.mrb[76].mxu0 %vm881_vm3, %v5684_v12  ;;  %v10370_v12 = vld [vmem:[%s13136_s5 + $0x8] sm:$0xff]  }
 0x45f   :  { %9733 = vmatprep.mubr.msk.bf16.mxu0 %vm881_vm3, %v5686_v49  ;;  %8989 = vmatpush3.bf16.msra.mxu1 %v10370_v12 }
 0x460   :  { %v9407_v27 = vpop.f32.mrb[92].mxu1 }
 0x461   :  { %v3078_v58 = vpop.f32.mrb[93].mxu1 }
 0x462   :  { %v9408_v14 = vpop.f32.mrb[94].mxu1 }
 0x463   :  { %v3081_v18 = vpop.f32.mrb[95].mxu1 }
 0x464   :  { %v10372_v18 = vld [vmem:[%s13136_s5 + $0x10] sm:$0xff]  }
 0x466   :  { %9734 = vmatmul.mubr.msk.bf16.gmra.mrb[80].mxu0 %vm881_vm3, %v5688_v31 }
 0x467   :  { %9737 = vmatprep.mubr.msk.bf16.mxu0 %vm881_vm3, %v5690_v25 }
 0x46e   :  { %9738 = vmatmul.mubr.msk.bf16.gmra.mrb[84].mxu0 %vm881_vm3, %v5692_v20 }
 0x46f   :  { %9741 = vmatprep.mubr.msk.bf16.mxu0 %vm881_vm3, %v5694_v24 }
 0x476   :  { %9742 = vmatmul.mubr.msk.bf16.gmra.mrb[88].mxu0 %vm881_vm3, %v5696_v59 }
 0x477   :  { %9745 = vmatprep.mubr.msk.bf16.mxu0 %vm881_vm3, %v5698_v32 }
 0x47e   :  { %9746 = vmatmul.mubr.msk.bf16.gmra.mrb[92].mxu0 %vm881_vm3, %v5700_v36 }
 0x4d9   :  { %v9687_v5 = vpop.f32.mrb[32].mxu0 }
 0x4da   :  { %v9797_v19 = vadd.f32 %v9687_v5, %v12203_v17  ;;  %v5843_v1 = vpop.f32.mrb[33].mxu0 }
 0x4db   :  { %v9798_v13 = vadd.f32 %v5843_v1, %v12205_v4  ;;  %v9688_v52 = vpop.f32.mrb[34].mxu0  ;;  %v10376_v1 = vld [vmem:[%s13136_s5 + $0x20] sm:$0xff]  }
 0x4dc   :  { %v6171_v44 = vadd.f32 %v9797_v19, %v12457_v56  ;;  %v9799_v17 = vadd.f32 %v9688_v52, %v12209_v15  ;;  %v5846_v30 = vpop.f32.mrb[35].mxu0  ;;  %v10371_v15 = vld [vmem:[%s13136_s5 + $0x50] sm:$0xff]  }
 0x4dd   :  { %v6169_v4 = vadd.f32 %v9798_v13, %v12457_v56  ;;  %v9800_v28 = vadd.f32 %v5846_v30, %v12213_v21  ;;  %8990 = vmatprep.subr.bf16.mxu1 %v10371_v15  ;;  %v10380_v15 = vld [vmem:[%s13136_s5 + $0x30] sm:$0xff]  }
 0x4de   :  { %v6235_v29 = vmax.f32 %v6171_v44, 0.0  ;;  %v6172_v47 = vadd.f32 %v9799_v17, %v12457_v56  ;;  %8991 = vmatpush3.bf16.msra.mxu1 %v10372_v18  ;;  %v13241_v18 = vld [vmem:[#allocation9_spill] sm:$0xff] }
 0x4df   :  { %v6233_v49 = vmax.f32 %v6169_v4, 0.0  ;;  %v6170_v27 = vadd.f32 %v9800_v28, %v12457_v56  ;;  %8992 = vmatprep.subr.bf16.mxu1 %v10373_v39  ;;  %v13242_v39 = vld [vmem:[#allocation11_spill] sm:$0xff] }
 0x4e0   :  { %6300 = vst.msk [vmem:[#allocation3 + $0x10] sm:$0xff] %vm6297_vm12, %v6235_v29  ;;  %v6236_v21 = vmax.f32 %v6172_v47, 0.0 }
 0x4e1   :  { %6298 = vst.msk [vmem:[#allocation3] sm:$0xff] %vm6297_vm12, %v6233_v49  ;;  %v6234_v58 = vmax.f32 %v6170_v27, 0.0  ;;  %v9691_v57 = vpop.f32.mrb[36].mxu0 }
 0x4e2   :  { %6301 = vst.msk [vmem:[#allocation3 + $0x18] sm:$0xff] %vm6297_vm12, %v6236_v21  ;;  %v9801_v14 = vadd.f32 %v9691_v57, %v12219_v53  ;;  %v5859_v8 = vpop.f32.mrb[37].mxu0  ;;  %v13240_v21 = vld [vmem:[#allocation7_spill] sm:$0xff] }
 0x4e3   :  { %6299 = vst.msk [vmem:[#allocation3 + $0x8] sm:$0xff] %vm6297_vm12, %v6234_v58  ;;  %v9802_v31 = vadd.f32 %v5859_v8, %v12221_v54  ;;  %v9692_v25 = vpop.f32.mrb[38].mxu0  ;;  %v10374_v54 = vld [vmem:[%s13136_s5 + $0x18] sm:$0xff]  }
 0x4e4   :  { %v6175_v23 = vadd.f32 %v9801_v14, %v12457_v56  ;;  %v9803_v53 = vadd.f32 %v9692_v25, %v12225_v3  ;;  %v5862_v20 = vpop.f32.mrb[39].mxu0  ;;  %v10375_v3 = vld [vmem:[%s13136_s5 + $0x60] sm:$0xff]   ;;  %8993 = vmatpush3.bf16.msra.mxu1 %v10374_v54  ;;  %v10381_v14 = vld [vmem:[%s13136_s5 + $0x78] sm:$0xff]  }
 0x4e5   :  { %v6173_v24 = vadd.f32 %v9802_v31, %v12457_v56  ;;  %v9804_v51 = vadd.f32 %v5862_v20, %v12229_v2  ;;  %8994 = vmatprep.subr.bf16.mxu1 %v10375_v3 }
 0x4e6   :  { %v6239_v38 = vmax.f32 %v6175_v23, 0.0  ;;  %v6176_v11 = vadd.f32 %v9803_v53, %v12457_v56 }
 0x4e7   :  { %v6237_v59 = vmax.f32 %v6173_v24, 0.0  ;;  %v6174_v32 = vadd.f32 %v9804_v51, %v12457_v56  ;;  %v10382_v24 = vld [vmem:[%s13136_s5 + $0x38] sm:$0xff]  }
 0x4e8   :  { %6304 = vst.msk [vmem:[#allocation3 + $0x30] sm:$0xff] %vm6297_vm12, %v6239_v38  ;;  %v6240_v16 = vmax.f32 %v6176_v11, 0.0  ;;  %8995 = vmatpush3.bf16.msra.mxu1 %v10376_v1 }
 0x4e9   :  { %6302 = vst.msk [vmem:[#allocation3 + $0x20] sm:$0xff] %vm6297_vm12, %v6237_v59  ;;  %v6238_v2 = vmax.f32 %v6174_v32, 0.0  ;;  %v9695_v36 = vpop.f32.mrb[40].mxu0  ;;  %8996 = vmatprep.subr.bf16.mxu1 %v10377_v55 }
 0x4ea   :  { %6305 = vst.msk [vmem:[#allocation3 + $0x38] sm:$0xff] %vm6297_vm12, %v6240_v16  ;;  %v9805_v5 = vadd.f32 %v9695_v36, %v12235_v42  ;;  %v5875_v19 = vpop.f32.mrb[41].mxu0 }
 0x4eb   :  { %6303 = vst.msk [vmem:[#allocation3 + $0x28] sm:$0xff] %vm6297_vm12, %v6238_v2  ;;  %v9806_v13 = vadd.f32 %v5875_v19, %v12237_v22  ;;  %v9696_v52 = vpop.f32.mrb[42].mxu0  ;;  %v10378_v22 = vld [vmem:[%s13136_s5 + $0x28] sm:$0xff]  }
 0x4ec   :  { %v6179_v43 = vadd.f32 %v9805_v5, %v12457_v56  ;;  %v9807_v42 = vadd.f32 %v9696_v52, %v12241_v26  ;;  %v5878_v61 = vpop.f32.mrb[43].mxu0  ;;  %v10379_v26 = vld [vmem:[%s13136_s5 + $0x70] sm:$0xff]   ;;  %8997 = vmatpush3.bf16.msra.mxu1 %v10378_v22 }
 0x4ed   :  { %v6177_v44 = vadd.f32 %v9806_v13, %v12457_v56  ;;  %v9808_v17 = vadd.f32 %v5878_v61, %v12245_v34  ;;  %8998 = vmatprep.subr.bf16.mxu1 %v10379_v26 }
 0x4ee   :  { %v6243_v30 = vmax.f32 %v6179_v43, 0.0  ;;  %v6180_v4 = vadd.f32 %v9807_v42, %v12457_v56 }
 0x4ef   :  { %v6241_v28 = vmax.f32 %v6177_v44, 0.0  ;;  %v6178_v29 = vadd.f32 %v9808_v17, %v12457_v56 }
 0x4f0   :  { %6308 = vst.msk [vmem:[#allocation3 + $0x50] sm:$0xff] %vm6297_vm12, %v6243_v30  ;;  %v6244_v47 = vmax.f32 %v6180_v4, 0.0  ;;  %8999 = vmatpush3.bf16.msra.mxu1 %v10380_v15  ;;  %v6376_v15 = vld [vmem:[#allocation3 + $0x2] sm:$0x1] }
 0x4f1   :  { %6306 = vst.msk [vmem:[#allocation3 + $0x40] sm:$0xff] %vm6297_vm12, %v6241_v28  ;;  %v6242_v34 = vmax.f32 %v6178_v29, 0.0  ;;  %v9699_v12 = vpop.f32.mrb[44].mxu0  ;;  %9000 = vmatprep.subr.bf16.mxu1 %v10381_v14  ;;  %v12563_v14 = vld [vmem:[#allocation3 + $0x6] sm:$0x1] }
 0x4f2   :  { %6309 = vst.msk [vmem:[#allocation3 + $0x58] sm:$0xff] %vm6297_vm12, %v6244_v47  ;;  %v9809_v49 = vadd.f32 %v9699_v12, %v12251_v7  ;;  %v5891_v27 = vpop.f32.mrb[45].mxu0 }
 0x4f3   :  { %6307 = vst.msk [vmem:[#allocation3 + $0x48] sm:$0xff] %vm6297_vm12, %v6242_v34  ;;  %v9810_v58 = vadd.f32 %v5891_v27, %v13240_v21  ;;  %v9700_v57 = vpop.f32.mrb[46].mxu0  ;;  %v6378_v21 = vld [vmem:[#allocation3 + $0x3] sm:$0x1] }
 0x4f4   :  { %v6183_v8 = vadd.f32 %v9809_v49, %v12457_v56  ;;  %v9811_v7 = vadd.f32 %v9700_v57, %v13241_v18  ;;  %v5894_v31 = vpop.f32.mrb[47].mxu0  ;;  %9001 = vmatpush3.bf16.msra.mxu1 %v10382_v24  ;;  %v6382_v57 = vld [vmem:[#allocation3 + $0xf] sm:$0x1]  ;;  %v12568_v18 = vld [vmem:[#allocation3 + $0x7] sm:$0x1] }
 0x4f5   :  { %v6181_v25 = vadd.f32 %v9810_v58, %v12457_v56  ;;  %v9812_v23 = vadd.f32 %v5894_v31, %v13242_v39  ;;  %v6434_v39 = vld [vmem:[#allocation3 + $0x1b] sm:$0x1] }
 0x4f6   :  { %v6247_v53 = vmax.f32 %v6183_v8, 0.0  ;;  %v6184_v20 = vadd.f32 %v9811_v7, %v12457_v56  ;;  %v12565_v8 = vld [vmem:[#allocation3 + $0x13] sm:$0x1] }
 0x4f7   :  { %v6245_v51 = vmax.f32 %v6181_v25, 0.0  ;;  %v6182_v38 = vadd.f32 %v9812_v23, %v12457_v56  ;;  %v6432_v25 = vld [vmem:[#allocation3 + $0x1a] sm:$0x1]  ;;  %v6440_v23 = vld [vmem:[#allocation3 + $0x28] sm:$0x1] }
 0x4f8   :  { %6312 = vst.msk [vmem:[#allocation3 + $0x70] sm:$0xff] %vm6297_vm12, %v6247_v53  ;;  %v6248_v11 = vmax.f32 %v6184_v20, 0.0  ;;  %v12571_v53 = vld [vmem:[#allocation3 + $0x2b] sm:$0x1] }
 0x4f9   :  { %6310 = vst.msk [vmem:[#allocation3 + $0x60] sm:$0xff] %vm6297_vm12, %v6245_v51  ;;  %v6246_v54 = vmax.f32 %v6182_v38, 0.0  ;;  %v9703_v59 = vpop.f32.mrb[48].mxu0  ;;  %v6460_v38 = vld [vmem:[#allocation3 + $0x1e] sm:$0x1] }
 0x4fa   :  { %6313 = vst.msk [vmem:[#allocation3 + $0x78] sm:$0xff] %vm6297_vm12, %v6248_v11  ;;  %v5907_v32 = vpop.f32.mrb[49].mxu0  ;;  %v6462_v11 = vld [vmem:[#allocation3 + $0x1f] sm:$0x1]  ;;  %v6494_v59 = vld [vmem:[#allocation3 + $0x2f] sm:$0x1] }
 0x4fb   :  { %6311 = vst.msk [vmem:[#allocation3 + $0x68] sm:$0xff] %vm6297_vm12, %v6246_v54  ;;  %v9704_v3 = vpop.f32.mrb[50].mxu0  ;;  %v6468_v54 = vld [vmem:[#allocation3 + $0x2c] sm:$0x1]  ;;  %v6496_v32 = vld [vmem:[#allocation3 + $0x30] sm:$0x1] }
 0x4fc   :  { %v5910_v16 = vpop.f32.mrb[51].mxu0 }
 0x501   :  { %v9707_v2 = vpop.f32.mrb[52].mxu0 }
 0x502   :  { %v5923_v36 = vpop.f32.mrb[53].mxu0  ;;  %v6380_v2 = vmax.f32 %v6376_v15, %v6378_v21  ;;  %v6464_v15 = vmax.f32 %v6460_v38, %v6462_v11 }
 0x503   :  { %v9708_v5 = vpop.f32.mrb[54].mxu0  ;;  %v6408_v36 = vmax.f32 %v12563_v14, %v12568_v18  ;;  %v12611_v14 = vld [vmem:[#allocation3 + $0x5c] sm:$0x1] }
 0x504   :  { %v5926_v19 = vpop.f32.mrb[55].mxu0  ;;  %v6438_v5 = vld [vmem:[#allocation3 + $0x27] sm:$0x1] }
 0x505   :  { %v6488_v19 = vld [vmem:[#allocation3 + $0x22] sm:$0x1] }
 0x509   :  { %v9711_v1 = vpop.f32.mrb[56].mxu0 }
 0x50a   :  { %v5939_v13 = vpop.f32.mrb[57].mxu0  ;;  %v12579_v1 = vld [vmem:[#allocation3 + $0x36] sm:$0x1] }
 0x50b   :  { %v9712_v52 = vpop.f32.mrb[58].mxu0 }
 0x50c   :  { %v5942_v55 = vpop.f32.mrb[59].mxu0 }
 0x511   :  { %v9715_v43 = vpop.f32.mrb[60].mxu0 }
 0x512   :  { %v5955_v42 = vpop.f32.mrb[61].mxu0  ;;  %v6442_v43 = vmax.f32 %v6438_v5, %v6440_v23 }
 0x513   :  { %v9716_v61 = vpop.f32.mrb[62].mxu0  ;;  %v6490_v42 = vld [vmem:[#allocation3 + $0x23] sm:$0x1] }
 0x514   :  { %v5958_v44 = vpop.f32.mrb[63].mxu0  ;;  %v12584_v61 = vld [vmem:[#allocation3 + $0x37] sm:$0x1]  ;;  %v6492_v21 = vmax.f32 %v6488_v19, %v6490_v42 }
 0x519   :  { %v9719_v17 = vpop.f32.mrb[64].mxu0 }
 0x51a   :  { %v9829_v30 = vadd.f32 %v9719_v17, %v12360_v41  ;;  %v5971_v4 = vpop.f32.mrb[65].mxu0  ;;  %v6470_v17 = vmax.f32 %v12571_v53, %v6468_v54 }
 0x51b   :  { %v9830_v22 = vadd.f32 %v5971_v4, %v12362_v50  ;;  %v9720_v28 = vpop.f32.mrb[66].mxu0  ;;  %v6384_v50 = vld [vmem:[#allocation3 + $0x10] sm:$0x1]  ;;  %v12589_v4 = vld [vmem:[#allocation3 + $0x43] sm:$0x1] }
 0x51c   :  { %v6203_v29 = vadd.f32 %v9829_v30, %v12457_v56  ;;  %v9831_v26 = vadd.f32 %v9720_v28, %v12365_v60  ;;  %v5974_v47 = vpop.f32.mrb[67].mxu0  ;;  %v6386_v51 = vmax.f32 %v6382_v57, %v6384_v50  ;;  %v6498_v30 = vmax.f32 %v6494_v59, %v6496_v32  ;;  %v12593_v28 = vld [vmem:[#allocation3 + $0x3b] sm:$0x1]  ;;  %v12607_v57 = vld [vmem:[#allocation3 + $0x4f] sm:$0x1] }
 0x51d   :  { %v6201_v34 = vadd.f32 %v9830_v22, %v12457_v56  ;;  %v9832_v12 = vadd.f32 %v5974_v47, %v12368_v0  ;;  %v6412_v0 = vld [vmem:[#allocation3 + $0x14] sm:$0x1]  ;;  %v12591_v22 = vld [vmem:[#allocation3 + $0x3a] sm:$0x1]  ;;  %v6436_v47 = vmax.f32 %v6432_v25, %v6434_v39  ;;  %v12609_v50 = vld [vmem:[#allocation3 + $0x5b] sm:$0x1]  ;;  %v6520_v25 = vmax.f32 %v12579_v1, %v12584_v61 }
 0x51e   :  { %v6267_v49 = vmax.f32 %v6203_v29, 0.0  ;;  %v6204_v27 = vadd.f32 %v9831_v26, %v12457_v56  ;;  %v6414_v55 = vmax.f32 %v12565_v8, %v6412_v0  ;;  %v12596_v26 = vmax.f32 %v6380_v2, %v6386_v51 }
 0x51f   :  { %v6265_v58 = vmax.f32 %v6201_v34, 0.0  ;;  %v6202_v41 = vadd.f32 %v9832_v12, %v12457_v56  ;;  %v12598_v34 = vld [vmem:[#allocation3 + $0x44] sm:$0x1]  ;;  %v12600_v12 = vld [vmem:[#allocation3 + $0x48] sm:$0x1]  ;;  %v12623_v51 = vmax.f32 %v6492_v21, %v6498_v30  ;;  %v6548_v38 = vmax.f32 %v12591_v22, %v12593_v28 }
 0x520   :  { %6332 = vst.msk [vmem:[#allocation3 + $0x110] sm:$0xff] %vm6297_vm12, %v6267_v49  ;;  %v6268_v60 = vmax.f32 %v6204_v27, 0.0  ;;  %v6582_v61 = vmax.f32 %v12609_v50, %v12611_v14  ;;  %v12654_v22 = vld [vmem:[#allocation3 + $0x60] sm:$0x1]  ;;  %v12656_v28 = vld [vmem:[#allocation3 + $0x63] sm:$0x1] }
 0x521   :  { %6330 = vst.msk [vmem:[#allocation3 + $0x100] sm:$0xff] %vm6297_vm12, %v6265_v58  ;;  %v6266_v7 = vmax.f32 %v6202_v41, 0.0  ;;  %v9723_v31 = vpop.f32.mrb[68].mxu0  ;;  %v12603_v58 = vld [vmem:[#allocation3 + $0x47] sm:$0x1] }
 0x522   :  { %6333 = vst.msk [vmem:[#allocation3 + $0x118] sm:$0xff] %vm6297_vm12, %v6268_v60  ;;  %v9833_v20 = vadd.f32 %v9723_v31, %v12374_v35  ;;  %v5987_v24 = vpop.f32.mrb[69].mxu0  ;;  %v12605_v41 = vld [vmem:[#allocation3 + $0x4e] sm:$0x1]  ;;  %v12616_v31 = vmax.f32 %v6436_v47, %v6442_v43  ;;  %v6554_v2 = vmax.f32 %v12603_v58, %v12600_v12 }
 0x523   :  { %6331 = vst.msk [vmem:[#allocation3 + $0x108] sm:$0xff] %vm6297_vm12, %v6266_v7  ;;  %v9834_v3 = vadd.f32 %v5987_v24, %v12376_v37  ;;  %v9724_v16 = vpop.f32.mrb[70].mxu0  ;;  %v12614_v7 = vmax.f32 %v6408_v36, %v6414_v55  ;;  %v12621_v24 = vmax.f32 %v6464_v15, %v6470_v17  ;;  %v6576_v42 = vmax.f32 %v12605_v41, %v12607_v57 }
 0x524   :  { %v6207_v35 = vadd.f32 %v9833_v20, %v12457_v56  ;;  %v9835_v13 = vadd.f32 %v9724_v16, %v12379_v10  ;;  %v5990_v52 = vpop.f32.mrb[71].mxu0  ;;  %v6526_v16 = vmax.f32 %v12589_v4, %v12598_v34 }
 0x525   :  { %v6205_v37 = vadd.f32 %v9834_v3, %v12457_v56  ;;  %v9836_v44 = vadd.f32 %v5990_v52, %v12382_v62 }
 0x526   :  { %v6271_v10 = vmax.f32 %v6207_v35, 0.0  ;;  %v6208_v29 = vadd.f32 %v9835_v13, %v12457_v56  ;;  %v12635_v13 = vld [vmem:[#allocation3 + $0x52] sm:$0x1] }
 0x527   :  { %v6269_v62 = vmax.f32 %v6205_v37, 0.0  ;;  %v6206_v49 = vadd.f32 %v9836_v44, %v12457_v56  ;;  %v6411_v27 = vld [vmem:[#allocation3 + $0x113] sm:$0x1]  ;;  %v6385_v0 = vld [vmem:[#allocation3 + $0x110] sm:$0x1] }
 0x528   :  { %6336 = vst.msk [vmem:[#allocation3 + $0x130] sm:$0xff] %vm6297_vm12, %v6271_v10  ;;  %v6272_v8 = vmax.f32 %v6208_v29, 0.0  ;;  %v6377_v60 = vld [vmem:[#allocation3 + $0x102] sm:$0x1]  ;;  %v6379_v18 = vld [vmem:[#allocation3 + $0x103] sm:$0x1] }
 0x529   :  { %6334 = vst.msk [vmem:[#allocation3 + $0x120] sm:$0xff] %vm6297_vm12, %v6269_v62  ;;  %v6270_v39 = vmax.f32 %v6206_v49, 0.0  ;;  %v9727_v23 = vpop.f32.mrb[72].mxu0  ;;  %v6405_v53 = vld [vmem:[#allocation3 + $0x106] sm:$0x1]  ;;  %v6381_v19 = vmax.f32 %v6377_v60, %v6379_v18  ;;  %v10383_v44 = vld [vmem:[%s13136_s5 + $0xc0] sm:$0xff]   ;;  %v12661_v62 = vmax.f32 %v6520_v25, %v6526_v16  ;;  %v12671_v60 = vmax.f32 %v6576_v42, %v6582_v61 }
 0x52a   :  { %v6407_v20 = vld [vmem:[#allocation3 + $0x107] sm:$0x1]  ;;  %6337 = vst.msk [vmem:[#allocation3 + $0x138] sm:$0xff] %vm6297_vm12, %v6272_v8  ;;  %v9837_v11 = vadd.f32 %v9727_v23, %v12388_v45  ;;  %v6003_v54 = vpop.f32.mrb[73].mxu0  ;;  %v6383_v59 = vld [vmem:[#allocation3 + $0x10f] sm:$0x1]  ;;  %9008 = vmatprep.subr.bf16.mxu1 %v10383_v44  ;;  %v12669_v8 = vmax.f32 %v6548_v38, %v6554_v2 }
 0x52b   :  { %v6409_v32 = vmax.f32 %v6405_v53, %v6407_v20  ;;  %v6413_v3 = vld [vmem:[#allocation3 + $0x114] sm:$0x1]  ;;  %6335 = vst.msk [vmem:[#allocation3 + $0x128] sm:$0xff] %vm6297_vm12, %v6270_v39  ;;  %v9838_v36 = vadd.f32 %v6003_v54, %v12390_v40  ;;  %v9728_v5 = vpop.f32.mrb[74].mxu0  ;;  %v6387_v1 = vmax.f32 %v6383_v59, %v6385_v0  ;;  %v12637_v45 = vld [vmem:[#allocation3 + $0x53] sm:$0x1] }
 0x52c   :  { %v6415_v35 = vmax.f32 %v6411_v27, %v6413_v3  ;;  %v6211_v52 = vadd.f32 %v9837_v11, %v12457_v56  ;;  %v9839_v55 = vadd.f32 %v9728_v5, %v12393_v46  ;;  %v6006_v43 = vpop.f32.mrb[75].mxu0  ;;  %v12645_v40 = vld [vmem:[#allocation3 + $0x56] sm:$0x1]  ;;  %v12647_v37 = vld [vmem:[#allocation3 + $0x57] sm:$0x1]  ;;  %v6604_v49 = vmax.f32 %v12635_v13, %v12637_v45 }
 0x52d   :  { %v6209_v17 = vadd.f32 %v9838_v36, %v12457_v56  ;;  %v9840_v30 = vadd.f32 %v6006_v43, %v12396_v6  ;;  %v6389_v46 = vmax.f32 %v6381_v19, %v6387_v1  ;;  %v12658_v10 = vld [vmem:[#allocation3 + $0x64] sm:$0x1]  ;;  %v6433_v34 = vld [vmem:[#allocation3 + $0x11a] sm:$0x1]  ;;  %v6435_v12 = vld [vmem:[#allocation3 + $0x11b] sm:$0x1]  ;;  %v6632_v18 = vmax.f32 %v12645_v40, %v12647_v37 }
 0x52e   :  { %v6417_v4 = vmax.f32 %v6409_v32, %v6415_v35  ;;  %v6275_v29 = vmax.f32 %v6211_v52, 0.0  ;;  %v6212_v47 = vadd.f32 %v9839_v55, %v12457_v56  ;;  %v12665_v27 = vld [vmem:[#allocation3 + $0x5f] sm:$0x1]  ;;  %v6461_v41 = vld [vmem:[#allocation3 + $0x11e] sm:$0x1]  ;;  %v6437_v16 = vmax.f32 %v6433_v34, %v6435_v12 }
 0x52f   :  { %v6273_v6 = vmax.f32 %v6209_v17, 0.0  ;;  %v6210_v15 = vadd.f32 %v9840_v30, %v12457_v56  ;;  %v6720_v21 = vrot.slane %v6389_v46, 7  ;;  %v6463_v50 = vld [vmem:[#allocation3 + $0x11f] sm:$0x1]  ;;  %v12675_v0 = vld [vmem:[#allocation3 + $0x78] sm:$0x1]  ;;  %v6610_v54 = vmax.f32 %v12665_v27, %v12654_v22 }
 0x530   :  { %v6732_v58 = vrot.slane %v6417_v4, 7  ;;  %6340 = vst.msk [vmem:[#allocation3 + $0x150] sm:$0xff] %vm6297_vm12, %v6275_v29  ;;  %v6276_v57 = vmax.f32 %v6212_v47, 0.0  ;;  %v6489_v14 = vld [vmem:[#allocation3 + $0x122] sm:$0x1]  ;;  %v6465_v1 = vmax.f32 %v6461_v41, %v6463_v50 }
 0x531   :  { %6338 = vst.msk [vmem:[#allocation3 + $0x140] sm:$0xff] %vm6297_vm12, %v6273_v6  ;;  %v6274_v25 = vmax.f32 %v6210_v15, 0.0  ;;  %v9731_v39 = vpop.f32.mrb[76].mxu0  ;;  %v6721_v23 = vsel %vm6715_vm13, %v6720_v21, %v12596_v26  ;;  %v6439_v20 = vld [vmem:[#allocation3 + $0x127] sm:$0x1]  ;;  %v6638_v26 = vmax.f32 %v12656_v28, %v12658_v10 }
 0x532   :  { %v6733_v53 = vsel %vm6715_vm13, %v6732_v58, %v12614_v7  ;;  %v6491_v38 = vld [vmem:[#allocation3 + $0x123] sm:$0x1]  ;;  %v6497_v11 = vld [vmem:[#allocation3 + $0x130] sm:$0x1]  ;;  %6341 = vst.msk [vmem:[#allocation3 + $0x158] sm:$0xff] %vm6297_vm12, %v6276_v57  ;;  %v9841_v59 = vadd.f32 %v9731_v39, %v12402_v48  ;;  %v6019_v32 = vpop.f32.mrb[77].mxu0  ;;  %v12712_v58 = vmax.f32 %v6604_v49, %v6610_v54 }
 0x533   :  { %v10317_v3 = vpack.i.bf16 %v6721_v23, %v6733_v53  ;;  %v6441_v2 = vld [vmem:[#allocation3 + $0x128] sm:$0x1]  ;;  %v6467_v36 = vld [vmem:[#allocation3 + $0x12b] sm:$0x1]  ;;  %6339 = vst.msk [vmem:[#allocation3 + $0x148] sm:$0xff] %vm6297_vm12, %v6274_v25  ;;  %v9842_v7 = vadd.f32 %v6019_v32, %v12404_v63  ;;  %v9732_v5 = vpop.f32.mrb[78].mxu0  ;;  %v6493_v52 = vmax.f32 %v6489_v14, %v6491_v38  ;;  %v12715_v25 = vmax.f32 %v6632_v18, %v6638_v26 }
 0x534   :  { %v6443_v19 = vmax.f32 %v6439_v20, %v6441_v2  ;;  %v6469_v35 = vld [vmem:[#allocation3 + $0x12c] sm:$0x1]  ;;  %v6495_v55 = vld [vmem:[#allocation3 + $0x12f] sm:$0x1]  ;;  %v6215_v48 = vadd.f32 %v9841_v59, %v12457_v56  ;;  %v9843_v43 = vadd.f32 %v9732_v5, %v12407_v9  ;;  %v6022_v42 = vpop.f32.mrb[79].mxu0 }
 0x535   :  { %10318 = vrot.lane.b32.xlu0 %v10317_v3, %s10530_s26  ;;  %v6471_v61 = vmax.f32 %v6467_v36, %v6469_v35  ;;  %v6499_v40 = vmax.f32 %v6495_v55, %v6497_v11  ;;  %v12693_v37 = vld [vmem:[#allocation3 + $0x6a] sm:$0x1]  ;;  %v12695_v44 = vld [vmem:[#allocation3 + $0x77] sm:$0x1]  ;;  %v6213_v63 = vadd.f32 %v9842_v7, %v12457_v56  ;;  %v9844_v17 = vadd.f32 %v6022_v42, %v12410_v33  ;;  %v12699_v46 = vld [vmem:[#allocation3 + $0x6b] sm:$0x1] }
 0x536   :  { %v6445_v30 = vmax.f32 %v6437_v16, %v6443_v19  ;;  %v6666_v9 = vmax.f32 %v12695_v44, %v12675_v0  ;;  %v12703_v4 = vld [vmem:[#allocation3 + $0x6e] sm:$0x1]  ;;  %v12705_v22 = vld [vmem:[#allocation3 + $0x6f] sm:$0x1]  ;;  %v6279_v28 = vmax.f32 %v6215_v48, 0.0  ;;  %v6216_v10 = vadd.f32 %v9843_v43, %v12457_v56 }
 0x537   :  { %v6473_v29 = vmax.f32 %v6465_v1, %v6471_v61  ;;  %v6501_v47 = vmax.f32 %v6493_v52, %v6499_v40  ;;  %v6517_v34 = vld [vmem:[#allocation3 + $0x136] sm:$0x1]  ;;  %v6519_v12 = vld [vmem:[#allocation3 + $0x137] sm:$0x1]  ;;  %v6277_v27 = vmax.f32 %v6213_v63, 0.0  ;;  %v6214_v33 = vadd.f32 %v9844_v17, %v12457_v56 }
 0x538   :  { %v6744_v6 = vrot.slane %v6445_v30, 7  ;;  %v6545_v15 = vld [vmem:[#allocation3 + $0x13a] sm:$0x1]  ;;  %v6547_v21 = vld [vmem:[#allocation3 + $0x13b] sm:$0x1]  ;;  %6344 = vst.msk [vmem:[#allocation3 + $0x170] sm:$0xff] %vm6297_vm12, %v6279_v28  ;;  %v6660_v39 = vmax.f32 %v12693_v37, %v12699_v46  ;;  %v6521_v45 = vmax.f32 %v6517_v34, %v6519_v12  ;;  %v6688_v59 = vmax.f32 %v12703_v4, %v12705_v22 }
 0x539   :  { %v6280_v41 = vmax.f32 %v6216_v10, 0.0  ;;  %v6756_v57 = vrot.slane %v6473_v29, 7  ;;  %v6523_v50 = vld [vmem:[#allocation3 + $0x143] sm:$0x1]  ;;  %v6525_v14 = vld [vmem:[#allocation3 + $0x144] sm:$0x1]  ;;  %v6549_v16 = vmax.f32 %v6545_v15, %v6547_v21 }
 0x53a   :  { %6342 = vst.msk [vmem:[#allocation3 + $0x160] sm:$0xff] %vm6297_vm12, %v6277_v27  ;;  %v6278_v56 = vmax.f32 %v6214_v33, 0.0  ;;  %v9735_v23 = vpop.f32.mrb[80].mxu0  ;;  %v6745_v13 = vsel %vm6715_vm13, %v6744_v6, %v12616_v31  ;;  %v6527_v49 = vmax.f32 %v6523_v50, %v6525_v14  ;;  %v6551_v53 = vld [vmem:[#allocation3 + $0x147] sm:$0x1]  ;;  %v6768_v38 = vrot.slane %v6501_v47, 7 }
 0x53b   :  { %6345 = vst.msk [vmem:[#allocation3 + $0x178] sm:$0xff] %vm6297_vm12, %v6280_v41  ;;  %v6035_v20 = vpop.f32.mrb[81].mxu0  ;;  %v6757_v18 = vsel %vm6715_vm13, %v6756_v57, %v12621_v24  ;;  %v6553_v11 = vld [vmem:[#allocation3 + $0x148] sm:$0x1]  ;;  %v6573_v54 = vld [vmem:[#allocation3 + $0x14e] sm:$0x1] }
 0x53c   :  { %6343 = vst.msk [vmem:[#allocation3 + $0x168] sm:$0xff] %vm6297_vm12, %v6278_v56  ;;  %v9736_v32 = vpop.f32.mrb[82].mxu0  ;;  %v10322_v3 = vpack.i.bf16 %v6745_v13, %v6757_v18  ;;  %v6529_v31 = vmax.f32 %v6521_v45, %v6527_v49  ;;  %v6575_v2 = vld [vmem:[#allocation3 + $0x14f] sm:$0x1]  ;;  %v6579_v36 = vld [vmem:[#allocation3 + $0x15b] sm:$0x1]  ;;  %v6555_v7 = vmax.f32 %v6551_v53, %v6553_v11  ;;  %v6769_v48 = vsel %vm6715_vm13, %v6768_v38, %v12623_v51 }
 0x53d   :  { %v6038_v26 = vpop.f32.mrb[83].mxu0  ;;  %v6577_v5 = vmax.f32 %v6573_v54, %v6575_v2  ;;  %v6581_v19 = vld [vmem:[#allocation3 + $0x15c] sm:$0x1]  ;;  %v6690_v1 = vld [vmem:[#allocation3 + $0x7b] sm:$0x1] }
 0x53e   :  { %10323 = vrot.lane.b32.xlu1 %v10322_v3, %s10530_s26  ;;  %v6780_v24 = vrot.slane %v6529_v31, 7  ;;  %v6583_v35 = vmax.f32 %v6579_v36, %v6581_v19  ;;  %v6601_v52 = vld [vmem:[#allocation3 + $0x152] sm:$0x1]  ;;  %v6692_v55 = vld [vmem:[#allocation3 + $0x7c] sm:$0x1]  ;;  %v6557_v43 = vmax.f32 %v6549_v16, %v6555_v7 }
 0x53f   :  { %v6603_v42 = vld [vmem:[#allocation3 + $0x153] sm:$0x1]  ;;  %v6607_v61 = vld [vmem:[#allocation3 + $0x15f] sm:$0x1]  ;;  %v6629_v17 = vld [vmem:[#allocation3 + $0x156] sm:$0x1]  ;;  %v6694_v34 = vmax.f32 %v6690_v1, %v6692_v55 }
 0x540   :  { %v6781_v40 = vsel %vm6715_vm13, %v6780_v24, %v12661_v62  ;;  %v6585_v63 = vmax.f32 %v6577_v5, %v6583_v35  ;;  %v6631_v30 = vld [vmem:[#allocation3 + $0x157] sm:$0x1]  ;;  %v6792_v10 = vrot.slane %v6557_v43, 7  ;;  %v6605_v33 = vmax.f32 %v6601_v52, %v6603_v42  ;;  %v6399_v4 = vld [vmem:[#allocation3 + $0x112] sm:$0x1] }
 0x541   :  { %v10327_v28 = vpack.i.bf16 %v6769_v48, %v6781_v40  ;;  %v6609_v29 = vld [vmem:[#allocation3 + $0x160] sm:$0x1]  ;;  %v6635_v47 = vld [vmem:[#allocation3 + $0x163] sm:$0x1]  ;;  %v9739_v12 = vpop.f32.mrb[84].mxu0  ;;  %v6633_v62 = vmax.f32 %v6629_v17, %v6631_v30  ;;  %v6668_v24 = vmax.f32 %v6660_v39, %v6666_v9 }
 0x542   :  { %v6804_v27 = vrot.slane %v6585_v63, 7  ;;  %v6611_v6 = vmax.f32 %v6607_v61, %v6609_v29  ;;  %v6637_v15 = vld [vmem:[#allocation3 + $0x164] sm:$0x1]  ;;  %v6051_v51 = vpop.f32.mrb[85].mxu0  ;;  %v6793_v21 = vsel %vm6715_vm13, %v6792_v10, %v12669_v8  ;;  %v6665_v45 = vld [vmem:[#allocation3 + $0x178] sm:$0x1] }
 0x543   :  { %10328 = vrot.lane.b32.xlu0 %v10327_v28, %s10530_s26  ;;  %v6639_v41 = vmax.f32 %v6635_v47, %v6637_v15  ;;  %v6657_v57 = vld [vmem:[#allocation3 + $0x16a] sm:$0x1]  ;;  %v6659_v50 = vld [vmem:[#allocation3 + $0x16b] sm:$0x1]  ;;  %v9740_v14 = vpop.f32.mrb[86].mxu0 }
 0x544   :  { %v6805_v56 = vsel %vm6715_vm13, %v6804_v27, %v12671_v60  ;;  %v6613_v23 = vmax.f32 %v6605_v33, %v6611_v6  ;;  %v6661_v13 = vmax.f32 %v6657_v57, %v6659_v50  ;;  %v6685_v49 = vld [vmem:[#allocation3 + $0x16e] sm:$0x1]  ;;  %v6054_v53 = vpop.f32.mrb[87].mxu0  ;;  %v6663_v38 = vld [vmem:[#allocation3 + $0x177] sm:$0x1] }
 0x545   :  { %v10332_v20 = vpack.i.bf16 %v6793_v21, %v6805_v56  ;;  %v6641_v18 = vmax.f32 %v6633_v62, %v6639_v41  ;;  %v6687_v11 = vld [vmem:[#allocation3 + $0x16f] sm:$0x1]  ;;  %v6667_v32 = vmax.f32 %v6663_v38, %v6665_v45  ;;  %v6691_v8 = vld [vmem:[#allocation3 + $0x17b] sm:$0x1]  ;;  %v6693_v3 = vld [vmem:[#allocation3 + $0x17c] sm:$0x1] }
 0x546   :  { %v6824_v54 = vrot.slane %v6613_v23, 7  ;;  %v6689_v16 = vmax.f32 %v6685_v49, %v6687_v11  ;;  %v6695_v26 = vmax.f32 %v6691_v8, %v6693_v3  ;;  %v6369_v9 = vld [vmem:[#allocation3 + $0x10d] sm:$0x1]  ;;  %v6371_v39 = vld [vmem:[#allocation3 + $0x10e] sm:$0x1] }
 0x547   :  { %10333 = vrot.lane.b32.xlu1 %v10332_v20, %s10530_s26  ;;  %v6836_v31 = vrot.slane %v6641_v18, 7  ;;  %v6669_v2 = vmax.f32 %v6661_v13, %v6667_v32  ;;  %v6391_v61 = vld [vmem:[#allocation3 + $0x104] sm:$0x1]  ;;  %v6393_v40 = vld [vmem:[#allocation3 + $0x105] sm:$0x1]  ;;  %v6373_v17 = vmax.f32 %v6369_v9, %v6371_v39  ;;  %v10389_v9 = vld [vmem:[%s13136_s5 + $0xd8] sm:$0xff]  }
 0x548   :  { %v6825_v60 = vsel %vm6715_vm13, %v6824_v54, %v12712_v58  ;;  %v6697_v35 = vmax.f32 %v6689_v16, %v6695_v26  ;;  %v6397_v63 = vld [vmem:[#allocation3 + $0x111] sm:$0x1]  ;;  %v6363_v22 = vld [vmem:[#allocation3 + $0x100] sm:$0x1]  ;;  %v6395_v30 = vmax.f32 %v6391_v61, %v6393_v40  ;;  %v6368_v29 = vld [vmem:[#allocation3 + $0xd] sm:$0x1] }
 0x549   :  { %v6837_v36 = vsel %vm6715_vm13, %v6836_v31, %v12715_v25  ;;  %v9743_v7 = vpop.f32.mrb[88].mxu0  ;;  %v6848_v19 = vrot.slane %v6669_v2, 7  ;;  %v6696_v25 = vmax.f32 %v6688_v59, %v6694_v34  ;;  %v6365_v59 = vld [vmem:[#allocation3 + $0x101] sm:$0x1]  ;;  %v6401_v28 = vmax.f32 %v6397_v63, %v6399_v4  ;;  %v6370_v47 = vld [vmem:[#allocation3 + $0xe] sm:$0x1] }
 0x54a   :  { %v10337_v5 = vpack.i.bf16 %v6825_v60, %v6837_v36  ;;  %v6067_v1 = vpop.f32.mrb[89].mxu0  ;;  %v6860_v48 = vrot.slane %v6697_v35, 7  ;;  %v6367_v10 = vmax.f32 %v6363_v22, %v6365_v59  ;;  %v6396_v34 = vld [vmem:[#allocation3 + $0x11] sm:$0x1]  ;;  %v6390_v12 = vld [vmem:[#allocation3 + $0x4] sm:$0x1]  ;;  %v6372_v62 = vmax.f32 %v6368_v29, %v6370_v47 }
 0x54b   :  { %v9744_v58 = vpop.f32.mrb[90].mxu0  ;;  %v6849_v55 = vsel %vm6715_vm13, %v6848_v19, %v6668_v24  ;;  %v6392_v27 = vld [vmem:[#allocation3 + $0x5] sm:$0x1]  ;;  %v6398_v33 = vld [vmem:[#allocation3 + $0x12] sm:$0x1]  ;;  %v6403_v15 = vmax.f32 %v6395_v30, %v6401_v28  ;;  %v10385_v24 = vld [vmem:[%s13136_s5 + $0xc8] sm:$0xff]  }
 0x54c   :  { %10338 = vrot.lane.b32.xlu0 %v10337_v5, %s10530_s26  ;;  %v6070_v52 = vpop.f32.mrb[91].mxu0  ;;  %v6861_v43 = vsel %vm6715_vm13, %v6860_v48, %v6696_v25  ;;  %v6375_v6 = vmax.f32 %v6367_v10, %v6373_v17  ;;  %v6362_v51 = vld [vmem:[#allocation3] sm:$0x1]  ;;  %v6364_v21 = vld [vmem:[#allocation3 + $0x1] sm:$0x1]  ;;  %v6394_v41 = vmax.f32 %v6390_v12, %v6392_v27  ;;  %v6400_v57 = vmax.f32 %v6396_v34, %v6398_v33  ;;  %v10384_v5 = vld [vmem:[%s13136_s5 + $0x80] sm:$0xff]  }
 0x54d   :  { %v10342_v42 = vpack.i.bf16 %v6849_v55, %v6861_v43  ;;  %v6453_v50 = vld [vmem:[#allocation3 + $0x129] sm:$0x1]  ;;  %v6455_v14 = vld [vmem:[#allocation3 + $0x12a] sm:$0x1]  ;;  %v6366_v56 = vmax.f32 %v6362_v51, %v6364_v21  ;;  %v6727_v13 = vrot.slane %v6403_v15, 7  ;;  %v10386_v52 = vld [vmem:[%s13136_s5 + $0x88] sm:$0xff]  }
 0x54e   :  { %v6714_v23 = vrot.slane %v6375_v6, 7  ;;  %v6447_v45 = vld [vmem:[#allocation3 + $0x11c] sm:$0x1]  ;;  %v6449_v49 = vld [vmem:[#allocation3 + $0x11d] sm:$0x1]  ;;  %v6457_v53 = vmax.f32 %v6453_v50, %v6455_v14  ;;  %v6402_v38 = vmax.f32 %v6394_v41, %v6400_v57  ;;  %v10387_v48 = vld [vmem:[%s13136_s5 + $0xd0] sm:$0xff]  }
 0x54f   :  { %10343 = vrot.lane.b32.xlu1 %v10342_v42, %s10530_s26  ;;  %v6374_v20 = vmax.f32 %v6366_v56, %v6372_v62  ;;  %v6451_v32 = vmax.f32 %v6447_v45, %v6449_v49  ;;  %v6452_v31 = vld [vmem:[#allocation3 + $0x29] sm:$0x1]  ;;  %v6454_v16 = vld [vmem:[#allocation3 + $0x2a] sm:$0x1]  ;;  %v6446_v19 = vld [vmem:[#allocation3 + $0x1c] sm:$0x1] }
 0x550   :  { %v6728_v3 = vsel %vm6715_vm13, %v6727_v13, %v6402_v38  ;;  %v6448_v1 = vld [vmem:[#allocation3 + $0x1d] sm:$0x1]  ;;  %v6456_v35 = vmax.f32 %v6452_v31, %v6454_v16  ;;  %v10390_v39 = vld [vmem:[%s13136_s5 + $0x98] sm:$0xff]   ;;  %v10391_v61 = vld [vmem:[%s13136_s5 + $0xe0] sm:$0xff]  }
 0x551   :  { %v9747_v0 = vpop.f32.mrb[92].mxu0  ;;  %v6716_v8 = vsel %vm6715_vm13, %v6714_v23, %v6374_v20  ;;  %v6459_v36 = vmax.f32 %v6451_v32, %v6457_v53  ;;  %v6450_v58 = vmax.f32 %v6446_v19, %v6448_v1  ;;  %v6419_v40 = vld [vmem:[#allocation3 + $0x108] sm:$0x1]  ;;  %v6421_v63 = vld [vmem:[#allocation3 + $0x109] sm:$0x1]  ;;  %v10392_v30 = vld [vmem:[%s13136_s5 + $0xa0] sm:$0xff]  }
 0x552   :  { %v6083_v37 = vpop.f32.mrb[93].mxu0  ;;  %v6509_v4 = vld [vmem:[#allocation3 + $0x141] sm:$0x1]  ;;  %v6511_v22 = vld [vmem:[#allocation3 + $0x142] sm:$0x1]  ;;  %v6423_v28 = vmax.f32 %v6419_v40, %v6421_v63  ;;  %v10393_v10 = vld [vmem:[%s13136_s5 + $0xe8] sm:$0xff]  }
 0x553   :  { %v9748_v44 = vpop.f32.mrb[94].mxu0  ;;  %v6751_v25 = vrot.slane %v6459_v36, 7  ;;  %v6458_v43 = vmax.f32 %v6450_v58, %v6456_v35  ;;  %v6425_v59 = vld [vmem:[#allocation3 + $0x115] sm:$0x1]  ;;  %v6427_v17 = vld [vmem:[#allocation3 + $0x116] sm:$0x1]  ;;  %v6513_v34 = vmax.f32 %v6509_v4, %v6511_v22 }
 0x554   :  { %v6086_v46 = vpop.f32.mrb[95].mxu0  ;;  %v10388_v44 = vld [vmem:[%s13136_s5 + $0x90] sm:$0xff]   ;;  %v6503_v29 = vld [vmem:[#allocation3 + $0x134] sm:$0x1]  ;;  %v6505_v47 = vld [vmem:[#allocation3 + $0x135] sm:$0x1]  ;;  %v6429_v12 = vmax.f32 %v6425_v59, %v6427_v17 }
 0x555   :  { %v6752_v0 = vsel %vm6715_vm13, %v6751_v25, %v6458_v43  ;;  %v6418_v27 = vld [vmem:[#allocation3 + $0x8] sm:$0x1]  ;;  %v6420_v33 = vld [vmem:[#allocation3 + $0x9] sm:$0x1]  ;;  %v10394_v6 = vld [vmem:[%s13136_s5 + $0xa8] sm:$0xff]   ;;  %v6507_v15 = vmax.f32 %v6503_v29, %v6505_v47 }
 0x556   :  { %v6431_v51 = vmax.f32 %v6423_v28, %v6429_v12  ;;  %v10395_v21 = vld [vmem:[%s13136_s5 + $0xf0] sm:$0xff]   ;;  %v6424_v57 = vld [vmem:[#allocation3 + $0x15] sm:$0x1]  ;;  %v6426_v50 = vld [vmem:[#allocation3 + $0x16] sm:$0x1]  ;;  %v6422_v56 = vmax.f32 %v6418_v27, %v6420_v33 }
 0x557   :  { %v6508_v62 = vld [vmem:[#allocation3 + $0x41] sm:$0x1]  ;;  %v6510_v41 = vld [vmem:[#allocation3 + $0x42] sm:$0x1]  ;;  %v6515_v14 = vmax.f32 %v6507_v15, %v6513_v34  ;;  %v6502_v23 = vld [vmem:[#allocation3 + $0x34] sm:$0x1]  ;;  %v6428_v20 = vmax.f32 %v6424_v57, %v6426_v50 }
 0x558   :  { %v6504_v13 = vld [vmem:[#allocation3 + $0x35] sm:$0x1]  ;;  %v10396_v49 = vld [vmem:[%s13136_s5 + $0xb0] sm:$0xff]   ;;  %v6512_v53 = vmax.f32 %v6508_v62, %v6510_v41  ;;  %v10397_v38 = vld [vmem:[%s13136_s5 + $0xf8] sm:$0xff]  }
 0x559   :  { %v6775_v32 = vrot.slane %v6515_v14, 7  ;;  %v10398_v31 = vld [vmem:[%s13136_s5 + $0xb8] sm:$0xff]   ;;  %v10401_v1 = vld [vmem:[%s13136_s5 + $0x148] sm:$0xff]   ;;  %v10403_v58 = vld [vmem:[%s13136_s5 + $0x150] sm:$0xff]  }
 0x55a   :  { %v10402_v35 = vld [vmem:[%s13136_s5 + $0x108] sm:$0xff]   ;;  %v10404_v25 = vld [vmem:[%s13136_s5 + $0x110] sm:$0xff]   ;;  %v6481_v43 = vld [vmem:[#allocation3 + $0x12d] sm:$0x1] }
 0x55b   :  { %v6559_v40 = vld [vmem:[#allocation3 + $0x13c] sm:$0x1]  ;;  %v6561_v63 = vld [vmem:[#allocation3 + $0x13d] sm:$0x1]  ;;  %v6480_v59 = vld [vmem:[#allocation3 + $0x2d] sm:$0x1] }
 0x55c   :  { %v6482_v17 = vld [vmem:[#allocation3 + $0x2e] sm:$0x1]  ;;  %v6563_v28 = vmax.f32 %v6559_v40, %v6561_v63  ;;  %v10411_v29 = vld [vmem:[%s13136_s5 + $0x170] sm:$0xff]   ;;  %v6564_v47 = vld [vmem:[#allocation3 + $0x49] sm:$0x1] }
 0x55d   :  { %v6566_v34 = vld [vmem:[#allocation3 + $0x4a] sm:$0x1]  ;;  %v6474_v12 = vld [vmem:[#allocation3 + $0x20] sm:$0x1]  ;;  %v6476_v27 = vld [vmem:[#allocation3 + $0x21] sm:$0x1] }
 0x55e   :  { %v6558_v15 = vld [vmem:[#allocation3 + $0x3c] sm:$0x1]  ;;  %v10412_v62 = vld [vmem:[%s13136_s5 + $0x130] sm:$0xff]   ;;  %v6568_v41 = vmax.f32 %v6564_v47, %v6566_v34  ;;  %v6478_v57 = vmax.f32 %v6474_v12, %v6476_v27  ;;  %v10413_v14 = vld [vmem:[%s13136_s5 + $0x178] sm:$0xff]  }
 0x55f   :  { %v10427_v40 = vld [vmem:[%s13136_s5 + $0x1f0] sm:$0xff]  }
 0x560   :  { %v6620_v63 = vld [vmem:[#allocation3 + $0x61] sm:$0x1] }
 0x561   :  { %v10428_v47 = vld [vmem:[%s13136_s5 + $0x1b0] sm:$0xff]  }
 0x5a7   :  { %v10319_v18 = vpop.permute.xlu0 %10318 }
 0x5a8   :  { %v10321_v11 = vunpack.i.h.bf16 %v10319_v18  ;;  %v10320_v54 = vunpack.i.l.bf16 %v10319_v18  ;;  %v6739_v18 = vrot.slane %v6431_v51, 7  ;;  %v6560_v51 = vld [vmem:[#allocation3 + $0x3d] sm:$0x1] }
 0x5aa   :  { %v6809_v60 = vsel %vm6297_vm12, %v6716_v8, %v10321_v11  ;;  %v6810_v2 = vsel %vm6297_vm12, %v6728_v3, %v10320_v54  ;;  %v6506_v54 = vmax.f32 %v6502_v23, %v6504_v13  ;;  %v6430_v8 = vmax.f32 %v6422_v56, %v6428_v20  ;;  %v10414_v20 = vld [vmem:[%s13136_s5 + $0x138] sm:$0xff]  }
 0x5ab   :  { %v6874_v26 = vpack.c.bf16 %v6809_v60, %v6809_v60  ;;  %v6875_v7 = vpack.c.bf16 %v6810_v2, %v6810_v2  ;;  %v10399_v2 = vld [vmem:[%s13136_s5 + $0x140] sm:$0xff]   ;;  %v6562_v23 = vmax.f32 %v6558_v15, %v6560_v51 }
 0x5ac   :  { %v6514_v16 = vmax.f32 %v6506_v54, %v6512_v53  ;;  %v6740_v60 = vsel %vm6715_vm13, %v6739_v18, %v6430_v8  ;;  %v10416_v8 = vld [vmem:[%s13136_s5 + $0x180] sm:$0xff]  }
 0x5ad   :  { %7729 = vmatprep.mubr.bf16.mxu1 %v6875_v7  ;;  %v6570_v18 = vmax.f32 %v6562_v23, %v6568_v41 }
 0x5ae   :  { %7730 = vmatmul.mubr.bf16.vlgmr.msra.gmra.mrb[96].mxu1 %v6874_v26  ;;  %v6776_v26 = vsel %vm6715_vm13, %v6775_v32, %v6514_v16 }
 0x5af   :  { %9009 = vmatpush3.bf16.msra.mxu1 %v10384_v5  ;;  %v10400_v5 = vld [vmem:[%s13136_s5 + $0x100] sm:$0xff]  }
 0x5b0   :  { %v12769_v55 = vpop.permute.xlu1 %10323  ;;  %9010 = vmatprep.subr.bf16.mxu1 %v10385_v24 }
 0x5b1   :  { %v10325_v42 = vunpack.i.l.bf16 %v12769_v55  ;;  %v10326_v11 = vunpack.i.h.bf16 %v12769_v55  ;;  %v10406_v55 = vld [vmem:[%s13136_s5 + $0x118] sm:$0xff]  }
 0x5b3   :  { %9011 = vmatpush3.bf16.msra.mxu1 %v10386_v52  ;;  %v6812_v37 = vsel %vm6297_vm12, %v6752_v0, %v10325_v42  ;;  %v6811_v36 = vsel %vm6297_vm12, %v6740_v60, %v10326_v11  ;;  %v10405_v52 = vld [vmem:[%s13136_s5 + $0x158] sm:$0xff]   ;;  %v10415_v11 = vld [vmem:[%s13136_s5 + $0x1c0] sm:$0xff]   ;;  %v10418_v60 = vld [vmem:[%s13136_s5 + $0x188] sm:$0xff]  }
 0x5b4   :  { %9012 = vmatprep.subr.bf16.mxu1 %v10387_v48  ;;  %v6877_v46 = vpack.c.bf16 %v6812_v37, %v6812_v37  ;;  %v6876_v19 = vpack.c.bf16 %v6811_v36, %v6811_v36  ;;  %v10407_v48 = vld [vmem:[%s13136_s5 + $0x160] sm:$0xff]   ;;  %v6483_v42 = vld [vmem:[#allocation3 + $0x12e] sm:$0x1]  ;;  %v6565_v0 = vld [vmem:[#allocation3 + $0x149] sm:$0x1] }
 0x5b5   :  { %v12801_v45 = vpop.permute.xlu0 %10328  ;;  %v6567_v37 = vld [vmem:[#allocation3 + $0x14a] sm:$0x1]  ;;  %v10420_v36 = vld [vmem:[%s13136_s5 + $0x190] sm:$0xff]  }
 0x5b6   :  { %7769 = vmatprep.mubr.bf16.mxu1 %v6877_v46  ;;  %v10330_v3 = vunpack.i.l.bf16 %v12801_v45  ;;  %v6477_v46 = vld [vmem:[#allocation3 + $0x121] sm:$0x1]  ;;  %v6569_v4 = vmax.f32 %v6565_v0, %v6567_v37  ;;  %v10331_v56 = vunpack.i.h.bf16 %v12801_v45 }
 0x5b7   :  { %9013 = vmatpush3.bf16.msra.mxu1 %v10388_v44  ;;  %v6475_v44 = vld [vmem:[#allocation3 + $0x120] sm:$0x1] }
 0x5b8   :  { %9014 = vmatprep.subr.bf16.mxu1 %v10389_v9  ;;  %v6814_v7 = vsel %vm6297_vm12, %v6776_v26, %v10330_v3  ;;  %v10408_v9 = vld [vmem:[%s13136_s5 + $0x120] sm:$0xff]   ;;  %v6479_v22 = vmax.f32 %v6475_v44, %v6477_v46  ;;  %v6571_v33 = vmax.f32 %v6563_v28, %v6569_v4  ;;  %v10421_v26 = vld [vmem:[%s13136_s5 + $0x1d8] sm:$0xff]   ;;  %v6536_v44 = vld [vmem:[#allocation3 + $0x45] sm:$0x1] }
 0x5b9   :  { %v6879_v24 = vpack.c.bf16 %v6814_v7, %v6814_v7  ;;  %v10422_v7 = vld [vmem:[%s13136_s5 + $0x198] sm:$0xff]   ;;  %v6538_v46 = vld [vmem:[#allocation3 + $0x46] sm:$0x1]  ;;  %v6622_v4 = vld [vmem:[#allocation3 + $0x62] sm:$0x1] }
 0x5ba   :  { %v6799_v13 = vrot.slane %v6571_v33, 7  ;;  %v6614_v28 = vld [vmem:[#allocation3 + $0x54] sm:$0x1]  ;;  %v6624_v34 = vmax.f32 %v6620_v63, %v6622_v4  ;;  %v10429_v33 = vld [vmem:[%s13136_s5 + $0x1f8] sm:$0xff]   ;;  %v10444_v63 = vld [vmem:[%s13136_s5 + $0x230] sm:$0xff]  }
 0x5bb   :  { %9015 = vmatpush3.bf16.msra.mxu1 %v10390_v39  ;;  %v6485_v39 = vmax.f32 %v6481_v43, %v6483_v42  ;;  %v6615_v43 = vld [vmem:[#allocation3 + $0x154] sm:$0x1]  ;;  %v6617_v42 = vld [vmem:[#allocation3 + $0x155] sm:$0x1] }
 0x5bc   :  { %9016 = vmatprep.subr.bf16.mxu1 %v10391_v61  ;;  %v10409_v61 = vld [vmem:[%s13136_s5 + $0x168] sm:$0xff]   ;;  %v6800_v54 = vsel %vm6715_vm13, %v6799_v13, %v6570_v18 }
 0x5bf   :  { %9017 = vmatpush3.bf16.msra.mxu1 %v10392_v30  ;;  %v10410_v30 = vld [vmem:[%s13136_s5 + $0x128] sm:$0xff]  }
 0x5c0   :  { %9018 = vmatprep.subr.bf16.mxu1 %v10393_v10  ;;  %v6487_v10 = vmax.f32 %v6479_v22, %v6485_v39  ;;  %v6619_v39 = vmax.f32 %v6615_v43, %v6617_v42  ;;  %v6530_v22 = vld [vmem:[#allocation3 + $0x38] sm:$0x1]  ;;  %v6672_v43 = vld [vmem:[#allocation3 + $0x6d] sm:$0x1] }
 0x5c2   :  { %v6763_v50 = vrot.slane %v6487_v10, 7  ;;  %v6616_v10 = vld [vmem:[#allocation3 + $0x55] sm:$0x1] }
 0x5c3   :  { %9019 = vmatpush3.bf16.msra.mxu1 %v10394_v6  ;;  %v6484_v6 = vmax.f32 %v6480_v59, %v6482_v17  ;;  %v6532_v59 = vld [vmem:[#allocation3 + $0x39] sm:$0x1]  ;;  %v6618_v15 = vmax.f32 %v6614_v28, %v6616_v10 }
 0x5c4   :  { %9020 = vmatprep.subr.bf16.mxu1 %v10395_v21  ;;  %v12857_v21 = vpop.permute.xlu1 %10333  ;;  %v6534_v12 = vmax.f32 %v6530_v22, %v6532_v59 }
 0x5c5   :  { %v10335_v53 = vunpack.i.l.bf16 %v12857_v21 }
 0x5c7   :  { %9021 = vmatpush3.bf16.msra.mxu1 %v10396_v49  ;;  %v6486_v49 = vmax.f32 %v6478_v57, %v6484_v6  ;;  %v6816_v32 = vsel %vm6297_vm12, %v6800_v54, %v10335_v53  ;;  %v10336_v6 = vunpack.i.h.bf16 %v12857_v21  ;;  %v10430_v57 = vld [vmem:[%s13136_s5 + $0x1b8] sm:$0xff]  }
 0x5c8   :  { %9022 = vmatprep.subr.bf16.mxu1 %v10397_v38  ;;  %v6881_v16 = vpack.c.bf16 %v6816_v32, %v6816_v32  ;;  %v10437_v54 = vld [vmem:[%s13136_s5 + $0x258] sm:$0xff]  }
 0x5c9   :  { %v6764_v38 = vsel %vm6715_vm13, %v6763_v50, %v6486_v49  ;;  %v6626_v50 = vmax.f32 %v6618_v15, %v6624_v34  ;;  %v10432_v49 = vld [vmem:[%s13136_s5 + $0x200] sm:$0xff]   ;;  %v10438_v32 = vld [vmem:[%s13136_s5 + $0x218] sm:$0xff]  }
 0x5ca   :  { %v6813_v45 = vsel %vm6297_vm12, %v6764_v38, %v10331_v56  ;;  %v10431_v56 = vld [vmem:[%s13136_s5 + $0x240] sm:$0xff]   ;;  %v10434_v38 = vld [vmem:[%s13136_s5 + $0x208] sm:$0xff]  }
 0x5cb   :  { %9023 = vmatpush3.bf16.msra.mxu1 %v10398_v31  ;;  %v6878_v3 = vpack.c.bf16 %v6813_v45, %v6813_v45  ;;  %v10417_v31 = vld [vmem:[%s13136_s5 + $0x1c8] sm:$0xff]   ;;  %v10436_v45 = vld [vmem:[%s13136_s5 + $0x210] sm:$0xff]  }
 0x5cc   :  { %9030 = vmatprep.subr.bf16.mxu1 %v10399_v2  ;;  %v10419_v2 = vld [vmem:[%s13136_s5 + $0x1d0] sm:$0xff]  }
 0x5ce   :  { %7770 = vmatmul.mubr.bf16.vlgmr.msra.gmra.mrb[100].mxu1 %v6876_v19  ;;  %v6537_v19 = vld [vmem:[#allocation3 + $0x145] sm:$0x1] }
 0x5cf   :  { %9031 = vmatpush3.bf16.msra.mxu1 %v10400_v5  ;;  %7809 = vmatprep.mubr.bf16.mxu1 %v6879_v24  ;;  %v10423_v5 = vld [vmem:[%s13136_s5 + $0x1e0] sm:$0xff]   ;;  %v6621_v24 = vld [vmem:[#allocation3 + $0x161] sm:$0x1] }
 0x5d0   :  { %9032 = vmatprep.subr.bf16.mxu1 %v10401_v1  ;;  %v6539_v1 = vld [vmem:[#allocation3 + $0x146] sm:$0x1] }
 0x5d3   :  { %9033 = vmatpush3.bf16.msra.mxu1 %v10402_v35  ;;  %v6623_v35 = vld [vmem:[#allocation3 + $0x162] sm:$0x1] }
 0x5d4   :  { %9034 = vmatprep.subr.bf16.mxu1 %v10403_v58  ;;  %v6531_v58 = vld [vmem:[#allocation3 + $0x138] sm:$0x1]  ;;  %v6625_v0 = vmax.f32 %v6621_v24, %v6623_v35 }
 0x5d6   :  { %v6627_v17 = vmax.f32 %v6619_v39, %v6625_v0  ;;  %v10443_v0 = vld [vmem:[%s13136_s5 + $0x270] sm:$0xff]  }
 0x5d7   :  { %9035 = vmatpush3.bf16.msra.mxu1 %v10404_v25  ;;  %v6533_v25 = vld [vmem:[#allocation3 + $0x139] sm:$0x1] }
 0x5d8   :  { %9036 = vmatprep.subr.bf16.mxu1 %v10405_v52  ;;  %v10424_v52 = vld [vmem:[%s13136_s5 + $0x1a0] sm:$0xff]   ;;  %v6535_v37 = vmax.f32 %v6531_v58, %v6533_v25  ;;  %v6831_v51 = vrot.slane %v6627_v17, 7  ;;  %v6592_v25 = vld [vmem:[#allocation3 + $0x5d] sm:$0x1] }
 0x5da   :  { %v6832_v23 = vsel %vm6715_vm13, %v6831_v51, %v6626_v50 }
 0x5db   :  { %9037 = vmatpush3.bf16.msra.mxu1 %v10406_v55  ;;  %v6541_v55 = vmax.f32 %v6537_v19, %v6539_v1  ;;  %v10441_v1 = vld [vmem:[%s13136_s5 + $0x268] sm:$0xff]  }
 0x5dc   :  { %9038 = vmatprep.subr.bf16.mxu1 %v10407_v48  ;;  %v10425_v48 = vld [vmem:[%s13136_s5 + $0x1e8] sm:$0xff]  }
 0x5df   :  { %9039 = vmatpush3.bf16.msra.mxu1 %v10408_v9  ;;  %v10426_v9 = vld [vmem:[%s13136_s5 + $0x1a8] sm:$0xff]  }
 0x5e0   :  { %9040 = vmatprep.subr.bf16.mxu1 %v10409_v61  ;;  %v6543_v61 = vmax.f32 %v6535_v37, %v6541_v55  ;;  %v10442_v55 = vld [vmem:[%s13136_s5 + $0x228] sm:$0xff]  }
 0x5e1   :  { %v6676_v37 = vld [vmem:[#allocation3 + $0x79] sm:$0x1] }
 0x5e2   :  { %v6787_v27 = vrot.slane %v6543_v61, 7 }
 0x5e3   :  { %9041 = vmatpush3.bf16.msra.mxu1 %v10410_v30  ;;  %v6540_v30 = vmax.f32 %v6536_v44, %v6538_v46  ;;  %v6678_v44 = vld [vmem:[#allocation3 + $0x7a] sm:$0x1]  ;;  %v6586_v46 = vld [vmem:[#allocation3 + $0x50] sm:$0x1] }
 0x5e4   :  { %9042 = vmatprep.subr.bf16.mxu1 %v10411_v29  ;;  %v12913_v29 = vpop.permute.xlu0 %10338  ;;  %v6680_v22 = vmax.f32 %v6676_v37, %v6678_v44  ;;  %v6699_v37 = vld [vmem:[#allocation3 + $0x170] sm:$0x1]  ;;  %v6701_v44 = vld [vmem:[#allocation3 + $0x171] sm:$0x1] }
 0x5e5   :  { %v10340_v41 = vunpack.i.l.bf16 %v12913_v29  ;;  %v10341_v28 = vunpack.i.h.bf16 %v12913_v29 }
 0x5e7   :  { %9043 = vmatpush3.bf16.msra.mxu1 %v10412_v62  ;;  %v6542_v62 = vmax.f32 %v6534_v12, %v6540_v30  ;;  %v6871_v13 = vsel %vm6297_vm12, %v6832_v23, %v10340_v41  ;;  %v10445_v30 = vld [vmem:[%s13136_s5 + $0x278] sm:$0xff]  }
 0x5e8   :  { %9044 = vmatprep.subr.bf16.mxu1 %v10413_v14  ;;  %v6883_v18 = vpack.c.bf16 %v6871_v13, %v6871_v13  ;;  %v10446_v12 = vld [vmem:[%s13136_s5 + $0x238] sm:$0xff]  }
 0x5e9   :  { %v6788_v14 = vsel %vm6715_vm13, %v6787_v27, %v6542_v62  ;;  %v10448_v62 = vld [vmem:[%s13136_s5 + $0x280] sm:$0xff]   ;;  %v10453_v23 = vld [vmem:[%s13136_s5 + $0x2d8] sm:$0xff]  }
 0x5ea   :  { %v6815_v21 = vsel %vm6297_vm12, %v6788_v14, %v10336_v6  ;;  %v10447_v6 = vld [vmem:[%s13136_s5 + $0x2c0] sm:$0xff]   ;;  %v10450_v14 = vld [vmem:[%s13136_s5 + $0x288] sm:$0xff]   ;;  %v10454_v13 = vld [vmem:[%s13136_s5 + $0x298] sm:$0xff]  }
 0x5eb   :  { %9045 = vmatpush3.bf16.msra.mxu1 %v10414_v20  ;;  %v6880_v53 = vpack.c.bf16 %v6815_v21, %v6815_v21  ;;  %v10433_v20 = vld [vmem:[%s13136_s5 + $0x248] sm:$0xff]   ;;  %v10452_v21 = vld [vmem:[%s13136_s5 + $0x290] sm:$0xff]  }
 0x5ec   :  { %9052 = vmatprep.subr.bf16.mxu1 %v10415_v11  ;;  %v10435_v11 = vld [vmem:[%s13136_s5 + $0x250] sm:$0xff]  }
 0x5ee   :  { %7810 = vmatmul.mubr.bf16.vlgmr.msra.gmra.mrb[104].mxu1 %v6878_v3  ;;  %v6593_v3 = vld [vmem:[#allocation3 + $0x15d] sm:$0x1] }
 0x5ef   :  { %9053 = vmatpush3.bf16.msra.mxu1 %v10416_v8  ;;  %7849 = vmatprep.mubr.bf16.mxu1 %v6881_v16  ;;  %v10439_v8 = vld [vmem:[%s13136_s5 + $0x260] sm:$0xff]   ;;  %v6677_v16 = vld [vmem:[#allocation3 + $0x179] sm:$0x1] }
 0x5f0   :  { %9054 = vmatprep.subr.bf16.mxu1 %v10417_v31  ;;  %v6595_v31 = vld [vmem:[#allocation3 + $0x15e] sm:$0x1] }
 0x5f1   :  { %v6597_v19 = vmax.f32 %v6593_v3, %v6595_v31  ;;  %v6644_v3 = vld [vmem:[#allocation3 + $0x69] sm:$0x1]  ;;  %v10458_v31 = vld [vmem:[%s13136_s5 + $0x2a8] sm:$0xff]  }
 0x5f3   :  { %9055 = vmatpush3.bf16.msra.mxu1 %v10418_v60  ;;  %v6671_v60 = vld [vmem:[#allocation3 + $0x16c] sm:$0x1] }
 0x5f4   :  { %9056 = vmatprep.subr.bf16.mxu1 %v10419_v2  ;;  %v6673_v2 = vld [vmem:[#allocation3 + $0x16d] sm:$0x1] }
 0x5f5   :  { %v6675_v24 = vmax.f32 %v6671_v60, %v6673_v2  ;;  %v10459_v60 = vld [vmem:[%s13136_s5 + $0x2f0] sm:$0xff]   ;;  %v6648_v2 = vld [vmem:[#allocation3 + $0x75] sm:$0x1] }
 0x5f7   :  { %9057 = vmatpush3.bf16.msra.mxu1 %v10420_v36  ;;  %v6679_v36 = vld [vmem:[#allocation3 + $0x17a] sm:$0x1] }
 0x5f8   :  { %9058 = vmatprep.subr.bf16.mxu1 %v10421_v26  ;;  %v6587_v26 = vld [vmem:[#allocation3 + $0x150] sm:$0x1]  ;;  %v6681_v35 = vmax.f32 %v6677_v16, %v6679_v36  ;;  %v6650_v36 = vld [vmem:[#allocation3 + $0x76] sm:$0x1] }
 0x5fa   :  { %v6683_v39 = vmax.f32 %v6675_v24, %v6681_v35 }
 0x5fb   :  { %9059 = vmatpush3.bf16.msra.mxu1 %v10422_v7  ;;  %v6589_v7 = vld [vmem:[#allocation3 + $0x151] sm:$0x1] }
 0x5fc   :  { %9060 = vmatprep.subr.bf16.mxu1 %v10423_v5  ;;  %v10440_v5 = vld [vmem:[%s13136_s5 + $0x220] sm:$0xff]   ;;  %v6591_v58 = vmax.f32 %v6587_v26, %v6589_v7  ;;  %v6855_v10 = vrot.slane %v6683_v39, 7  ;;  %v10460_v7 = vld [vmem:[%s13136_s5 + $0x2b0] sm:$0xff]   ;;  %v6703_v39 = vmax.f32 %v6699_v37, %v6701_v44 }
 0x5fe   :  { %v6599_v42 = vmax.f32 %v6591_v58, %v6597_v19  ;;  %v10462_v58 = vld [vmem:[%s13136_s5 + $0x2b8] sm:$0xff]  }
 0x5ff   :  { %9061 = vmatpush3.bf16.msra.mxu1 %v10424_v52  ;;  %v6594_v52 = vld [vmem:[#allocation3 + $0x5e] sm:$0x1] }
 0x600   :  { %9062 = vmatprep.subr.bf16.mxu1 %v10425_v48  ;;  %v6670_v48 = vld [vmem:[#allocation3 + $0x6c] sm:$0x1]  ;;  %v6596_v61 = vmax.f32 %v6592_v25, %v6594_v52  ;;  %v6819_v17 = vrot.slane %v6599_v42, 7 }
 0x601   :  { %v6674_v4 = vmax.f32 %v6670_v48, %v6672_v43  ;;  %v6707_v48 = vld [vmem:[#allocation3 + $0x17e] sm:$0x1]  ;;  %v10463_v43 = vld [vmem:[%s13136_s5 + $0x300] sm:$0xff]  }
 0x603   :  { %9063 = vmatpush3.bf16.msra.mxu1 %v10426_v9  ;;  %v6588_v9 = vld [vmem:[#allocation3 + $0x51] sm:$0x1]  ;;  %v6682_v27 = vmax.f32 %v6674_v4, %v6680_v22  ;;  %v6698_v4 = vld [vmem:[#allocation3 + $0x70] sm:$0x1] }
 0x604   :  { %9064 = vmatprep.subr.bf16.mxu1 %v10427_v40  ;;  %v12969_v40 = vpop.permute.xlu1 %10343  ;;  %v6590_v59 = vmax.f32 %v6586_v46, %v6588_v9  ;;  %v10464_v9 = vld [vmem:[%s13136_s5 + $0x308] sm:$0xff]   ;;  %v6700_v22 = vld [vmem:[#allocation3 + $0x71] sm:$0x1] }
 0x605   :  { %v10345_v34 = vunpack.i.l.bf16 %v12969_v40  ;;  %v6856_v29 = vsel %vm6715_vm13, %v6855_v10, %v6682_v27  ;;  %v10346_v24 = vunpack.i.h.bf16 %v12969_v40  ;;  %v6706_v40 = vld [vmem:[#allocation3 + $0x7e] sm:$0x1]  ;;  %v10466_v10 = vld [vmem:[%s13136_s5 + $0x318] sm:$0xff]  }
 0x607   :  { %9065 = vmatpush3.bf16.msra.mxu1 %v10428_v47  ;;  %v6598_v47 = vmax.f32 %v6590_v59, %v6596_v61  ;;  %v6873_v51 = vsel %vm6297_vm12, %v6856_v29, %v10345_v34  ;;  %v6704_v61 = vld [vmem:[#allocation3 + $0x7d] sm:$0x1]  ;;  %v10465_v59 = vld [vmem:[%s13136_s5 + $0x310] sm:$0xff]  }
 0x608   :  { %9066 = vmatprep.subr.bf16.mxu1 %v10429_v33  ;;  %v6885_v50 = vpack.c.bf16 %v6873_v51, %v6873_v51  ;;  %v10467_v51 = vld [vmem:[%s13138_s7] sm:$0xff]  }
 0x609   :  { %v6820_v33 = vsel %vm6715_vm13, %v6819_v17, %v6598_v47  ;;  %v6708_v17 = vmax.f32 %v6704_v61, %v6706_v40  ;;  %v10475_v40 = vld [vmem:[%s13140_s9] sm:$0xff]  }
 0x60a   :  { %v6870_v15 = vsel %vm6297_vm12, %v6820_v33, %v10341_v28 }
 0x60b   :  { %9067 = vmatpush3.bf16.msra.mxu1 %v10430_v57  ;;  %v6882_v41 = vpack.c.bf16 %v6870_v15, %v6870_v15  ;;  %v10449_v57 = vld [vmem:[%s13136_s5 + $0x2c8] sm:$0xff]  }
 0x60c   :  { %9074 = vmatprep.subr.bf16.mxu1 %v10431_v56  ;;  %v10451_v56 = vld [vmem:[%s13136_s5 + $0x2d0] sm:$0xff]  }
 0x60e   :  { %7850 = vmatmul.mubr.bf16.vlgmr.msra.gmra.mrb[108].mxu1 %v6880_v53  ;;  %v6643_v53 = vld [vmem:[#allocation3 + $0x168] sm:$0x1] }
 0x60f   :  { %9075 = vmatpush3.bf16.msra.mxu1 %v10432_v49  ;;  %7889 = vmatprep.mubr.bf16.mxu1 %v6883_v18  ;;  %v10455_v49 = vld [vmem:[%s13136_s5 + $0x2e0] sm:$0xff]  }
 0x610   :  { %9076 = vmatprep.subr.bf16.mxu1 %v10433_v20  ;;  %v6645_v20 = vld [vmem:[#allocation3 + $0x169] sm:$0x1]  ;;  %v6649_v18 = vld [vmem:[#allocation3 + $0x175] sm:$0x1] }
 0x613   :  { %9077 = vmatpush3.bf16.msra.mxu1 %v10434_v38  ;;  %v6651_v38 = vld [vmem:[#allocation3 + $0x176] sm:$0x1] }
 0x614   :  { %9078 = vmatprep.subr.bf16.mxu1 %v10435_v11  ;;  %v10456_v11 = vld [vmem:[%s13136_s5 + $0x2a0] sm:$0xff]  }
 0x617   :  { %9079 = vmatpush3.bf16.msra.mxu1 %v10436_v45  ;;  %v6647_v45 = vmax.f32 %v6643_v53, %v6645_v20  ;;  %v10471_v20 = vld [vmem:[%s13138_s7 + $0x20] sm:$0xff]  }
 0x618   :  { %9080 = vmatprep.subr.bf16.mxu1 %v10437_v54  ;;  %v10457_v54 = vld [vmem:[%s13136_s5 + $0x2e8] sm:$0xff]  }
 0x61b   :  { %9081 = vmatpush3.bf16.msra.mxu1 %v10438_v32  ;;  %v6653_v32 = vmax.f32 %v6649_v18, %v6651_v38  ;;  %v10472_v18 = vld [vmem:[%s13138_s7 + $0x28] sm:$0xff]   ;;  %v10473_v38 = vld [vmem:[%s13138_s7 + $0x30] sm:$0xff]  }
 0x61c   :  { %9082 = vmatprep.subr.bf16.mxu1 %v10439_v8  ;;  %v6642_v8 = vld [vmem:[#allocation3 + $0x68] sm:$0x1] }
 0x61d   :  { %v6655_v16 = vmax.f32 %v6647_v45, %v6653_v32  ;;  %v6646_v26 = vmax.f32 %v6642_v8, %v6644_v3 }
 0x61f   :  { %9083 = vmatpush3.bf16.msra.mxu1 %v10440_v5  ;;  %v6652_v5 = vmax.f32 %v6648_v2, %v6650_v36  ;;  %v6843_v19 = vrot.slane %v6655_v16, 7 }
 0x620   :  { %9084 = vmatprep.subr.bf16.mxu1 %v10441_v1  ;;  %v10461_v1 = vld [vmem:[%s13136_s5 + $0x2f8] sm:$0xff]  }
 0x621   :  { %v6654_v35 = vmax.f32 %v6646_v26, %v6652_v5 }
 0x623   :  { %9085 = vmatpush3.bf16.msra.mxu1 %v10442_v55  ;;  %v6844_v25 = vsel %vm6715_vm13, %v6843_v19, %v6654_v35  ;;  %v6705_v55 = vld [vmem:[#allocation3 + $0x17d] sm:$0x1] }
 0x624   :  { %9086 = vmatprep.subr.bf16.mxu1 %v10443_v0  ;;  %v6872_v52 = vsel %vm6297_vm12, %v6844_v25, %v10346_v24  ;;  %v10531_v0 = vmov 0.0   ;;  %v6709_v46 = vmax.f32 %v6705_v55, %v6707_v48 }
 0x625   :  { %v6884_v42 = vpack.c.bf16 %v6872_v52, %v6872_v52 }
 0x627   :  { %9087 = vmatpush3.bf16.msra.mxu1 %v10444_v63  ;;  %v6711_v63 = vmax.f32 %v6703_v39, %v6709_v46 }
 0x628   :  { %9088 = vmatprep.subr.bf16.mxu1 %v10445_v30  ;;  %v6702_v30 = vmax.f32 %v6698_v4, %v6700_v22  ;;  %v10476_v4 = vld [vmem:[%s13140_s9 + $0x8] sm:$0xff]   ;;  %v10477_v22 = vld [vmem:[%s13140_s9 + $0x10] sm:$0xff]  }
 0x629   :  { %v6867_v28 = vrot.slane %v6711_v63, 7 }
 0x62a   :  { %v6710_v47 = vmax.f32 %v6702_v30, %v6708_v17  ;;  %v8665_v17 = vld [vmem:[%s13139_s8] ss:$0 sm:$0xff] }
 0x62b   :  { %9089 = vmatpush3.bf16.msra.mxu1 %v10446_v12 }
 0x62c   :  { %9096 = vmatprep.subr.bf16.mxu1 %v10447_v6  ;;  %v6868_v34 = vsel %vm6715_vm13, %v6867_v28, %v6710_v47 }
 0x62d   :  { %v6886_v12 = vpack.c.bf16 %v6868_v34, %v6868_v34 }
 0x62e   :  { %7890 = vmatmul.mubr.bf16.vlgmr.msra.gmra.mrb[112].mxu1 %v6882_v41  ;;  %v8563_v41 = vld [vmem:[%s13137_s6] ss:$0 sm:$0xff] }
 0x62f   :  { %9097 = vmatpush3.bf16.msra.mxu1 %v10448_v62  ;;  %7929 = vmatprep.mubr.bf16.mxu1 %v6885_v50  ;;  %v10468_v62 = vld [vmem:[%s13138_s7 + $0x8] sm:$0xff]   ;;  %v10469_v50 = vld [vmem:[%s13138_s7 + $0x10] sm:$0xff]  }
 0x630   :  { %9098 = vmatprep.subr.bf16.mxu1 %v10449_v57 }
 0x633   :  { %9099 = vmatpush3.bf16.msra.mxu1 %v10450_v14 }
 0x634   :  { %9100 = vmatprep.subr.bf16.mxu1 %v10451_v56 }
 0x637   :  { %9101 = vmatpush3.bf16.msra.mxu1 %v10452_v21 }
 0x638   :  { %9102 = vmatprep.subr.bf16.mxu1 %v10453_v23 }
 0x63b   :  { %9103 = vmatpush3.bf16.msra.mxu1 %v10454_v13 }
 0x63c   :  { %9104 = vmatprep.subr.bf16.mxu1 %v10455_v49  ;;  %v10470_v49 = vld [vmem:[%s13138_s7 + $0x18] sm:$0xff]  }
 0x63f   :  { %9105 = vmatpush3.bf16.msra.mxu1 %v10456_v11  ;;  %v10474_v11 = vld [vmem:[%s13138_s7 + $0x38] sm:$0xff]  }
 0x640   :  { %9106 = vmatprep.subr.bf16.mxu1 %v10457_v54 }
 0x643   :  { %9107 = vmatpush3.bf16.msra.mxu1 %v10458_v31 }
 0x644   :  { %9108 = vmatprep.subr.bf16.mxu1 %v10459_v60 }
 0x647   :  { %9109 = vmatpush3.bf16.msra.mxu1 %v10460_v7 }
 0x648   :  { %9110 = vmatprep.subr.bf16.mxu1 %v10461_v1 }
 0x64b   :  { %9111 = vmatpush3.bf16.msra.mxu1 %v10462_v58 }
 0x64c   :  { %9749 = vmatprep.subr.bf16.mxu1 %v10531_v0 }
 0x64e   :  { %7930 = vmatmul.mubr.bf16.vlgmr.msra.gmra.mrb[116].mxu1 %v6884_v42 }
 0x64f   :  { %9750 = vmatpush3.bf16.msra.mxu1 %v10463_v43  ;;  %9757 = vmatprep.mubr.msk.bf16.mxu1 %vm10532_vm14, %v10531_v0 }
 0x650   :  { %9751 = vmatprep.subr.bf16.mxu1 %v10531_v0 }
 0x653   :  { %9752 = vmatpush3.bf16.msra.mxu1 %v10464_v9 }
 0x654   :  { %9753 = vmatprep.subr.bf16.mxu1 %v10531_v0 }
 0x657   :  { %9754 = vmatpush3.bf16.msra.mxu1 %v10465_v59  ;;  %v10478_v59 = vld [vmem:[%s13140_s9 + $0x18] sm:$0xff]   ;;  %s10533_s9 = smov [#allocation4]  }
 0x658   :  { %9755 = vmatprep.subr.bf16.mxu1 %v10531_v0  ;;  %s8182_s27 = sshll.u32 %s10533_s9, 4  ;;  %s8183_s27 = int_to_ptr.vmem [resolvable:$true] %s8182_s27 }
 0x659   :  { %s10504_s8 = scalar_lea.vmem %s8183_s27, 32  ;;  %p10509_p1 = scmp.lt.s32.totalorder %s8183_s27, %s8183_s27 }
 0x65a   :  { %p10505_p0 = scmp.ne.s32.totalorder %s8183_s27, %s10504_s8  ;;  %p10510_p2 = scmp.lt.s32.totalorder %s10504_s8, %s10504_s8 }
 0x65b   :  { %9756 = vmatpush3.bf16.msra.mxu1 %v10466_v10 }
 0x65c   :  { %9761 = vmatprep.subr.bf16.mxu1 %v10531_v0  ;;  %p10511_p3 = por %p10510_p2, %p10509_p1 }
 0x65e   :  { %9758 = vmatmul.mubr.msk.bf16.vlgmr.msra.gmra.mrb[120].mxu1 %vm6297_vm12, %v6886_v12  ;;  %p10512_p4 = pnand %p10511_p3, %p10505_p0 }
 0x65f   :  { %9777 = vmatprep.mubr.msk.bf16.mxu1 %vm10532_vm14, %v10531_v0  ;;  %9762 = vmatpush3.bf16.msra.mxu1 %v10467_v51 }
 0x660   :  { %9763 = vmatprep.subr.bf16.mxu1 %v10531_v0 }
 0x663   :  { %9764 = vmatpush3.bf16.msra.mxu1 %v10468_v62 }
 0x664   :  { %9765 = vmatprep.subr.bf16.mxu1 %v10531_v0 }
 0x667   :  { %9766 = vmatpush3.bf16.msra.mxu1 %v10469_v50 }
 0x668   :  { %9767 = vmatprep.subr.bf16.mxu1 %v10531_v0 }
 0x66b   :  { %9768 = vmatpush3.bf16.msra.mxu1 %v10470_v49 }
 0x66c   :  { %9769 = vmatprep.subr.bf16.mxu1 %v10531_v0 }
 0x66f   :  { %9770 = vmatpush3.bf16.msra.mxu1 %v10471_v20 }
 0x670   :  { %9771 = vmatprep.subr.bf16.mxu1 %v10531_v0 }
 0x673   :  { %9772 = vmatpush3.bf16.msra.mxu1 %v10472_v18 }
 0x674   :  { %9773 = vmatprep.subr.bf16.mxu1 %v10531_v0 }
 0x677   :  { %9774 = vmatpush3.bf16.msra.mxu1 %v10473_v38 }
 0x678   :  { %9775 = vmatprep.subr.bf16.mxu1 %v10531_v0 }
 0x67b   :  { %9776 = vmatpush3.bf16.msra.mxu1 %v10474_v11 }
 0x67c   :  { %9781 = vmatprep.subr.bf16.mxu1 %v10531_v0 }
 0x681   :  { %v9002_v27 = vpop.f32.mrb[96].mxu1 }
 0x682   :  { %v9003_v33 = vpop.f32.mrb[97].mxu1 }
 0x683   :  { %v9004_v6 = vadd.f32 %v9003_v33, %v9002_v27  ;;  %v9005_v15 = vpop.f32.mrb[98].mxu1  ;;  %v8674_v33 = vld [vmem:[%s13141_s10] ss:$0 sm:$0xff] }
 0x684   :  { %v9006_v29 = vpop.f32.mrb[99].mxu1 }
 0x685   :  { %v7732_v56 = vadd.f32 %v9004_v6, %v8563_v41 }
 0x6a1   :  { %v9024_v57 = vpop.f32.mrb[100].mxu1 }
 0x6a2   :  { %v9025_v14 = vpop.f32.mrb[101].mxu1 }
 0x6a3   :  { %v9026_v21 = vadd.f32 %v9025_v14, %v9024_v57  ;;  %v9027_v23 = vpop.f32.mrb[102].mxu1 }
 0x6a4   :  { %v9028_v13 = vpop.f32.mrb[103].mxu1 }
 0x6a5   :  { %v7772_v53 = vadd.f32 %v9026_v21, %v7732_v56 }
 0x6c1   :  { %v9046_v45 = vpop.f32.mrb[104].mxu1 }
 0x6c2   :  { %v9047_v54 = vpop.f32.mrb[105].mxu1 }
 0x6c3   :  { %v9048_v32 = vadd.f32 %v9047_v54, %v9046_v45  ;;  %v9049_v8 = vpop.f32.mrb[106].mxu1 }
 0x6c4   :  { %v9050_v3 = vpop.f32.mrb[107].mxu1 }
 0x6c5   :  { %v7812_v31 = vadd.f32 %v9048_v32, %v7772_v53 }
 0x6e1   :  { %v9068_v16 = vpop.f32.mrb[108].mxu1 }
 0x6e2   :  { %v9069_v60 = vpop.f32.mrb[109].mxu1 }
 0x6e3   :  { %v9070_v2 = vadd.f32 %v9069_v60, %v9068_v16  ;;  %v9071_v36 = vpop.f32.mrb[110].mxu1 }
 0x6e4   :  { %v9072_v26 = vpop.f32.mrb[111].mxu1 }
 0x6e5   :  { %v7852_v7 = vadd.f32 %v9070_v2, %v7812_v31 }
 0x701   :  { %v9090_v5 = vpop.f32.mrb[112].mxu1 }
 0x702   :  { %v9091_v19 = vpop.f32.mrb[113].mxu1 }
 0x703   :  { %v9092_v1 = vadd.f32 %v9091_v19, %v9090_v5  ;;  %v9093_v24 = vpop.f32.mrb[114].mxu1 }
 0x704   :  { %v9094_v35 = vpop.f32.mrb[115].mxu1 }
 0x705   :  { %v7892_v58 = vadd.f32 %v9092_v1, %v7852_v7 }
 0x721   :  { %v9112_v25 = vpop.f32.mrb[116].mxu1 }
 0x722   :  { %v9113_v52 = vpop.f32.mrb[117].mxu1 }
 0x723   :  { %v9114_v55 = vadd.f32 %v9113_v52, %v9112_v25  ;;  %v9115_v48 = vpop.f32.mrb[118].mxu1 }
 0x724   :  { %v9116_v43 = vpop.f32.mrb[119].mxu1 }
 0x725   :  { %v7932_v42 = vadd.f32 %v9114_v55, %v7892_v58 }
 0x731   :  { %v7971_v37 = vpop.f32.mrb[120].mxu1 }
 0x732   :  { %v7972_v44 = vadd.f32 %v7971_v37, %v7932_v42  ;;  %v9759_v46 = vpop.f32.mrb[121].mxu1 }
 0x733   :  { %v7974_v9 = vpop.f32.mrb[122].mxu1 }
 0x734   :  { %v7977_v39 = vmax.f32 %v7972_v44, 0.0  ;;  %v9760_v61 = vpop.f32.mrb[123].mxu1 }
 0x736   :  { %v7978_v63 = vpack.c.bf16 %v7977_v39, %v7977_v39 }
 0x738   :  { %9778 = vmatmul.mubr.bf16.vlgmr.msra.gmra.mrb[124].mxu1 %v7978_v63 }
 0x739   :  { %9782 = vmatpush3.bf16.msra.mxu1 %v10475_v40  ;;  %9789 = vmatprep.mubr.msk.bf16.mxu1 %vm10532_vm14, %v10531_v0 }
 0x73a   :  { %9783 = vmatprep.subr.bf16.mxu1 %v10531_v0 }
 0x73d   :  { %9784 = vmatpush3.bf16.msra.mxu1 %v10476_v4 }
 0x73e   :  { %9785 = vmatprep.subr.bf16.mxu1 %v10531_v0 }
 0x741   :  { %9786 = vmatpush3.bf16.msra.mxu1 %v10477_v22 }
 0x742   :  { %9787 = vmatprep.subr.bf16.mxu1 %v10531_v0 }
 0x745   :  { %9788 = vmatpush3.bf16.msra.mxu1 %v10478_v59 }
 0x80b   :  { %v8084_v30 = vpop.f32.mrb[124].mxu1 }
 0x80c   :  { %v8085_v28 = vadd.f32 %v8665_v17, %v8084_v30  ;;  %v9779_v10 = vpop.f32.mrb[125].mxu1 }
 0x80d   :  { %v8087_v47 = vpop.f32.mrb[126].mxu1 }
 0x80e   :  { %v8090_v34 = vmax.f32 %v8085_v28, 0.0  ;;  %v9780_v12 = vpop.f32.mrb[127].mxu1 }
 0x810   :  { %v8091_v27 = vpack.c.bf16 %v8090_v34, %v8090_v34 }
 0x812   :  { %9790 = vmatmul.mubr.msk.bf16.vlgmr.msra.gmra.mrb[128].mxu1 %vm6297_vm12, %v8091_v27 }
 0x8e5   :  { %v8168_v0 = vpop.f32.mrb[128].mxu1 }
 0x8e6   :  { %v8169_v6 = vadd.f32 %v8674_v33, %v8168_v0  ;;  %v9791_v15 = vpop.f32.mrb[129].mxu1 }
 0x8e7   :  { %v8171_v29 = vpop.f32.mrb[130].mxu1 }
 0x8e8   :  { %v9792_v51 = vpop.f32.mrb[131].mxu1  ;;  %8175 = vst.msk [vmem:[#allocation4] sm:$0x3] %vm8174_vm15, %v8169_v6 }
 0x8e9   :  { %10515 = shalt.err (!%p10512_p4)
}
 0x8ea   :  { %s10516_s10 = scalar_lea.hbm %s13142_s11, 32 }
 0x8eb   :  { %p10517_p5 = scmp.ne.s32.totalorder %s13142_s11, %s10516_s10  ;;  %p10520_p6 = scmp.lt.u32.totalorder %s10516_s10, %s13142_s11 }
 0x8ed   :  { %p10522_p7 = pnand %p10520_p6, %p10517_p5 }
 0x8ef   :  { %10525 = shalt.err (!%p10522_p7)
}
 0x8f0   :  { %8185 = dma.vmem_to_hbm [thread:$0]  %s8183_s27, 32, %s13142_s11, [#allocation5]  }
 0x8f1   :  { %10526 = dma.done.wait [#allocation5], 32  }
 0x8f2   :  { %10527 = vsyncadd [#allocation5], 4294967264 }
 0x8f3   :  { %8189 = vsyncpa [#allocation5], 1 }

</bundles_post_ra>
